<compile_context>
chip_gen: v7x
topology: tpu7x:2x2x1
jax: 0.10.0
libtpu: 0.0.40
codegen_flags: <defaults>
</compile_context>

<pallas_src>
import math

import jax
import jax.numpy as jnp
from jax import lax
from jax.experimental import pallas as pl
from jax.experimental.pallas import tpu as pltpu

# ---- toy configuration (small stand-in for feature_dim ~ 1024 models) ------
D_MODEL = 256                  # feature_dim
N_HEAD = 2                     # -> HEAD_DIM = 128 (lane-aligned head slices)
HEAD_DIM = D_MODEL // N_HEAD
D_FF = 4 * D_MODEL             # dim_feedforward = feature_dim * 4
VOCAB = 256
N_LAYERS = 2
LN_EPS = 1e-5
MAX_LEN = 64
NEG_INF = -1e30
BF16 = jnp.bfloat16


# ---------------------------------------------------------------------------
# in-kernel helpers
# ---------------------------------------------------------------------------
def _layer_norm(x, gamma, beta):
    mean = jnp.mean(x, axis=-1, keepdims=True)
    var = jnp.mean((x - mean) ** 2, axis=-1, keepdims=True)
    return (x - mean) * lax.rsqrt(var + LN_EPS) * gamma + beta


def _softmax_rows(s):
    # stable softmax; normalization uses the EUP approximate reciprocal so the
    # divide stays off the VALU slots (error ~2^-12, negligible vs bf16).
    s = s - jnp.max(s, axis=-1, keepdims=True)
    e = jnp.exp(s)
    return e * pl.reciprocal(jnp.sum(e, axis=-1, keepdims=True), approx=True)


def _attention(q, k, v, w_o, b_o, bias):
    """Multi-head attention on flattened row blocks.

    q: (M, D) bf16 (scale already folded into the Q projection),
    k/v: (Mk, D) bf16, w_o: (D, D) bf16 pre-transposed, b_o: (1, D) f32,
    bias: (M, Mk) f32 additive mask (0 / NEG_INF), built once per kernel call.
    Heads are statically unrolled over 128-wide lane-aligned slices; contexts
    are concatenated into one (M, D) buffer so the output projection is a
    single K=D matmul.
    """
    nt_dims = (((1,), (1,)), ((), ()))           # contract on last dim of both
    ctx_parts = []
    for h in range(N_HEAD):                      # static unroll (toy N_HEAD=2)
        lo = h * HEAD_DIM
        qh = q[:, lo:lo + HEAD_DIM]
        kh = k[:, lo:lo + HEAD_DIM]
        vh = v[:, lo:lo + HEAD_DIM]
        s = lax.dot_general(qh, kh, nt_dims,
                            preferred_element_type=jnp.float32)   # (M, Mk) f32
        s = s + bias
        p = _softmax_rows(s)
        ctx_parts.append(jnp.dot(p.astype(BF16), vh,
                                 preferred_element_type=jnp.float32))
    ctx = jnp.concatenate(ctx_parts, axis=-1).astype(BF16)        # (M, D)
    return jnp.dot(ctx, w_o, preferred_element_type=jnp.float32) + b_o


def _layer_body(tgt_ref, mem_ref, bias_sa_ref, bias_ca_ref,
                w_qkv_ref, b_qkv_ref, wo_sa_ref, bo_sa_ref,
                wq_ca_ref, bq_ca_ref, wkv_ca_ref, bkv_ca_ref,
                wo_ca_ref, bo_ca_ref,
                g1_ref, b1_ref, g2_ref, b2_ref, g3_ref, b3_ref,
                w1_ref, fb1_ref, w2_ref, fb2_ref):
    bb, lq, d = tgt_ref.shape
    lk = mem_ref.shape[1]
    m = bb * lq

    x = tgt_ref[...].reshape(m, d)                                # f32 residual
    x_bf = x.astype(BF16)

    # ----- self-attention (fused QKV projection; 1/sqrt(hd) folded into Q) ---
    qkv = jnp.dot(x_bf, w_qkv_ref[...],
                  preferred_element_type=jnp.float32) + b_qkv_ref[...]
    q = qkv[:, :d].astype(BF16)
    k = qkv[:, d:2 * d].astype(BF16)
    v = qkv[:, 2 * d:].astype(BF16)
    sa = _attention(q, k, v, wo_sa_ref[...], bo_sa_ref[...], bias_sa_ref[...])
    x1 = _layer_norm(x + sa, g1_ref[...], b1_ref[...])            # norm1

    # ----- cross-attention over memory (fused KV projection) ----------------
    mem_bf = mem_ref[...].reshape(bb * lk, d).astype(BF16)
    qc = (jnp.dot(x1.astype(BF16), wq_ca_ref[...],
                  preferred_element_type=jnp.float32) + bq_ca_ref[...]).astype(BF16)
    kvc = jnp.dot(mem_bf, wkv_ca_ref[...],
                  preferred_element_type=jnp.float32) + bkv_ca_ref[...]
    kc = kvc[:, :d].astype(BF16)
    vc = kvc[:, d:].astype(BF16)
    ca = _attention(qc, kc, vc, wo_ca_ref[...], bo_ca_ref[...], bias_ca_ref[...])
    x2 = _layer_norm(x1 + ca, g2_ref[...], b2_ref[...])           # norm2

    # ----- feed-forward ------------------------------------------------------
    # TODO(synk): tile over d_ff with a VMEM accumulator at real scale.
    h = jnp.dot(x2.astype(BF16), w1_ref[...],
                preferred_element_type=jnp.float32) + fb1_ref[...]
    h = jnp.maximum(h, 0.0)
    ff = jnp.dot(h.astype(BF16), w2_ref[...],
                 preferred_element_type=jnp.float32) + fb2_ref[...]
    return _layer_norm(x2 + ff, g3_ref[...], b3_ref[...])         # norm3


def decoder_layer_kernel(*refs):
    o_ref = refs[-1]
    x3 = _layer_body(*refs[:-1])
    o_ref[...] = x3.reshape(o_ref.shape)


def decoder_final_kernel(*refs):
    # final decoder layer with the wdc vocab projection fused in.
    o_ref = refs[-1]
    wdc_w_ref, wdc_b_ref = refs[-3], refs[-2]
    x3 = _layer_body(*refs[:-3])
    logits = jnp.dot(x3.astype(BF16), wdc_w_ref[...],
                     preferred_element_type=jnp.float32) + wdc_b_ref[...]
    o_ref[...] = logits.reshape(o_ref.shape)


# ---------------------------------------------------------------------------
# wrappers
# ---------------------------------------------------------------------------
def _const_index_map(ndim):
    return lambda b, _n=ndim: (0,) * _n          # grid-invariant operand


def _batch_block(batch, rows, target_rows=256):
    """Per-step batch block: M = bb*rows aims at ~256 rows (256-wide MXU on
    v6e/v7x) while keeping >= 2 'parallel' grid steps so both v7x TCs work."""
    bb = max(1, min(batch, -(-target_rows // rows)))
    if batch >= 2:
        bb = min(bb, batch // 2)
    while batch % bb:
        bb -= 1
    return bb


def _block_bias(bb, lq, lk, causal):
    """(bb*lq, bb*lk) additive mask: 0 within a batch block (and causal if
    requested), NEG_INF elsewhere.  Built once in plain JAX, reused by every
    head / layer / grid step."""
    rb = jnp.repeat(jnp.arange(bb), lq)
    cb = jnp.repeat(jnp.arange(bb), lk)
    valid = rb[:, None] == cb[None, :]
    if causal:
        rq = jnp.tile(jnp.arange(lq), bb)
        ck = jnp.tile(jnp.arange(lk), bb)
        valid = valid & (ck[None, :] <= rq[:, None])
    return jnp.where(valid, 0.0, NEG_INF).astype(jnp.float32)


def _prep_layer_weights(lyr):
    """Transpose for x@W layout, fold 1/sqrt(head_dim) into the Q projection,
    cast matmul weights to bf16 (f32 accumulation in-kernel); biases and
    LayerNorm params stay f32."""
    d = lyr["sa_out_w"].shape[0]
    scale = 1.0 / math.sqrt(HEAD_DIM)

    w_qkv = lyr["sa_in_w"].T.at[:, :d].multiply(scale)            # (d, 3d)
    b_qkv = lyr["sa_in_b"].at[:d].multiply(scale)

    return (
        w_qkv.astype(BF16), b_qkv.reshape(1, -1),
        lyr["sa_out_w"].T.astype(BF16), lyr["sa_out_b"].reshape(1, -1),
        (lyr["ca_in_w"][:d].T * scale).astype(BF16),              # Q (scaled)
        (lyr["ca_in_b"][:d] * scale).reshape(1, -1),
        lyr["ca_in_w"][d:].T.astype(BF16),                        # fused KV
        lyr["ca_in_b"][d:].reshape(1, -1),
        lyr["ca_out_w"].T.astype(BF16), lyr["ca_out_b"].reshape(1, -1),
        lyr["g1"].reshape(1, -1), lyr["b1"].reshape(1, -1),
        lyr["g2"].reshape(1, -1), lyr["b2"].reshape(1, -1),
        lyr["g3"].reshape(1, -1), lyr["b3"].reshape(1, -1),
        lyr["w1"].T.astype(BF16), lyr["fb1"].reshape(1, -1),
        lyr["w2"].T.astype(BF16), lyr["fb2"].reshape(1, -1),
    )


def _decoder_layer(x, mem, lyr, bb, bias_sa, bias_ca, wdc=None):
    batch, lq, d = x.shape
    lk = mem.shape[1]
    weights = list(_prep_layer_weights(lyr))

    if wdc is not None:                                  # fuse vocab head
        weights += [wdc[0], wdc[1]]
        kernel = decoder_final_kernel
        out_dim = int(wdc[0].shape[1])
    else:
        kernel = decoder_layer_kernel
        out_dim = d

    operands = [x, mem, bias_sa, bias_ca] + weights
    in_specs = [
        pl.BlockSpec((bb, lq, d), lambda b: (b, 0, 0)),
        pl.BlockSpec((bb, lk, d), lambda b: (b, 0, 0)),
    ] + [pl.BlockSpec(op.shape, _const_index_map(op.ndim)) for op in operands[2:]]

    # explicit scoped-VMEM budget: double-buffered operands + output + slack,
    # capped at 64 MiB so it is valid on v7x as well as v5e/v6e.
    op_bytes = (bb * lq * d + bb * lk * d + bb * lq * out_dim) * 4
    op_bytes += sum(int(op.size) * op.dtype.itemsize for op in operands[2:])
    vmem_limit = int(max(32 << 20, min(64 << 20, 2 * op_bytes + (24 << 20))))

    return pl.pallas_call(
        kernel,
        out_shape=jax.ShapeDtypeStruct((batch, lq, out_dim), jnp.float32),
        grid=(batch // bb,),
        in_specs=in_specs,
        out_specs=pl.BlockSpec((bb, lq, out_dim), lambda b: (b, 0, 0)),
        compiler_params=pltpu.CompilerParams(
            dimension_semantics=("parallel",),
            vmem_limit_bytes=vmem_limit),
    )(*operands)


def decoder_forward(params, memory, encoded_captions, caption_lengths):
    """Mirrors DecoderTransformer.forward (eval mode; dropout = identity).

    memory:           (S, B, D, n_scales)   caption_lengths: (B, 1) int32
    encoded_captions: (B, L) int32
    returns (pred (B, L, vocab), captions_sorted, decode_lengths, sort_ind).
    decode_lengths is a jnp array (PyTorch returns a Python list).
    """
    batch, lq = encoded_captions.shape
    lk = memory.shape[0]
    bb = _batch_block(batch, lq)

    # embedding gather + positional encoding (data-dependent gather: plain JAX)
    tgt = encoded_captions.T                                      # (L, B)
    x = params["vocab_embedding"][tgt] + params["pe"][:lq]        # (L, B, D)
    x = jnp.transpose(x, (1, 0, 2)).astype(jnp.float32)           # (B, L, D)

    # additive attention biases (block-diagonal across the batch block,
    # causal for self-attention) -- built once, shared by all layers.
    bias_sa = _block_bias(bb, lq, lq, causal=True)
    bias_ca = _block_bias(bb, lq, lk, causal=False)

    wdc = (params["wdc_w"].T.astype(BF16),
           params["wdc_b"].reshape(1, -1).astype(jnp.float32))

    n_layers = len(params["layers"])
    for j, lyr in enumerate(params["layers"]):
        mem_j = jnp.transpose(memory[:, :, :, 2 - j], (1, 0, 2))  # (B, S, D)
        is_last = (j == n_layers - 1)
        x = _decoder_layer(x, mem_j, lyr, bb, bias_sa, bias_ca,
                           wdc=wdc if is_last else None)

    pred = x                                                      # (B, L, vocab)
    lengths = caption_lengths[:, 0]
    sort_ind = jnp.argsort(-lengths)                              # descending
    return (pred[sort_ind], encoded_captions[sort_ind],
            lengths[sort_ind] - 1, sort_ind)


# ---------------------------------------------------------------------------
# parameters
# ---------------------------------------------------------------------------
def _positional_encoding(max_len, d):
    position = jnp.arange(max_len, dtype=jnp.float32)[:, None]
    div_term = jnp.exp(jnp.arange(0, d, 2, dtype=jnp.float32)
                       * (-math.log(10000.0) / d))
    pe = jnp.zeros((max_len, d), jnp.float32)
    pe = pe.at[:, 0::2].set(jnp.sin(position * div_term))
    pe = pe.at[:, 1::2].set(jnp.cos(position * div_term))
    return pe[:, None, :]                                         # (max_len, 1, D)


def init_params(key):
    d, f, v = D_MODEL, D_FF, VOCAB
    keys = iter(jax.random.split(key, 2 + 18 * N_LAYERS))

    def nrm(shape, scale=0.05):
        return scale * jax.random.normal(next(keys), shape, dtype=jnp.float32)

    layers = []
    for _ in range(N_LAYERS):
        layers.append(dict(
            sa_in_w=nrm((3 * d, d)), sa_in_b=nrm((3 * d,)),       # packed in_proj
            sa_out_w=nrm((d, d)), sa_out_b=nrm((d,)),
            ca_in_w=nrm((3 * d, d)), ca_in_b=nrm((3 * d,)),
            ca_out_w=nrm((d, d)), ca_out_b=nrm((d,)),
            g1=1.0 + nrm((d,)), b1=nrm((d,)),
            g2=1.0 + nrm((d,)), b2=nrm((d,)),
            g3=1.0 + nrm((d,)), b3=nrm((d,)),
            w1=nrm((f, d)), fb1=nrm((f,)),
            w2=nrm((d, f)), fb2=nrm((d,)),
        ))
    vocab_embedding = jax.random.uniform(next(keys), (v, d), jnp.float32, -0.1, 0.1)
    wdc_w = jax.random.uniform(next(keys), (v, d), jnp.float32, -0.1, 0.1)
    wdc_b = jnp.zeros((v,), jnp.float32)
    return dict(vocab_embedding=vocab_embedding, pe=_positional_encoding(MAX_LEN, d),
                wdc_w=wdc_w, wdc_b=wdc_b, layers=layers)


# ---------------------------------------------------------------------------
# pure-JAX reference (mirrors the PyTorch module, eval mode, fp32)
# ---------------------------------------------------------------------------
def _ref_ln(x, g, b):
    m = x.mean(-1, keepdims=True)
    va = ((x - m) ** 2).mean(-1, keepdims=True)
    return (x - m) / jnp.sqrt(va + LN_EPS) * g + b


def _ref_mha(q_in, kv_in, in_w, in_b, out_w, out_b, mask):
    lq, batch, d = q_in.shape
    lk = kv_in.shape[0]
    h, hd = N_HEAD, HEAD_DIM
    wq, wk, wv = in_w[:d], in_w[d:2 * d], in_w[2 * d:]
    bq, bk, bv = in_b[:d], in_b[d:2 * d], in_b[2 * d:]
    q = jnp.einsum("lbd,ed->lbe", q_in, wq) + bq
    k = jnp.einsum("lbd,ed->lbe", kv_in, wk) + bk
    v = jnp.einsum("lbd,ed->lbe", kv_in, wv) + bv
    qh = q.reshape(lq, batch, h, hd)
    kh = k.reshape(lk, batch, h, hd)
    vh = v.reshape(lk, batch, h, hd)
    s = jnp.einsum("qbhd,kbhd->bhqk", qh, kh) / math.sqrt(hd)
    if mask is not None:
        s = s + mask
    p = jax.nn.softmax(s, axis=-1)
    ctx = jnp.einsum("bhqk,kbhd->qbhd", p, vh).reshape(lq, batch, d)
    return jnp.einsum("lbd,ed->lbe", ctx, out_w) + out_b


def _ref_layer(x, mem, lyr, mask):
    sa = _ref_mha(x, x, lyr["sa_in_w"], lyr["sa_in_b"],
                  lyr["sa_out_w"], lyr["sa_out_b"], mask)
    x1 = _ref_ln(x + sa, lyr["g1"], lyr["b1"])
    ca = _ref_mha(x1, mem, lyr["ca_in_w"], lyr["ca_in_b"],
                  lyr["ca_out_w"], lyr["ca_out_b"], None)
    x2 = _ref_ln(x1 + ca, lyr["g2"], lyr["b2"])
    hh = jax.nn.relu(jnp.einsum("lbd,fd->lbf", x2, lyr["w1"]) + lyr["fb1"])
    ff = jnp.einsum("lbf,df->lbd", hh, lyr["w2"]) + lyr["fb2"]
    return _ref_ln(x2 + ff, lyr["g3"], lyr["b3"])


def reference_forward(params, memory, encoded_captions, caption_lengths):
    tgt = encoded_captions.T
    lq = tgt.shape[0]
    causal = jnp.tril(jnp.ones((lq, lq), dtype=bool))
    mask = jnp.where(causal, 0.0, -jnp.inf).astype(jnp.float32)
    x = params["vocab_embedding"][tgt] + params["pe"][:lq]
    for j, lyr in enumerate(params["layers"]):
        x = _ref_layer(x, memory[:, :, :, 2 - j], lyr, mask)
    pred = jnp.einsum("lbd,vd->lbv", x, params["wdc_w"]) + params["wdc_b"]
    pred = jnp.transpose(pred, (1, 0, 2))
    lengths = caption_lengths[:, 0]
    sort_ind = jnp.argsort(-lengths)
    return pred[sort_ind], encoded_captions[sort_ind], lengths[sort_ind] - 1, sort_ind


# ---------------------------------------------------------------------------
if __name__ == "__main__":
    key = jax.random.PRNGKey(0)
    kp, km, kc = jax.random.split(key, 3)

    B, L, S = 2, 8, 8
    params = init_params(kp)

    # memory: (S, batch, feature_dim, n_scales); layer j uses scale index 2 - j
    memory = jax.random.normal(km, (S, B, D_MODEL, 3), jnp.float32)
    encoded_captions = jax.random.randint(kc, (B, L), 0, VOCAB)
    caption_lengths = jnp.array([[L], [L - 3]], dtype=jnp.int32)

    outs = decoder_forward(params, memory, encoded_captions, caption_lengths)
    outs = jax.block_until_ready(outs)
    pred, enc_sorted, decode_lengths, sort_ind = outs

    ref_pred, ref_enc, ref_dec, ref_sort = reference_forward(
        params, memory, encoded_captions, caption_lengths)

    assert pred.shape == (B, L, VOCAB)
    assert jnp.array_equal(sort_ind, ref_sort)
    assert jnp.array_equal(enc_sorted, ref_enc)
    assert jnp.array_equal(decode_lengths, ref_dec)
    # kernel uses bf16 matmul inputs (f32 accumulation) + EUP approx reciprocal
    # in softmax, so compare against the fp32 reference with a loose max-error
    # bound plus a tighter mean-error bound (logits are ~unit scale).
    err = jnp.abs(pred - ref_pred)
    assert float(jnp.mean(err)) < 4e-2, "mean abs error too large vs fp32 reference"
    assert jnp.allclose(pred, ref_pred, atol=1.5e-1, rtol=5e-2), \
        "mismatch vs pure-JAX reference"

    print("KERNEL_OK")
</pallas_src>

<mosaic_0001>
module attributes {stable_mosaic.version = 11 : i64} {
  func.func @decoder_layer_kernel(%arg0: i32, %arg1: memref<1x8x256xf32, #tpu.memory_space<vmem>>, %arg2: memref<1x8x256xf32, #tpu.memory_space<vmem>>, %arg3: memref<8x8xf32, #tpu.memory_space<vmem>>, %arg4: memref<8x8xf32, #tpu.memory_space<vmem>>, %arg5: memref<256x768xbf16, #tpu.memory_space<vmem>>, %arg6: memref<1x768xf32, #tpu.memory_space<vmem>>, %arg7: memref<256x256xbf16, #tpu.memory_space<vmem>>, %arg8: memref<1x256xf32, #tpu.memory_space<vmem>>, %arg9: memref<256x256xbf16, #tpu.memory_space<vmem>>, %arg10: memref<1x256xf32, #tpu.memory_space<vmem>>, %arg11: memref<256x512xbf16, #tpu.memory_space<vmem>>, %arg12: memref<1x512xf32, #tpu.memory_space<vmem>>, %arg13: memref<256x256xbf16, #tpu.memory_space<vmem>>, %arg14: memref<1x256xf32, #tpu.memory_space<vmem>>, %arg15: memref<1x256xf32, #tpu.memory_space<vmem>>, %arg16: memref<1x256xf32, #tpu.memory_space<vmem>>, %arg17: memref<1x256xf32, #tpu.memory_space<vmem>>, %arg18: memref<1x256xf32, #tpu.memory_space<vmem>>, %arg19: memref<1x256xf32, #tpu.memory_space<vmem>>, %arg20: memref<1x256xf32, #tpu.memory_space<vmem>>, %arg21: memref<256x1024xbf16, #tpu.memory_space<vmem>>, %arg22: memref<1x1024xf32, #tpu.memory_space<vmem>>, %arg23: memref<1024x256xbf16, #tpu.memory_space<vmem>>, %arg24: memref<1x256xf32, #tpu.memory_space<vmem>>, %arg25: memref<1x8x256xf32, #tpu.memory_space<vmem>>) attributes {dimension_semantics = [#tpu.dimension_semantics<parallel>], iteration_bounds = array<i64: 2>, scalar_prefetch = 0 : i64, scratch_operands = 0 : i64, tpu.core_type = #tpu.core_type<tc>, window_params = [{transform_indices = @transform_0, window_bounds = array<i64: 1, 8, 256>}, {transform_indices = @transform_1, window_bounds = array<i64: 1, 8, 256>}, {pipeline_mode = #tpu.pipeline_mode<synchronous>, transform_indices = @transform_2, window_bounds = array<i64: 8, 8>}, {pipeline_mode = #tpu.pipeline_mode<synchronous>, transform_indices = @transform_3, window_bounds = array<i64: 8, 8>}, {pipeline_mode = #tpu.pipeline_mode<synchronous>, transform_indices = @transform_4, window_bounds = array<i64: 256, 768>}, {pipeline_mode = #tpu.pipeline_mode<synchronous>, transform_indices = @transform_5, window_bounds = array<i64: 1, 768>}, {pipeline_mode = #tpu.pipeline_mode<synchronous>, transform_indices = @transform_6, window_bounds = array<i64: 256, 256>}, {pipeline_mode = #tpu.pipeline_mode<synchronous>, transform_indices = @transform_7, window_bounds = array<i64: 1, 256>}, {pipeline_mode = #tpu.pipeline_mode<synchronous>, transform_indices = @transform_8, window_bounds = array<i64: 256, 256>}, {pipeline_mode = #tpu.pipeline_mode<synchronous>, transform_indices = @transform_9, window_bounds = array<i64: 1, 256>}, {pipeline_mode = #tpu.pipeline_mode<synchronous>, transform_indices = @transform_10, window_bounds = array<i64: 256, 512>}, {pipeline_mode = #tpu.pipeline_mode<synchronous>, transform_indices = @transform_11, window_bounds = array<i64: 1, 512>}, {pipeline_mode = #tpu.pipeline_mode<synchronous>, transform_indices = @transform_12, window_bounds = array<i64: 256, 256>}, {pipeline_mode = #tpu.pipeline_mode<synchronous>, transform_indices = @transform_13, window_bounds = array<i64: 1, 256>}, {pipeline_mode = #tpu.pipeline_mode<synchronous>, transform_indices = @transform_14, window_bounds = array<i64: 1, 256>}, {pipeline_mode = #tpu.pipeline_mode<synchronous>, transform_indices = @transform_15, window_bounds = array<i64: 1, 256>}, {pipeline_mode = #tpu.pipeline_mode<synchronous>, transform_indices = @transform_16, window_bounds = array<i64: 1, 256>}, {pipeline_mode = #tpu.pipeline_mode<synchronous>, transform_indices = @transform_17, window_bounds = array<i64: 1, 256>}, {pipeline_mode = #tpu.pipeline_mode<synchronous>, transform_indices = @transform_18, window_bounds = array<i64: 1, 256>}, {pipeline_mode = #tpu.pipeline_mode<synchronous>, transform_indices = @transform_19, window_bounds = array<i64: 1, 256>}, {pipeline_mode = #tpu.pipeline_mode<synchronous>, transform_indices = @transform_20, window_bounds = array<i64: 256, 1024>}, {pipeline_mode = #tpu.pipeline_mode<synchronous>, transform_indices = @transform_21, window_bounds = array<i64: 1, 1024>}, {pipeline_mode = #tpu.pipeline_mode<synchronous>, transform_indices = @transform_22, window_bounds = array<i64: 1024, 256>}, {pipeline_mode = #tpu.pipeline_mode<synchronous>, transform_indices = @transform_23, window_bounds = array<i64: 1, 256>}, {transform_indices = @transform_24, window_bounds = array<i64: 1, 8, 256>}]} {
    %c0 = arith.constant 0 : index
    %c0_0 = arith.constant 0 : index
    %c0_1 = arith.constant 0 : index
    %0 = vector.load %arg1[%c0, %c0_0, %c0_1] : memref<1x8x256xf32, #tpu.memory_space<vmem>>, vector<1x8x256xf32>
    %1 = vector.shape_cast %0 : vector<1x8x256xf32> to vector<8x256xf32>
    %2 = arith.truncf %1 : vector<8x256xf32> to vector<8x256xbf16>
    %c0_2 = arith.constant 0 : index
    %c0_3 = arith.constant 0 : index
    %3 = vector.load %arg5[%c0_2, %c0_3] : memref<256x768xbf16, #tpu.memory_space<vmem>>, vector<256x768xbf16>
    %cst = arith.constant dense<0.000000e+00> : vector<8x768xf32>
    %4 = tpu.matmul %2, %3, %cst {dimension_numbers = #tpu.dot_dimension_numbers<[1], [0], [0], [1], [0, 0, 1, 1], [], []>} : vector<8x256xbf16>, vector<256x768xbf16>, vector<8x768xf32> -> vector<8x768xf32>
    %c0_4 = arith.constant 0 : index
    %c0_5 = arith.constant 0 : index
    %5 = vector.load %arg6[%c0_4, %c0_5] : memref<1x768xf32, #tpu.memory_space<vmem>>, vector<1x768xf32>
    %6 = vector.broadcast %5 : vector<1x768xf32> to vector<8x768xf32>
    %7 = arith.addf %4, %6 : vector<8x768xf32>
    %8 = vector.extract_strided_slice %7 {offsets = [0, 0], sizes = [8, 256], strides = [1, 1]} : vector<8x768xf32> to vector<8x256xf32>
    %9 = arith.truncf %8 : vector<8x256xf32> to vector<8x256xbf16>
    %10 = vector.extract_strided_slice %7 {offsets = [0, 256], sizes = [8, 256], strides = [1, 1]} : vector<8x768xf32> to vector<8x256xf32>
    %11 = arith.truncf %10 : vector<8x256xf32> to vector<8x256xbf16>
    %12 = vector.extract_strided_slice %7 {offsets = [0, 512], sizes = [8, 256], strides = [1, 1]} : vector<8x768xf32> to vector<8x256xf32>
    %13 = arith.truncf %12 : vector<8x256xf32> to vector<8x256xbf16>
    %c0_6 = arith.constant 0 : index
    %c0_7 = arith.constant 0 : index
    %14 = vector.load %arg7[%c0_6, %c0_7] : memref<256x256xbf16, #tpu.memory_space<vmem>>, vector<256x256xbf16>
    %c0_8 = arith.constant 0 : index
    %c0_9 = arith.constant 0 : index
    %15 = vector.load %arg8[%c0_8, %c0_9] : memref<1x256xf32, #tpu.memory_space<vmem>>, vector<1x256xf32>
    %c0_10 = arith.constant 0 : index
    %c0_11 = arith.constant 0 : index
    %16 = vector.load %arg3[%c0_10, %c0_11] : memref<8x8xf32, #tpu.memory_space<vmem>>, vector<8x8xf32>
    %17 = vector.extract_strided_slice %9 {offsets = [0, 0], sizes = [8, 128], strides = [1, 1]} : vector<8x256xbf16> to vector<8x128xbf16>
    %18 = vector.extract_strided_slice %11 {offsets = [0, 0], sizes = [8, 128], strides = [1, 1]} : vector<8x256xbf16> to vector<8x128xbf16>
    %19 = vector.extract_strided_slice %13 {offsets = [0, 0], sizes = [8, 128], strides = [1, 1]} : vector<8x256xbf16> to vector<8x128xbf16>
    %cst_12 = arith.constant dense<0.000000e+00> : vector<8x8xf32>
    %20 = tpu.matmul %17, %18, %cst_12 {dimension_numbers = #tpu.dot_dimension_numbers<[1], [1], [0], [0], [0, 0, 1, 0], [], []>} : vector<8x128xbf16>, vector<8x128xbf16>, vector<8x8xf32> -> vector<8x8xf32>
    %21 = arith.addf %20, %16 : vector<8x8xf32>
    %cst_13 = arith.constant dense<0xFF800000> : vector<8xf32>
    %22 = vector.multi_reduction <maximumf>, %21, %cst_13 [1] : vector<8x8xf32> to vector<8xf32>
    %23 = vector.shape_cast %22 : vector<8xf32> to vector<8x1xf32>
    %24 = vector.broadcast %23 : vector<8x1xf32> to vector<8x8xf32>
    %25 = arith.subf %21, %24 : vector<8x8xf32>
    %26 = math.exp %25 : vector<8x8xf32>
    %cst_14 = arith.constant dense<0.000000e+00> : vector<8xf32>
    %27 = vector.multi_reduction <add>, %26, %cst_14 [1] : vector<8x8xf32> to vector<8xf32>
    %28 = vector.shape_cast %27 : vector<8xf32> to vector<8x1xf32>
    %29 = tpu.reciprocal %28 {approx = true} : vector<8x1xf32> -> vector<8x1xf32>
    %30 = vector.broadcast %29 : vector<8x1xf32> to vector<8x8xf32>
    %31 = arith.mulf %26, %30 : vector<8x8xf32>
    %32 = arith.truncf %31 : vector<8x8xf32> to vector<8x8xbf16>
    %cst_15 = arith.constant dense<0.000000e+00> : vector<8x128xf32>
    %33 = tpu.matmul %32, %19, %cst_15 {dimension_numbers = #tpu.dot_dimension_numbers<[1], [0], [0], [1], [0, 0, 1, 1], [], []>} : vector<8x8xbf16>, vector<8x128xbf16>, vector<8x128xf32> -> vector<8x128xf32>
    %34 = vector.extract_strided_slice %9 {offsets = [0, 128], sizes = [8, 128], strides = [1, 1]} : vector<8x256xbf16> to vector<8x128xbf16>
    %35 = vector.extract_strided_slice %11 {offsets = [0, 128], sizes = [8, 128], strides = [1, 1]} : vector<8x256xbf16> to vector<8x128xbf16>
    %36 = vector.extract_strided_slice %13 {offsets = [0, 128], sizes = [8, 128], strides = [1, 1]} : vector<8x256xbf16> to vector<8x128xbf16>
    %cst_16 = arith.constant dense<0.000000e+00> : vector<8x8xf32>
    %37 = tpu.matmul %34, %35, %cst_16 {dimension_numbers = #tpu.dot_dimension_numbers<[1], [1], [0], [0], [0, 0, 1, 0], [], []>} : vector<8x128xbf16>, vector<8x128xbf16>, vector<8x8xf32> -> vector<8x8xf32>
    %38 = arith.addf %37, %16 : vector<8x8xf32>
    %cst_17 = arith.constant dense<0xFF800000> : vector<8xf32>
    %39 = vector.multi_reduction <maximumf>, %38, %cst_17 [1] : vector<8x8xf32> to vector<8xf32>
    %40 = vector.shape_cast %39 : vector<8xf32> to vector<8x1xf32>
    %41 = vector.broadcast %40 : vector<8x1xf32> to vector<8x8xf32>
    %42 = arith.subf %38, %41 : vector<8x8xf32>
    %43 = math.exp %42 : vector<8x8xf32>
    %cst_18 = arith.constant dense<0.000000e+00> : vector<8xf32>
    %44 = vector.multi_reduction <add>, %43, %cst_18 [1] : vector<8x8xf32> to vector<8xf32>
    %45 = vector.shape_cast %44 : vector<8xf32> to vector<8x1xf32>
    %46 = tpu.reciprocal %45 {approx = true} : vector<8x1xf32> -> vector<8x1xf32>
    %47 = vector.broadcast %46 : vector<8x1xf32> to vector<8x8xf32>
    %48 = arith.mulf %43, %47 : vector<8x8xf32>
    %49 = arith.truncf %48 : vector<8x8xf32> to vector<8x8xbf16>
    %cst_19 = arith.constant dense<0.000000e+00> : vector<8x128xf32>
    %50 = tpu.matmul %49, %36, %cst_19 {dimension_numbers = #tpu.dot_dimension_numbers<[1], [0], [0], [1], [0, 0, 1, 1], [], []>} : vector<8x8xbf16>, vector<8x128xbf16>, vector<8x128xf32> -> vector<8x128xf32>
    %51 = tpu.concatenate %33, %50 in 1 : vector<8x128xf32>, vector<8x128xf32> -> vector<8x256xf32>
    %52 = arith.truncf %51 : vector<8x256xf32> to vector<8x256xbf16>
    %cst_20 = arith.constant dense<0.000000e+00> : vector<8x256xf32>
    %53 = tpu.matmul %52, %14, %cst_20 {dimension_numbers = #tpu.dot_dimension_numbers<[1], [0], [0], [1], [0, 0, 1, 1], [], []>} : vector<8x256xbf16>, vector<256x256xbf16>, vector<8x256xf32> -> vector<8x256xf32>
    %54 = vector.broadcast %15 : vector<1x256xf32> to vector<8x256xf32>
    %55 = arith.addf %53, %54 : vector<8x256xf32>
    %56 = arith.addf %1, %55 : vector<8x256xf32>
    %c0_21 = arith.constant 0 : index
    %c0_22 = arith.constant 0 : index
    %57 = vector.load %arg15[%c0_21, %c0_22] : memref<1x256xf32, #tpu.memory_space<vmem>>, vector<1x256xf32>
    %c0_23 = arith.constant 0 : index
    %c0_24 = arith.constant 0 : index
    %58 = vector.load %arg16[%c0_23, %c0_24] : memref<1x256xf32, #tpu.memory_space<vmem>>, vector<1x256xf32>
    %cst_25 = arith.constant dense<0.000000e+00> : vector<8xf32>
    %59 = vector.multi_reduction <add>, %56, %cst_25 [1] : vector<8x256xf32> to vector<8xf32>
    %60 = vector.shape_cast %59 : vector<8xf32> to vector<8x1xf32>
    %cst_26 = arith.constant 2.560000e+02 : f32
    %61 = vector.broadcast %cst_26 : f32 to vector<8x1xf32>
    %62 = arith.divf %60, %61 : vector<8x1xf32>
    %63 = vector.broadcast %62 : vector<8x1xf32> to vector<8x256xf32>
    %64 = arith.subf %56, %63 : vector<8x256xf32>
    %65 = arith.mulf %64, %64 : vector<8x256xf32>
    %cst_27 = arith.constant dense<0.000000e+00> : vector<8xf32>
    %66 = vector.multi_reduction <add>, %65, %cst_27 [1] : vector<8x256xf32> to vector<8xf32>
    %67 = vector.shape_cast %66 : vector<8xf32> to vector<8x1xf32>
    %cst_28 = arith.constant 2.560000e+02 : f32
    %68 = vector.broadcast %cst_28 : f32 to vector<8x1xf32>
    %69 = arith.divf %67, %68 : vector<8x1xf32>
    %70 = vector.broadcast %62 : vector<8x1xf32> to vector<8x256xf32>
    %71 = arith.subf %56, %70 : vector<8x256xf32>
    %cst_29 = arith.constant 9.99999974E-6 : f32
    %72 = vector.broadcast %cst_29 : f32 to vector<8x1xf32>
    %73 = arith.addf %69, %72 : vector<8x1xf32>
    %74 = math.rsqrt %73 : vector<8x1xf32>
    %75 = vector.broadcast %74 : vector<8x1xf32> to vector<8x256xf32>
    %76 = arith.mulf %71, %75 : vector<8x256xf32>
    %77 = vector.broadcast %57 : vector<1x256xf32> to vector<8x256xf32>
    %78 = arith.mulf %76, %77 : vector<8x256xf32>
    %79 = vector.broadcast %58 : vector<1x256xf32> to vector<8x256xf32>
    %80 = arith.addf %78, %79 : vector<8x256xf32>
    %c0_30 = arith.constant 0 : index
    %c0_31 = arith.constant 0 : index
    %c0_32 = arith.constant 0 : index
    %81 = vector.load %arg2[%c0_30, %c0_31, %c0_32] : memref<1x8x256xf32, #tpu.memory_space<vmem>>, vector<1x8x256xf32>
    %82 = vector.shape_cast %81 : vector<1x8x256xf32> to vector<8x256xf32>
    %83 = arith.truncf %82 : vector<8x256xf32> to vector<8x256xbf16>
    %84 = arith.truncf %80 : vector<8x256xf32> to vector<8x256xbf16>
    %c0_33 = arith.constant 0 : index
    %c0_34 = arith.constant 0 : index
    %85 = vector.load %arg9[%c0_33, %c0_34] : memref<256x256xbf16, #tpu.memory_space<vmem>>, vector<256x256xbf16>
    %cst_35 = arith.constant dense<0.000000e+00> : vector<8x256xf32>
    %86 = tpu.matmul %84, %85, %cst_35 {dimension_numbers = #tpu.dot_dimension_numbers<[1], [0], [0], [1], [0, 0, 1, 1], [], []>} : vector<8x256xbf16>, vector<256x256xbf16>, vector<8x256xf32> -> vector<8x256xf32>
    %c0_36 = arith.constant 0 : index
    %c0_37 = arith.constant 0 : index
    %87 = vector.load %arg10[%c0_36, %c0_37] : memref<1x256xf32, #tpu.memory_space<vmem>>, vector<1x256xf32>
    %88 = vector.broadcast %87 : vector<1x256xf32> to vector<8x256xf32>
    %89 = arith.addf %86, %88 : vector<8x256xf32>
    %90 = arith.truncf %89 : vector<8x256xf32> to vector<8x256xbf16>
    %c0_38 = arith.constant 0 : index
    %c0_39 = arith.constant 0 : index
    %91 = vector.load %arg11[%c0_38, %c0_39] : memref<256x512xbf16, #tpu.memory_space<vmem>>, vector<256x512xbf16>
    %cst_40 = arith.constant dense<0.000000e+00> : vector<8x512xf32>
    %92 = tpu.matmul %83, %91, %cst_40 {dimension_numbers = #tpu.dot_dimension_numbers<[1], [0], [0], [1], [0, 0, 1, 1], [], []>} : vector<8x256xbf16>, vector<256x512xbf16>, vector<8x512xf32> -> vector<8x512xf32>
    %c0_41 = arith.constant 0 : index
    %c0_42 = arith.constant 0 : index
    %93 = vector.load %arg12[%c0_41, %c0_42] : memref<1x512xf32, #tpu.memory_space<vmem>>, vector<1x512xf32>
    %94 = vector.broadcast %93 : vector<1x512xf32> to vector<8x512xf32>
    %95 = arith.addf %92, %94 : vector<8x512xf32>
    %96 = vector.extract_strided_slice %95 {offsets = [0, 0], sizes = [8, 256], strides = [1, 1]} : vector<8x512xf32> to vector<8x256xf32>
    %97 = arith.truncf %96 : vector<8x256xf32> to vector<8x256xbf16>
    %98 = vector.extract_strided_slice %95 {offsets = [0, 256], sizes = [8, 256], strides = [1, 1]} : vector<8x512xf32> to vector<8x256xf32>
    %99 = arith.truncf %98 : vector<8x256xf32> to vector<8x256xbf16>
    %c0_43 = arith.constant 0 : index
    %c0_44 = arith.constant 0 : index
    %100 = vector.load %arg13[%c0_43, %c0_44] : memref<256x256xbf16, #tpu.memory_space<vmem>>, vector<256x256xbf16>
    %c0_45 = arith.constant 0 : index
    %c0_46 = arith.constant 0 : index
    %101 = vector.load %arg14[%c0_45, %c0_46] : memref<1x256xf32, #tpu.memory_space<vmem>>, vector<1x256xf32>
    %c0_47 = arith.constant 0 : index
    %c0_48 = arith.constant 0 : index
    %102 = vector.load %arg4[%c0_47, %c0_48] : memref<8x8xf32, #tpu.memory_space<vmem>>, vector<8x8xf32>
    %103 = vector.extract_strided_slice %90 {offsets = [0, 0], sizes = [8, 128], strides = [1, 1]} : vector<8x256xbf16> to vector<8x128xbf16>
    %104 = vector.extract_strided_slice %97 {offsets = [0, 0], sizes = [8, 128], strides = [1, 1]} : vector<8x256xbf16> to vector<8x128xbf16>
    %105 = vector.extract_strided_slice %99 {offsets = [0, 0], sizes = [8, 128], strides = [1, 1]} : vector<8x256xbf16> to vector<8x128xbf16>
    %cst_49 = arith.constant dense<0.000000e+00> : vector<8x8xf32>
    %106 = tpu.matmul %103, %104, %cst_49 {dimension_numbers = #tpu.dot_dimension_numbers<[1], [1], [0], [0], [0, 0, 1, 0], [], []>} : vector<8x128xbf16>, vector<8x128xbf16>, vector<8x8xf32> -> vector<8x8xf32>
    %107 = arith.addf %106, %102 : vector<8x8xf32>
    %cst_50 = arith.constant dense<0xFF800000> : vector<8xf32>
    %108 = vector.multi_reduction <maximumf>, %107, %cst_50 [1] : vector<8x8xf32> to vector<8xf32>
    %109 = vector.shape_cast %108 : vector<8xf32> to vector<8x1xf32>
    %110 = vector.broadcast %109 : vector<8x1xf32> to vector<8x8xf32>
    %111 = arith.subf %107, %110 : vector<8x8xf32>
    %112 = math.exp %111 : vector<8x8xf32>
    %cst_51 = arith.constant dense<0.000000e+00> : vector<8xf32>
    %113 = vector.multi_reduction <add>, %112, %cst_51 [1] : vector<8x8xf32> to vector<8xf32>
    %114 = vector.shape_cast %113 : vector<8xf32> to vector<8x1xf32>
    %115 = tpu.reciprocal %114 {approx = true} : vector<8x1xf32> -> vector<8x1xf32>
    %116 = vector.broadcast %115 : vector<8x1xf32> to vector<8x8xf32>
    %117 = arith.mulf %112, %116 : vector<8x8xf32>
    %118 = arith.truncf %117 : vector<8x8xf32> to vector<8x8xbf16>
    %cst_52 = arith.constant dense<0.000000e+00> : vector<8x128xf32>
    %119 = tpu.matmul %118, %105, %cst_52 {dimension_numbers = #tpu.dot_dimension_numbers<[1], [0], [0], [1], [0, 0, 1, 1], [], []>} : vector<8x8xbf16>, vector<8x128xbf16>, vector<8x128xf32> -> vector<8x128xf32>
    %120 = vector.extract_strided_slice %90 {offsets = [0, 128], sizes = [8, 128], strides = [1, 1]} : vector<8x256xbf16> to vector<8x128xbf16>
    %121 = vector.extract_strided_slice %97 {offsets = [0, 128], sizes = [8, 128], strides = [1, 1]} : vector<8x256xbf16> to vector<8x128xbf16>
    %122 = vector.extract_strided_slice %99 {offsets = [0, 128], sizes = [8, 128], strides = [1, 1]} : vector<8x256xbf16> to vector<8x128xbf16>
    %cst_53 = arith.constant dense<0.000000e+00> : vector<8x8xf32>
    %123 = tpu.matmul %120, %121, %cst_53 {dimension_numbers = #tpu.dot_dimension_numbers<[1], [1], [0], [0], [0, 0, 1, 0], [], []>} : vector<8x128xbf16>, vector<8x128xbf16>, vector<8x8xf32> -> vector<8x8xf32>
    %124 = arith.addf %123, %102 : vector<8x8xf32>
    %cst_54 = arith.constant dense<0xFF800000> : vector<8xf32>
    %125 = vector.multi_reduction <maximumf>, %124, %cst_54 [1] : vector<8x8xf32> to vector<8xf32>
    %126 = vector.shape_cast %125 : vector<8xf32> to vector<8x1xf32>
    %127 = vector.broadcast %126 : vector<8x1xf32> to vector<8x8xf32>
    %128 = arith.subf %124, %127 : vector<8x8xf32>
    %129 = math.exp %128 : vector<8x8xf32>
    %cst_55 = arith.constant dense<0.000000e+00> : vector<8xf32>
    %130 = vector.multi_reduction <add>, %129, %cst_55 [1] : vector<8x8xf32> to vector<8xf32>
    %131 = vector.shape_cast %130 : vector<8xf32> to vector<8x1xf32>
    %132 = tpu.reciprocal %131 {approx = true} : vector<8x1xf32> -> vector<8x1xf32>
    %133 = vector.broadcast %132 : vector<8x1xf32> to vector<8x8xf32>
    %134 = arith.mulf %129, %133 : vector<8x8xf32>
    %135 = arith.truncf %134 : vector<8x8xf32> to vector<8x8xbf16>
    %cst_56 = arith.constant dense<0.000000e+00> : vector<8x128xf32>
    %136 = tpu.matmul %135, %122, %cst_56 {dimension_numbers = #tpu.dot_dimension_numbers<[1], [0], [0], [1], [0, 0, 1, 1], [], []>} : vector<8x8xbf16>, vector<8x128xbf16>, vector<8x128xf32> -> vector<8x128xf32>
    %137 = tpu.concatenate %119, %136 in 1 : vector<8x128xf32>, vector<8x128xf32> -> vector<8x256xf32>
    %138 = arith.truncf %137 : vector<8x256xf32> to vector<8x256xbf16>
    %cst_57 = arith.constant dense<0.000000e+00> : vector<8x256xf32>
    %139 = tpu.matmul %138, %100, %cst_57 {dimension_numbers = #tpu.dot_dimension_numbers<[1], [0], [0], [1], [0, 0, 1, 1], [], []>} : vector<8x256xbf16>, vector<256x256xbf16>, vector<8x256xf32> -> vector<8x256xf32>
    %140 = vector.broadcast %101 : vector<1x256xf32> to vector<8x256xf32>
    %141 = arith.addf %139, %140 : vector<8x256xf32>
    %142 = arith.addf %80, %141 : vector<8x256xf32>
    %c0_58 = arith.constant 0 : index
    %c0_59 = arith.constant 0 : index
    %143 = vector.load %arg17[%c0_58, %c0_59] : memref<1x256xf32, #tpu.memory_space<vmem>>, vector<1x256xf32>
    %c0_60 = arith.constant 0 : index
    %c0_61 = arith.constant 0 : index
    %144 = vector.load %arg18[%c0_60, %c0_61] : memref<1x256xf32, #tpu.memory_space<vmem>>, vector<1x256xf32>
    %cst_62 = arith.constant dense<0.000000e+00> : vector<8xf32>
    %145 = vector.multi_reduction <add>, %142, %cst_62 [1] : vector<8x256xf32> to vector<8xf32>
    %146 = vector.shape_cast %145 : vector<8xf32> to vector<8x1xf32>
    %cst_63 = arith.constant 2.560000e+02 : f32
    %147 = vector.broadcast %cst_63 : f32 to vector<8x1xf32>
    %148 = arith.divf %146, %147 : vector<8x1xf32>
    %149 = vector.broadcast %148 : vector<8x1xf32> to vector<8x256xf32>
    %150 = arith.subf %142, %149 : vector<8x256xf32>
    %151 = arith.mulf %150, %150 : vector<8x256xf32>
    %cst_64 = arith.constant dense<0.000000e+00> : vector<8xf32>
    %152 = vector.multi_reduction <add>, %151, %cst_64 [1] : vector<8x256xf32> to vector<8xf32>
    %153 = vector.shape_cast %152 : vector<8xf32> to vector<8x1xf32>
    %cst_65 = arith.constant 2.560000e+02 : f32
    %154 = vector.broadcast %cst_65 : f32 to vector<8x1xf32>
    %155 = arith.divf %153, %154 : vector<8x1xf32>
    %156 = vector.broadcast %148 : vector<8x1xf32> to vector<8x256xf32>
    %157 = arith.subf %142, %156 : vector<8x256xf32>
    %cst_66 = arith.constant 9.99999974E-6 : f32
    %158 = vector.broadcast %cst_66 : f32 to vector<8x1xf32>
    %159 = arith.addf %155, %158 : vector<8x1xf32>
    %160 = math.rsqrt %159 : vector<8x1xf32>
    %161 = vector.broadcast %160 : vector<8x1xf32> to vector<8x256xf32>
    %162 = arith.mulf %157, %161 : vector<8x256xf32>
    %163 = vector.broadcast %143 : vector<1x256xf32> to vector<8x256xf32>
    %164 = arith.mulf %162, %163 : vector<8x256xf32>
    %165 = vector.broadcast %144 : vector<1x256xf32> to vector<8x256xf32>
    %166 = arith.addf %164, %165 : vector<8x256xf32>
    %167 = arith.truncf %166 : vector<8x256xf32> to vector<8x256xbf16>
    %c0_67 = arith.constant 0 : index
    %c0_68 = arith.constant 0 : index
    %168 = vector.load %arg21[%c0_67, %c0_68] : memref<256x1024xbf16, #tpu.memory_space<vmem>>, vector<256x1024xbf16>
    %cst_69 = arith.constant dense<0.000000e+00> : vector<8x1024xf32>
    %169 = tpu.matmul %167, %168, %cst_69 {dimension_numbers = #tpu.dot_dimension_numbers<[1], [0], [0], [1], [0, 0, 1, 1], [], []>} : vector<8x256xbf16>, vector<256x1024xbf16>, vector<8x1024xf32> -> vector<8x1024xf32>
    %c0_70 = arith.constant 0 : index
    %c0_71 = arith.constant 0 : index
    %170 = vector.load %arg22[%c0_70, %c0_71] : memref<1x1024xf32, #tpu.memory_space<vmem>>, vector<1x1024xf32>
    %171 = vector.broadcast %170 : vector<1x1024xf32> to vector<8x1024xf32>
    %172 = arith.addf %169, %171 : vector<8x1024xf32>
    %cst_72 = arith.constant 0.000000e+00 : f32
    %173 = vector.broadcast %cst_72 : f32 to vector<8x1024xf32>
    %174 = arith.maximumf %172, %173 : vector<8x1024xf32>
    %175 = arith.truncf %174 : vector<8x1024xf32> to vector<8x1024xbf16>
    %c0_73 = arith.constant 0 : index
    %c0_74 = arith.constant 0 : index
    %176 = vector.load %arg23[%c0_73, %c0_74] : memref<1024x256xbf16, #tpu.memory_space<vmem>>, vector<1024x256xbf16>
    %cst_75 = arith.constant dense<0.000000e+00> : vector<8x256xf32>
    %177 = tpu.matmul %175, %176, %cst_75 {dimension_numbers = #tpu.dot_dimension_numbers<[1], [0], [0], [1], [0, 0, 1, 1], [], []>} : vector<8x1024xbf16>, vector<1024x256xbf16>, vector<8x256xf32> -> vector<8x256xf32>
    %c0_76 = arith.constant 0 : index
    %c0_77 = arith.constant 0 : index
    %178 = vector.load %arg24[%c0_76, %c0_77] : memref<1x256xf32, #tpu.memory_space<vmem>>, vector<1x256xf32>
    %179 = vector.broadcast %178 : vector<1x256xf32> to vector<8x256xf32>
    %180 = arith.addf %177, %179 : vector<8x256xf32>
    %181 = arith.addf %166, %180 : vector<8x256xf32>
    %c0_78 = arith.constant 0 : index
    %c0_79 = arith.constant 0 : index
    %182 = vector.load %arg19[%c0_78, %c0_79] : memref<1x256xf32, #tpu.memory_space<vmem>>, vector<1x256xf32>
    %c0_80 = arith.constant 0 : index
    %c0_81 = arith.constant 0 : index
    %183 = vector.load %arg20[%c0_80, %c0_81] : memref<1x256xf32, #tpu.memory_space<vmem>>, vector<1x256xf32>
    %cst_82 = arith.constant dense<0.000000e+00> : vector<8xf32>
    %184 = vector.multi_reduction <add>, %181, %cst_82 [1] : vector<8x256xf32> to vector<8xf32>
    %185 = vector.shape_cast %184 : vector<8xf32> to vector<8x1xf32>
    %cst_83 = arith.constant 2.560000e+02 : f32
    %186 = vector.broadcast %cst_83 : f32 to vector<8x1xf32>
    %187 = arith.divf %185, %186 : vector<8x1xf32>
    %188 = vector.broadcast %187 : vector<8x1xf32> to vector<8x256xf32>
    %189 = arith.subf %181, %188 : vector<8x256xf32>
    %190 = arith.mulf %189, %189 : vector<8x256xf32>
    %cst_84 = arith.constant dense<0.000000e+00> : vector<8xf32>
    %191 = vector.multi_reduction <add>, %190, %cst_84 [1] : vector<8x256xf32> to vector<8xf32>
    %192 = vector.shape_cast %191 : vector<8xf32> to vector<8x1xf32>
    %cst_85 = arith.constant 2.560000e+02 : f32
    %193 = vector.broadcast %cst_85 : f32 to vector<8x1xf32>
    %194 = arith.divf %192, %193 : vector<8x1xf32>
    %195 = vector.broadcast %187 : vector<8x1xf32> to vector<8x256xf32>
    %196 = arith.subf %181, %195 : vector<8x256xf32>
    %cst_86 = arith.constant 9.99999974E-6 : f32
    %197 = vector.broadcast %cst_86 : f32 to vector<8x1xf32>
    %198 = arith.addf %194, %197 : vector<8x1xf32>
    %199 = math.rsqrt %198 : vector<8x1xf32>
    %200 = vector.broadcast %199 : vector<8x1xf32> to vector<8x256xf32>
    %201 = arith.mulf %196, %200 : vector<8x256xf32>
    %202 = vector.broadcast %182 : vector<1x256xf32> to vector<8x256xf32>
    %203 = arith.mulf %201, %202 : vector<8x256xf32>
    %204 = vector.broadcast %183 : vector<1x256xf32> to vector<8x256xf32>
    %205 = arith.addf %203, %204 : vector<8x256xf32>
    %206 = vector.shape_cast %205 : vector<8x256xf32> to vector<1x8x256xf32>
    %c0_87 = arith.constant 0 : index
    %c0_88 = arith.constant 0 : index
    %c0_89 = arith.constant 0 : index
    %207 = vector.load %arg25[%c0_87, %c0_88, %c0_89] : memref<1x8x256xf32, #tpu.memory_space<vmem>>, vector<1x8x256xf32>
    tpu.vector_store %arg25[%c0_87, %c0_88, %c0_89], %206 {strides = array<i32>} : memref<1x8x256xf32, #tpu.memory_space<vmem>>, vector<1x8x256xf32>,
    return
  }
  func.func @transform_0(%arg0: i32) -> (i32, i32, i32) {
    %c0_i32 = arith.constant 0 : i32
    %c0_i32_0 = arith.constant 0 : i32
    %c0_i32_1 = arith.constant 0 : i32
    return %arg0, %c0_i32, %c0_i32_0 : i32, i32, i32
  }
  func.func @transform_1(%arg0: i32) -> (i32, i32, i32) {
    %c0_i32 = arith.constant 0 : i32
    %c0_i32_0 = arith.constant 0 : i32
    %c0_i32_1 = arith.constant 0 : i32
    return %arg0, %c0_i32, %c0_i32_0 : i32, i32, i32
  }
  func.func @transform_2(%arg0: i32) -> (i32, i32) {
    %c0_i32 = arith.constant 0 : i32
    %c0_i32_0 = arith.constant 0 : i32
    %c0_i32_1 = arith.constant 0 : i32
    return %c0_i32, %c0_i32_0 : i32, i32
  }
  func.func @transform_3(%arg0: i32) -> (i32, i32) {
    %c0_i32 = arith.constant 0 : i32
    %c0_i32_0 = arith.constant 0 : i32
    %c0_i32_1 = arith.constant 0 : i32
    return %c0_i32, %c0_i32_0 : i32, i32
  }
  func.func @transform_4(%arg0: i32) -> (i32, i32) {
    %c0_i32 = arith.constant 0 : i32
    %c0_i32_0 = arith.constant 0 : i32
    %c0_i32_1 = arith.constant 0 : i32
    return %c0_i32, %c0_i32_0 : i32, i32
  }
  func.func @transform_5(%arg0: i32) -> (i32, i32) {
    %c0_i32 = arith.constant 0 : i32
    %c0_i32_0 = arith.constant 0 : i32
    %c0_i32_1 = arith.constant 0 : i32
    return %c0_i32, %c0_i32_0 : i32, i32
  }
  func.func @transform_6(%arg0: i32) -> (i32, i32) {
    %c0_i32 = arith.constant 0 : i32
    %c0_i32_0 = arith.constant 0 : i32
    %c0_i32_1 = arith.constant 0 : i32
    return %c0_i32, %c0_i32_0 : i32, i32
  }
  func.func @transform_7(%arg0: i32) -> (i32, i32) {
    %c0_i32 = arith.constant 0 : i32
    %c0_i32_0 = arith.constant 0 : i32
    %c0_i32_1 = arith.constant 0 : i32
    return %c0_i32, %c0_i32_0 : i32, i32
  }
  func.func @transform_8(%arg0: i32) -> (i32, i32) {
    %c0_i32 = arith.constant 0 : i32
    %c0_i32_0 = arith.constant 0 : i32
    %c0_i32_1 = arith.constant 0 : i32
    return %c0_i32, %c0_i32_0 : i32, i32
  }
  func.func @transform_9(%arg0: i32) -> (i32, i32) {
    %c0_i32 = arith.constant 0 : i32
    %c0_i32_0 = arith.constant 0 : i32
    %c0_i32_1 = arith.constant 0 : i32
    return %c0_i32, %c0_i32_0 : i32, i32
  }
  func.func @transform_10(%arg0: i32) -> (i32, i32) {
    %c0_i32 = arith.constant 0 : i32
    %c0_i32_0 = arith.constant 0 : i32
    %c0_i32_1 = arith.constant 0 : i32
    return %c0_i32, %c0_i32_0 : i32, i32
  }
  func.func @transform_11(%arg0: i32) -> (i32, i32) {
    %c0_i32 = arith.constant 0 : i32
    %c0_i32_0 = arith.constant 0 : i32
    %c0_i32_1 = arith.constant 0 : i32
    return %c0_i32, %c0_i32_0 : i32, i32
  }
  func.func @transform_12(%arg0: i32) -> (i32, i32) {
    %c0_i32 = arith.constant 0 : i32
    %c0_i32_0 = arith.constant 0 : i32
    %c0_i32_1 = arith.constant 0 : i32
    return %c0_i32, %c0_i32_0 : i32, i32
  }
  func.func @transform_13(%arg0: i32) -> (i32, i32) {
    %c0_i32 = arith.constant 0 : i32
    %c0_i32_0 = arith.constant 0 : i32
    %c0_i32_1 = arith.constant 0 : i32
    return %c0_i32, %c0_i32_0 : i32, i32
  }
  func.func @transform_14(%arg0: i32) -> (i32, i32) {
    %c0_i32 = arith.constant 0 : i32
    %c0_i32_0 = arith.constant 0 : i32
    %c0_i32_1 = arith.constant 0 : i32
    return %c0_i32, %c0_i32_0 : i32, i32
  }
  func.func @transform_15(%arg0: i32) -> (i32, i32) {
    %c0_i32 = arith.constant 0 : i32
    %c0_i32_0 = arith.constant 0 : i32
    %c0_i32_1 = arith.constant 0 : i32
    return %c0_i32, %c0_i32_0 : i32, i32
  }
  func.func @transform_16(%arg0: i32) -> (i32, i32) {
    %c0_i32 = arith.constant 0 : i32
    %c0_i32_0 = arith.constant 0 : i32
    %c0_i32_1 = arith.constant 0 : i32
    return %c0_i32, %c0_i32_0 : i32, i32
  }
  func.func @transform_17(%arg0: i32) -> (i32, i32) {
    %c0_i32 = arith.constant 0 : i32
    %c0_i32_0 = arith.constant 0 : i32
    %c0_i32_1 = arith.constant 0 : i32
    return %c0_i32, %c0_i32_0 : i32, i32
  }
  func.func @transform_18(%arg0: i32) -> (i32, i32) {
    %c0_i32 = arith.constant 0 : i32
    %c0_i32_0 = arith.constant 0 : i32
    %c0_i32_1 = arith.constant 0 : i32
    return %c0_i32, %c0_i32_0 : i32, i32
  }
  func.func @transform_19(%arg0: i32) -> (i32, i32) {
    %c0_i32 = arith.constant 0 : i32
    %c0_i32_0 = arith.constant 0 : i32
    %c0_i32_1 = arith.constant 0 : i32
    return %c0_i32, %c0_i32_0 : i32, i32
  }
  func.func @transform_20(%arg0: i32) -> (i32, i32) {
    %c0_i32 = arith.constant 0 : i32
    %c0_i32_0 = arith.constant 0 : i32
    %c0_i32_1 = arith.constant 0 : i32
    return %c0_i32, %c0_i32_0 : i32, i32
  }
  func.func @transform_21(%arg0: i32) -> (i32, i32) {
    %c0_i32 = arith.constant 0 : i32
    %c0_i32_0 = arith.constant 0 : i32
    %c0_i32_1 = arith.constant 0 : i32
    return %c0_i32, %c0_i32_0 : i32, i32
  }
  func.func @transform_22(%arg0: i32) -> (i32, i32) {
    %c0_i32 = arith.constant 0 : i32
    %c0_i32_0 = arith.constant 0 : i32
    %c0_i32_1 = arith.constant 0 : i32
    return %c0_i32, %c0_i32_0 : i32, i32
  }
  func.func @transform_23(%arg0: i32) -> (i32, i32) {
    %c0_i32 = arith.constant 0 : i32
    %c0_i32_0 = arith.constant 0 : i32
    %c0_i32_1 = arith.constant 0 : i32
    return %c0_i32, %c0_i32_0 : i32, i32
  }
  func.func @transform_24(%arg0: i32) -> (i32, i32, i32) {
    %c0_i32 = arith.constant 0 : i32
    %c0_i32_0 = arith.constant 0 : i32
    %c0_i32_1 = arith.constant 0 : i32
    return %arg0, %c0_i32, %c0_i32_0 : i32, i32, i32
  }
}

</mosaic_0001>

<bundles_post_ra>
// kernel: tpu_custom_call.1
= control target key start
LH: loop header
LB: loop body
LE: loop exit
PB: predicated region body
PF: predicated region fallthrough
CT: control target
= control target key end

     0   :  { %s8167_s0 = inlined_call_operand.hbm [shape: f32[2,8,256], index: 0, kind: input, shape index: {}]   ;;  %s8168_s1 = inlined_call_operand.hbm [shape: f32[2,8,256], index: 1, kind: input, shape index: {}]   ;;  %s8169_s2 = inlined_call_operand.hbm [shape: f32[8,8], index: 2, kind: input, shape index: {}]   ;;  %s8170_s3 = inlined_call_operand.vmem [shape: f32[8,8], index: 3, kind: input, shape index: {}]   ;;  %s8171_s4 = inlined_call_operand.hbm [shape: bf16[256,768], index: 4, kind: input, shape index: {}]   ;;  %s8172_s5 = inlined_call_operand.hbm [shape: f32[1,768], index: 5, kind: input, shape index: {}]   ;;  %s8173_s6 = inlined_call_operand.hbm [shape: bf16[256,256], index: 6, kind: input, shape index: {}]   ;;  %s8174_s7 = inlined_call_operand.vmem [shape: f32[1,256], index: 7, kind: input, shape index: {}]   ;;  %s8175_s8 = inlined_call_operand.hbm [shape: bf16[256,256], index: 8, kind: input, shape index: {}]   ;;  %s8176_s9 = inlined_call_operand.vmem [shape: f32[1,256], index: 9, kind: input, shape index: {}]   ;;  %s8177_s10 = inlined_call_operand.hbm [shape: bf16[256,512], index: 10, kind: input, shape index: {}]   ;;  %s8178_s11 = inlined_call_operand.vmem [shape: f32[1,512], index: 11, kind: input, shape index: {}]   ;;  %s8179_s12 = inlined_call_operand.hbm [shape: bf16[256,256], index: 12, kind: input, shape index: {}]   ;;  %s8180_s13 = inlined_call_operand.vmem [shape: f32[1,256], index: 13, kind: input, shape index: {}]   ;;  %s8181_s14 = inlined_call_operand.vmem [shape: f32[1,256], index: 14, kind: input, shape index: {}]   ;;  %s8182_s15 = inlined_call_operand.vmem [shape: f32[1,256], index: 15, kind: input, shape index: {}]   ;;  %s8183_s16 = inlined_call_operand.vmem [shape: f32[1,256], index: 16, kind: input, shape index: {}]   ;;  %s8184_s17 = inlined_call_operand.vmem [shape: f32[1,256], index: 17, kind: input, shape index: {}]   ;;  %s8185_s18 = inlined_call_operand.vmem [shape: f32[1,256], index: 18, kind: input, shape index: {}]   ;;  %s8186_s19 = inlined_call_operand.vmem [shape: f32[1,256], index: 19, kind: input, shape index: {}]   ;;  %s8187_s20 = inlined_call_operand.hbm [shape: bf16[256,1024], index: 20, kind: input, shape index: {}]   ;;  %s8188_s21 = inlined_call_operand.vmem [shape: f32[1,1024], index: 21, kind: input, shape index: {}]   ;;  %s8189_s22 = inlined_call_operand.hbm [shape: bf16[1024,256], index: 22, kind: input, shape index: {}]   ;;  %s8190_s23 = inlined_call_operand.vmem [shape: f32[1,256], index: 23, kind: input, shape index: {}]   ;;  %s8191_s24 = inlined_call_operand.hbm [shape: f32[2,8,256], index: 24, kind: output, shape index: {}]  }
   0x1   :  { %8213 = sst [smem:[#allocation30_spill]] %s8167_s0 }
   0x2   :  { %8214 = sst [smem:[#allocation31_spill]] %s8168_s1 }
   0x3   :  { %8215 = sst [smem:[#allocation32_spill]] %s8169_s2 }
   0x4   :  { %8216 = sst [smem:[#allocation33_spill]] %s8170_s3 }
   0x5   :  { %8217 = sst [smem:[#allocation34_spill]] %s8171_s4 }
   0x6   :  { %8218 = sst [smem:[#allocation35_spill]] %s8172_s5 }
   0x7   :  { %8219 = sst [smem:[#allocation36_spill]] %s8173_s6 }
   0x8   :  { %8220 = sst [smem:[#allocation37_spill]] %s8174_s7 }
   0x9   :  { %8221 = sst [smem:[#allocation38_spill]] %s8175_s8 }
   0xa   :  { %8222 = sst [smem:[#allocation39_spill]] %s8176_s9 }
   0xb   :  { %8223 = sst [smem:[#allocation40_spill]] %s8177_s10 }
   0xc   :  { %8224 = sst [smem:[#allocation41_spill]] %s8179_s12 }
   0xd   :  { %8225 = sst [smem:[#allocation42_spill]] %s8180_s13 }
   0xe   :  { %8226 = sst [smem:[#allocation43_spill]] %s8183_s16 }
   0xf   :  { %8227 = sst [smem:[#allocation44_spill]] %s8184_s17 }
  0x10   :  { %8228 = sst [smem:[#allocation45_spill]] %s8185_s18 }
  0x11   :  { %8229 = sst [smem:[#allocation46_spill]] %s8186_s19 }
  0x12   :  { %8230 = sst [smem:[#allocation47_spill]] %s8187_s20 }
  0x13   :  { %8231 = sst [smem:[#allocation48_spill]] %s8188_s21 }
  0x14   :  { %8232 = sst [smem:[#allocation49_spill]] %s8189_s22 }
  0x15   :  { %8233 = sst [smem:[#allocation50_spill]] %s8190_s23 }
  0x16   :  { %8234 = sst [smem:[#allocation51_spill]] %s8191_s24 }
  0x17   :  { %29 = vsyncpa [#allocation3], 0 }
  0x18   :  { %31 = vsyncpa [#allocation3 + $0x1], 0 }
  0x19   :  { %32 = vsyncpa [#allocation6], 0 }
  0x1a   :  { %34 = vsyncpa [#allocation6 + $0x1], 0 }
  0x1b   :  { %35 = vsyncpa [#allocation9], 0 }
  0x1c   :  { %36 = vsyncpa [#allocation12], 0 }
  0x1d   :  { %37 = vsyncpa [#allocation15], 0 }
  0x1e   :  { %38 = vsyncpa [#allocation18], 0 }
  0x1f   :  { %39 = vsyncpa [#allocation4], 0 }
  0x20   :  { %41 = vsyncpa [#allocation4 + $0x1], 0  ;;  %s7487_s5 = smov 0   ;;  %s7489_s26 = smov 0  }
  0x21   :  { %s7491_s27 = smov 0   ;;  %s7493_s28 = smov 0  }
  0x22 LB: > { %s7340_s6 = smov [#allocation7]   ;;  %s7508_s29 = sadd.s32 4294967295, %s7338_s28   ;;  %s7338_s28 = sphi %s7493_s28, %s8287_s28   ;;  %s7334_s27 = sphi %s7491_s27, %s8286_s27   ;;  %s7330_s26 = sphi %s7489_s26, %s8285_s26   ;;  %s7326_s5 = sphi %s7487_s5, %s8284_s5  }
  0x23   : > { %s605_s2 = sshll.u32 %s7340_s6, 4  ;;  %p5566_p0 = scmp.ge.s32.totalorder %s7338_s28, 1  ;;  %s606_s2 = int_to_ptr.vmem [resolvable:$true] %s605_s2 }
  0x24   : > { %p8200_p1 = scmp.eq.s32.totalorder %s7508_s29, 0  ;;  %p592_p2 = scmp.lt.s32.totalorder %s7338_s28, 3 }
  0x25   : > { %s7341_s7 = smov [#allocation8]   ;;  %s7342_s25 = smov [#allocation11]  }
  0x26   : > { %p7513_p3 = pnand %p5566_p0, %p592_p2  ;;  %s618_s30 = sshll.u32 %s7341_s7, 4  ;;  %s7520_s30 = int_to_ptr.vmem [resolvable:$true] %s618_s30 }
  0x27   : > { %s642_s8 = sshll.u32 %s7342_s25, 4  ;;  %s8237_s6 = sld [smem:[#allocation32_spill]]  ;;  %s7528_s8 = int_to_ptr.vmem [resolvable:$true] %s642_s8 }
  0x28   : > { %s8235_s0 = scalar_select %p7513_p3, 1, 0 }
  0x29   : > { %p6226_p5 = pneg %p7513_p3 }
  0x2b   : > { %p7524_p6 = pnand %p6226_p5, %p8200_p1 }
  0x2d   : > { %s6936_s24 = scalar_lea.hbm %s8237_s6, 128  ;;  %p7538_p8 = pneg %p7524_p6 }
  0x2e   : > { %p6937_p7 = scmp.ne.s32.totalorder %s8237_s6, %s6936_s24  ;;  %p6943_p11 = scmp.lt.u32.totalorder %s6936_s24, %s8237_s6 }
  0x30   : > { %p6939_p9 = pnand %p7538_p8, %p6937_p7 }
  0x32   : > { %p6940_p10 = pneg %p6939_p9 }
  0x34   : > { %p6945_p12 = pnand %p6943_p11, %p6940_p10 }
  0x36   : > { %6948 = shalt.err (!%p6945_p12)
}
  0x37   : > { %s6949_s4 = scalar_lea.vmem %s606_s2, 128  ;;  %p6957_p5 = scmp.lt.s32.totalorder %s606_s2, %s606_s2 }
  0x38   : > { %p6950_p13 = scmp.ne.s32.totalorder %s606_s2, %s6949_s4  ;;  %p6958_p4 = scmp.lt.s32.totalorder %s6949_s4, %s6949_s4 }
  0x3a   : > { %p6952_p0 = pnand %p6950_p13, %p7538_p8  ;;  %p6959_p1 = por %p6958_p4, %p6957_p5 }
  0x3c   : > { %p6953_p2 = pneg %p6952_p0 }
  0x3e   : > { %p6960_p3 = pnand %p6959_p1, %p6953_p2 }
  0x40   : > { %6963 = shalt.err (!%p6960_p3)
}
  0x41   : > { %6229 = dma.hbm_to_vmem [thread:$0]  (!%p7524_p6), %s8237_s6, 128, %s606_s2, [#allocation6]  }
  0x42   : > { %s8239_s1 = sld [smem:[#allocation34_spill]] }
  0x48   : > { %s6964_s25 = scalar_lea.hbm %s8239_s1, 12288 }
  0x49   : > { %p6965_p7 = scmp.ne.s32.totalorder %s8239_s1, %s6964_s25  ;;  %p6971_p1 = scmp.lt.u32.totalorder %s6964_s25, %s8239_s1 }
  0x4b   : > { %p6967_p9 = pnand %p6965_p7, %p7538_p8 }
  0x4d   : > { %p6968_p4 = pneg %p6967_p9 }
  0x4f   : > { %p6973_p3 = pnand %p6971_p1, %p6968_p4 }
  0x51   : > { %6976 = shalt.err (!%p6973_p3)
}
  0x52   : > { %s6977_s2 = scalar_lea.vmem %s7520_s30, 12288  ;;  %p6985_p13 = scmp.lt.s32.totalorder %s7520_s30, %s7520_s30 }
  0x53   : > { %p6978_p10 = scmp.ne.s32.totalorder %s7520_s30, %s6977_s2  ;;  %p6986_p0 = scmp.lt.s32.totalorder %s6977_s2, %s6977_s2 }
  0x55   : > { %p6980_p11 = pnand %p6978_p10, %p7538_p8  ;;  %p6987_p2 = por %p6986_p0, %p6985_p13 }
  0x57   : > { %p6981_p12 = pneg %p6980_p11 }
  0x59   : > { %p6988_p5 = pnand %p6987_p2, %p6981_p12 }
  0x5b   : > { %6991 = shalt.err (!%p6988_p5)
}
  0x5c   : > { %s7343_s17 = smov 384   ;;  %s7344_s16 = smov 24  }
  0x5d   : > { %6232 = dma.hbm_to_vmem [thread:$0]  (!%p7524_p6), %s8239_s1, 12288, %s7520_s30, [#allocation9], %s7343_s17, %s7343_s17, %s7344_s16  }
  0x5e   : > { %s8240_s24 = sld [smem:[#allocation36_spill]] }
  0x64   : > { %s6992_s25 = scalar_lea.hbm %s8240_s24, 4096 }
  0x65   : > { %p6993_p7 = scmp.ne.s32.totalorder %s8240_s24, %s6992_s25  ;;  %p6999_p1 = scmp.lt.u32.totalorder %s6992_s25, %s8240_s24 }
  0x67   : > { %p6995_p9 = pnand %p6993_p7, %p7538_p8 }
  0x69   : > { %p6996_p4 = pneg %p6995_p9 }
  0x6b   : > { %p7001_p3 = pnand %p6999_p1, %p6996_p4 }
  0x6d   : > { %7004 = shalt.err (!%p7001_p3)
}
  0x6e   : > { %s7005_s30 = scalar_lea.vmem %s7528_s8, 4096  ;;  %p7013_p13 = scmp.lt.s32.totalorder %s7528_s8, %s7528_s8 }
  0x6f   : > { %p7006_p10 = scmp.ne.s32.totalorder %s7528_s8, %s7005_s30  ;;  %p7014_p0 = scmp.lt.s32.totalorder %s7005_s30, %s7005_s30 }
  0x71   : > { %p7008_p11 = pnand %p7006_p10, %p7538_p8  ;;  %p7015_p2 = por %p7014_p0, %p7013_p13 }
  0x73   : > { %p7009_p12 = pneg %p7008_p11 }
  0x75   : > { %p7016_p5 = pnand %p7015_p2, %p7009_p12 }
  0x77   : > { %7019 = shalt.err (!%p7016_p5)
}
  0x78   : > { %s8204_s6 = smov 128   ;;  %s8206_s13 = smov 8  }
  0x79   : > { %6238 = dma.hbm_to_vmem [thread:$0]  (!%p7524_p6), %s8240_s24, 4096, %s7528_s8, [#allocation12], %s8204_s6, %s8204_s6, %s8206_s13  }
  0x7a   : > { %s7347_s21 = smov [#allocation14]   ;;  %s8241_s10 = sld [smem:[#allocation40_spill]] }
  0x7b   : > { %s674_s18 = sshll.u32 %s7347_s21, 4  ;;  %s675_s18 = int_to_ptr.vmem [resolvable:$true] %s674_s18 }
  0x80   : > { %s7020_s25 = scalar_lea.hbm %s8241_s10, 8192 }
  0x81   : > { %p7021_p7 = scmp.ne.s32.totalorder %s8241_s10, %s7020_s25  ;;  %p7027_p1 = scmp.lt.u32.totalorder %s7020_s25, %s8241_s10 }
  0x83   : > { %p7023_p9 = pnand %p7021_p7, %p7538_p8 }
  0x85   : > { %p7024_p4 = pneg %p7023_p9 }
  0x87   : > { %p7029_p3 = pnand %p7027_p1, %p7024_p4 }
  0x89   : > { %7032 = shalt.err (!%p7029_p3)
}
  0x8a   : > { %s7033_s8 = scalar_lea.vmem %s675_s18, 8192  ;;  %p7041_p13 = scmp.lt.s32.totalorder %s675_s18, %s675_s18 }
  0x8b   : > { %p7034_p10 = scmp.ne.s32.totalorder %s675_s18, %s7033_s8  ;;  %p7042_p0 = scmp.lt.s32.totalorder %s7033_s8, %s7033_s8 }
  0x8d   : > { %p7036_p11 = pnand %p7034_p10, %p7538_p8  ;;  %p7043_p2 = por %p7042_p0, %p7041_p13 }
  0x8f   : > { %p7037_p12 = pneg %p7036_p11 }
  0x91   : > { %p7044_p5 = pnand %p7043_p2, %p7037_p12 }
  0x93   : > { %7047 = shalt.err (!%p7044_p5)
}
  0x94   : > { %s7348_s17 = smov 256   ;;  %s7349_s16 = smov 16  }
  0x95   : > { %6244 = dma.hbm_to_vmem [thread:$0]  (!%p7524_p6), %s8241_s10, 8192, %s675_s18, [#allocation15], %s7348_s17, %s7348_s17, %s7349_s16  }
  0x96   : > { %s7350_s19 = smov [#allocation17]   ;;  %s8242_s20 = sld [smem:[#allocation47_spill]] }
  0x97   : > { %s724_s23 = sshll.u32 %s7350_s19, 4  ;;  %s725_s23 = int_to_ptr.vmem [resolvable:$true] %s724_s23 }
  0x9c   : > { %s7048_s2 = scalar_lea.hbm %s8242_s20, 16384 }
  0x9d   : > { %p7049_p7 = scmp.ne.s32.totalorder %s8242_s20, %s7048_s2  ;;  %p7055_p1 = scmp.lt.u32.totalorder %s7048_s2, %s8242_s20 }
  0x9f   : > { %p7051_p9 = pnand %p7049_p7, %p7538_p8 }
  0xa1   : > { %p7052_p4 = pneg %p7051_p9 }
  0xa3   : > { %p7057_p3 = pnand %p7055_p1, %p7052_p4 }
  0xa5   : > { %7060 = shalt.err (!%p7057_p3)
}
  0xa6   : > { %s7061_s18 = scalar_lea.vmem %s725_s23, 16384  ;;  %p7069_p13 = scmp.lt.s32.totalorder %s725_s23, %s725_s23 }
  0xa7   : > { %p7062_p10 = scmp.ne.s32.totalorder %s725_s23, %s7061_s18  ;;  %p7070_p0 = scmp.lt.s32.totalorder %s7061_s18, %s7061_s18 }
  0xa9   : > { %p7064_p11 = pnand %p7062_p10, %p7538_p8  ;;  %p7071_p2 = por %p7070_p0, %p7069_p13 }
  0xab   : > { %p7065_p12 = pneg %p7064_p11 }
  0xad   : > { %p7072_p5 = pnand %p7071_p2, %p7065_p12 }
  0xaf   : > { %7075 = shalt.err (!%p7072_p5)
}
  0xb0   : > { %s7351_s17 = smov 512   ;;  %s7352_s16 = smov 32  }
  0xb1   : > { %6250 = dma.hbm_to_vmem [thread:$0]  (!%p7524_p6), %s8242_s20, 16384, %s725_s23, [#allocation18], %s7351_s17, %s7351_s17, %s7352_s16  }
  0xb2   : > { %s7353_s1 = smov [#allocation10]   ;;  %s7354_s19 = smov [#allocation13]  }
  0xb3   : > { %s632_s21 = sshll.u32 %s7353_s1, 4  ;;  %s658_s25 = sshll.u32 %s7354_s19, 4  ;;  %s633_s21 = int_to_ptr.vmem [resolvable:$true] %s632_s21  ;;  %s659_s25 = int_to_ptr.vmem [resolvable:$true] %s658_s25 }
  0xb4   : > { %s8243_s30 = sld [smem:[#allocation35_spill]] }
  0xba   : > { %s7076_s8 = scalar_lea.hbm %s8243_s30, 96 }
  0xbb   : > { %p7077_p7 = scmp.ne.s32.totalorder %s8243_s30, %s7076_s8  ;;  %p7083_p1 = scmp.lt.u32.totalorder %s7076_s8, %s8243_s30 }
  0xbd   : > { %p7079_p9 = pnand %p7077_p7, %p7538_p8 }
  0xbf   : > { %p7080_p4 = pneg %p7079_p9 }
  0xc1   : > { %p7085_p3 = pnand %p7083_p1, %p7080_p4 }
  0xc3   : > { %7088 = shalt.err (!%p7085_p3)
}
  0xc4   : > { %s7089_s23 = scalar_lea.vmem %s633_s21, 96  ;;  %p7097_p13 = scmp.lt.s32.totalorder %s633_s21, %s633_s21 }
  0xc5   : > { %p7090_p10 = scmp.ne.s32.totalorder %s633_s21, %s7089_s23  ;;  %p7098_p0 = scmp.lt.s32.totalorder %s7089_s23, %s7089_s23 }
  0xc7   : > { %p7092_p11 = pnand %p7090_p10, %p7538_p8  ;;  %p7099_p2 = por %p7098_p0, %p7097_p13 }
  0xc9   : > { %p7093_p12 = pneg %p7092_p11 }
  0xcb   : > { %p7100_p5 = pnand %p7099_p2, %p7093_p12 }
  0xcd   : > { %7103 = shalt.err (!%p7100_p5)
}
  0xce   : > { %6235 = dma.hbm_to_vmem [thread:$0]  (!%p7524_p6), %s8243_s30, 96, %s633_s21, [#allocation9]  }
  0xcf   : > { %s8244_s16 = sld [smem:[#allocation38_spill]] }
  0xd5   : > { %s7104_s6 = scalar_lea.hbm %s8244_s16, 4096 }
  0xd6   : > { %p7105_p7 = scmp.ne.s32.totalorder %s8244_s16, %s7104_s6  ;;  %p7111_p1 = scmp.lt.u32.totalorder %s7104_s6, %s8244_s16 }
  0xd8   : > { %p7107_p9 = pnand %p7105_p7, %p7538_p8 }
  0xda   : > { %p7108_p4 = pneg %p7107_p9 }
  0xdc   : > { %p7113_p3 = pnand %p7111_p1, %p7108_p4 }
  0xde   : > { %7116 = shalt.err (!%p7113_p3)
}
  0xdf   : > { %s7117_s2 = scalar_lea.vmem %s659_s25, 4096  ;;  %p7125_p13 = scmp.lt.s32.totalorder %s659_s25, %s659_s25 }
  0xe0   : > { %p7118_p10 = scmp.ne.s32.totalorder %s659_s25, %s7117_s2  ;;  %p7126_p0 = scmp.lt.s32.totalorder %s7117_s2, %s7117_s2 }
  0xe2   : > { %p7120_p11 = pnand %p7118_p10, %p7538_p8  ;;  %p7127_p2 = por %p7126_p0, %p7125_p13 }
  0xe4   : > { %p7121_p12 = pneg %p7120_p11 }
  0xe6   : > { %p7128_p5 = pnand %p7127_p2, %p7121_p12 }
  0xe8   : > { %7131 = shalt.err (!%p7128_p5)
}
  0xe9   : > { %s8245_s21 = smov 8   ;;  %s8246_s8 = smov 128  }
  0xea   : > { %6241 = dma.hbm_to_vmem [thread:$0]  (!%p7524_p6), %s8244_s16, 4096, %s659_s25, [#allocation12], %s8246_s8, %s8246_s8, %s8245_s21  }
  0xeb   : > { %s7355_s10 = smov [#allocation16]   ;;  %s7356_s9 = smov [#allocation19]  }
  0xec   : > { %s690_s17 = sshll.u32 %s7355_s10, 4  ;;  %s740_s24 = sshll.u32 %s7356_s9, 4  ;;  %s691_s17 = int_to_ptr.vmem [resolvable:$true] %s690_s17  ;;  %s741_s24 = int_to_ptr.vmem [resolvable:$true] %s740_s24 }
  0xed   : > { %s8247_s12 = sld [smem:[#allocation41_spill]] }
  0xf3   : > { %s7132_s1 = scalar_lea.hbm %s8247_s12, 4096 }
  0xf4   : > { %p7133_p7 = scmp.ne.s32.totalorder %s8247_s12, %s7132_s1  ;;  %p7139_p1 = scmp.lt.u32.totalorder %s7132_s1, %s8247_s12 }
  0xf6   : > { %p7135_p9 = pnand %p7133_p7, %p7538_p8 }
  0xf8   : > { %p7136_p4 = pneg %p7135_p9 }
  0xfa   : > { %p7141_p3 = pnand %p7139_p1, %p7136_p4 }
  0xfc   : > { %7144 = shalt.err (!%p7141_p3)
}
  0xfd   : > { %s7145_s25 = scalar_lea.vmem %s691_s17, 4096  ;;  %p7153_p13 = scmp.lt.s32.totalorder %s691_s17, %s691_s17 }
  0xfe   : > { %p7146_p10 = scmp.ne.s32.totalorder %s691_s17, %s7145_s25  ;;  %p7154_p0 = scmp.lt.s32.totalorder %s7145_s25, %s7145_s25 }
 0x100   : > { %p7148_p11 = pnand %p7146_p10, %p7538_p8  ;;  %p7155_p2 = por %p7154_p0, %p7153_p13 }
 0x102   : > { %p7149_p12 = pneg %p7148_p11 }
 0x104   : > { %p7156_p5 = pnand %p7155_p2, %p7149_p12 }
 0x106   : > { %7159 = shalt.err (!%p7156_p5)
}
 0x107   : > { %6247 = dma.hbm_to_vmem [thread:$0]  (!%p7524_p6), %s8247_s12, 4096, %s691_s17, [#allocation15], %s8246_s8, %s8246_s8, %s8245_s21  }
 0x108   : > { %s8248_s22 = sld [smem:[#allocation49_spill]] }
 0x10e   : > { %s7160_s13 = scalar_lea.hbm %s8248_s22, 16384 }
 0x10f   : > { %p7161_p7 = scmp.ne.s32.totalorder %s8248_s22, %s7160_s13  ;;  %p7167_p1 = scmp.lt.u32.totalorder %s7160_s13, %s8248_s22 }
 0x111   : > { %p7163_p9 = pnand %p7161_p7, %p7538_p8 }
 0x113   : > { %p7164_p4 = pneg %p7163_p9 }
 0x115   : > { %p7169_p3 = pnand %p7167_p1, %p7164_p4 }
 0x117   : > { %7172 = shalt.err (!%p7169_p3)
}
 0x118   : > { %s7173_s18 = scalar_lea.vmem %s741_s24, 16384  ;;  %p7181_p13 = scmp.lt.s32.totalorder %s741_s24, %s741_s24 }
 0x119   : > { %p7174_p10 = scmp.ne.s32.totalorder %s741_s24, %s7173_s18  ;;  %p7182_p0 = scmp.lt.s32.totalorder %s7173_s18, %s7173_s18 }
 0x11b   : > { %p7176_p11 = pnand %p7174_p10, %p7538_p8  ;;  %p7183_p2 = por %p7182_p0, %p7181_p13 }
 0x11d   : > { %p7177_p12 = pneg %p7176_p11 }
 0x11f   : > { %p7184_p5 = pnand %p7183_p2, %p7177_p12 }
 0x121   : > { %7187 = shalt.err (!%p7184_p5)
}
 0x122   : > { %6253 = dma.hbm_to_vmem [thread:$0]  (!%p7524_p6), %s8248_s22, 16384, %s741_s24, [#allocation18], %s8246_s8, %s8246_s8, %s8245_s21  }
 0x123   : > { %s5565_s3 = sadd.s32 4294967294, %s7338_s28   ;;  %s7722_s7 = sadd.s32 1, %s7338_s28  }
 0x124   : > { %s54_s23 = sadd.s32 1, %s7334_s27  ;;  %s51_s10 = ssub.s32 %s7338_s28, %s7722_s7 }
 0x125   : > { %p61_p8 = scmp.ne.s32.totalorder %s7334_s27, %s7330_s26  ;;  %p52_p7 = scmp.eq.s32.totalorder %s51_s10, 0 }
 0x126   : > { %p62_p9 = scmp.eq.s32.totalorder %s7338_s28, 0  ;;  %p67_p4 = scmp.ne.s32.totalorder %s7330_s26, %s7326_s5 }
 0x127   : > { %p579_p1 = scmp.eq.s32.totalorder %s7508_s29, 1  ;;  %p8250_p10 = scmp.eq.s32.totalorder %s7508_s29, 0 }
 0x128   : > { %s7734_s9 = scalar_select %p52_p7, %s7334_s27, %s54_s23  }
 0x129   : > { %p63_p3 = por %p62_p9, %p61_p8  ;;  %p7738_p11 = por %p8250_p10, %p67_p4 }
 0x12a   : > { %8249 = sst [smem:[#allocation29_spill]] %s7734_s9  ;;  %p7742_p6 = por %p579_p1, %p61_p8 }
 0x12b   : > { %s8251_s6 = scalar_select %p7738_p11, 1, 0 }
 0x12c   : > { %s8252_s21 = scalar_select %p7742_p6, 1, 0 }
 0x12d   : > { %p585_p12 = scmp.eq.s32.totalorder %s5565_s3, 1  ;;  %p6274_p13 = scmp.lt.s32.totalorder %s7338_s28, 2 }
 0x12e   : > { %s757_s8 = sand.u32 1, %s7334_s27   ;;  %s6117_s1 = sshll.u32 %s7338_s28, 8 }
 0x12f   : > { %p7748_p0 = por %p585_p12, %p67_p4  ;;  %s7752_s13 = sshll.u32 %s757_s8, 4 }
 0x130   : > { %s8254_s2 = sld [smem:[#allocation30_spill]]  ;;  %s761_s17 = scalar_lea.vmem [#allocation2], %s7752_s13 }
 0x131   : > { %s8253_s24 = scalar_select %p7748_p0, 1, 0 }
 0x132   : > { %s769_s25 = sshll.u32 %s761_s17, 4  ;;  %p7761_p2 = pnand %p6274_p13, %p63_p3  ;;  %s7765_s25 = int_to_ptr.vmem [resolvable:$true] %s769_s25 }
 0x133   : > { %s8256_s12 = sld [smem:[#allocation31_spill]]  ;;  %s758_s4 = scalar_lea.sflag [#allocation3], %s757_s8 }
 0x134   : > { %p7190_p8 = pneg %p7761_p2 }
 0x136   : > { %s7758_s18 = scalar_lea.hbm %s8254_s2, %s6117_s1  ;;  %s7193_s22 = scalar_lea.hbm %s8254_s2, 512 }
 0x137   : > { %s7188_s16 = scalar_lea.hbm %s7758_s18, 256  ;;  %p7194_p4 = scmp.lt.u32.totalorder %s7758_s18, %s8254_s2 }
 0x138   : > { %p7189_p5 = scmp.ne.s32.totalorder %s7758_s18, %s7188_s16  ;;  %p7195_p1 = scmp.lt.u32.totalorder %s7193_s22, %s7188_s16 }
 0x139   : > { %s7770_s19 = scalar_lea.hbm %s8256_s12, %s6117_s1  ;;  %p7197_p10 = scmp.lt.u32.totalorder %s7188_s16, %s7758_s18 }
 0x13a   : > { %p7191_p7 = pnand %p7190_p8, %p7189_p5  ;;  %p7196_p3 = por %p7195_p1, %p7194_p4 }
 0x13c   : > { %p7192_p9 = pneg %p7191_p7  ;;  %p7198_p12 = por %p7197_p10, %p7196_p3 }
 0x13e   : > { %p7199_p13 = pnand %p7198_p12, %p7192_p9 }
 0x140   : > { %7202 = shalt.err (!%p7199_p13)
}
 0x141   : > { %s7203_s8 = scalar_lea.vmem %s7765_s25, 256  ;;  %s7357_s20 = smov [#allocation2]  }
 0x142   : > { %p7204_p5 = scmp.ne.s32.totalorder %s7765_s25, %s7203_s8  ;;  %s7208_s1 = sshll.u32 %s7357_s20, 4  ;;  %s7209_s1 = int_to_ptr.vmem [resolvable:$false] %s7208_s1 }
 0x143   : > { %s7210_s30 = scalar_lea.vmem %s7209_s1, 512  ;;  %p7211_p6 = scmp.lt.s32.totalorder %s7765_s25, %s7209_s1 }
 0x144   : > { %p7206_p7 = pnand %p7204_p5, %p7190_p8  ;;  %p7212_p4 = scmp.lt.s32.totalorder %s7210_s30, %s7203_s8 }
 0x146   : > { %p7207_p0 = pneg %p7206_p7  ;;  %p7213_p1 = por %p7212_p4, %p7211_p6 }
 0x148   : > { %p7214_p3 = pnand %p7213_p1, %p7207_p0 }
 0x14a   : > { %7217 = shalt.err (!%p7214_p3)
}
 0x14b   : > { %6257 = dma.hbm_to_vmem [thread:$0]  (!%p7761_p2), %s7758_s18, 256, %s7765_s25, %s758_s4  }
 0x14c   : > { %s776_s22 = sand.u32 1, %s7338_s28   ;;  %s780_s16 = scalar_lea.vmem [#allocation5], %s7752_s13 }
 0x14d   : > { %s788_s9 = sshll.u32 %s780_s16, 4  ;;  %s777_s23 = scalar_lea.sflag [#allocation6], %s776_s22  ;;  %s789_s9 = int_to_ptr.vmem [resolvable:$true] %s788_s9 }
 0x14e   : > { %s7218_s10 = scalar_lea.hbm %s7770_s19, 256  ;;  %s7223_s20 = scalar_lea.hbm %s8256_s12, 512 }
 0x14f   : > { %p7219_p6 = scmp.ne.s32.totalorder %s7770_s19, %s7218_s10  ;;  %p7224_p10 = scmp.lt.u32.totalorder %s7770_s19, %s8256_s12 }
 0x150   : > { %p7225_p12 = scmp.lt.u32.totalorder %s7223_s20, %s7218_s10  ;;  %p7227_p5 = scmp.lt.u32.totalorder %s7218_s10, %s7770_s19 }
 0x151   : > { %p7221_p0 = pnand %p7219_p6, %p7190_p8 }
 0x152   : > { %p7226_p13 = por %p7225_p12, %p7224_p10 }
 0x153   : > { %p7222_p9 = pneg %p7221_p0 }
 0x154   : > { %p7228_p7 = por %p7227_p5, %p7226_p13 }
 0x156   : > { %p7229_p4 = pnand %p7228_p7, %p7222_p9 }
 0x158   : > { %7232 = shalt.err (!%p7229_p4)
}
 0x159   : > { %s7233_s13 = scalar_lea.vmem %s789_s9, 256  ;;  %s7358_s18 = smov [#allocation5]  }
 0x15a   : > { %p7234_p1 = scmp.ne.s32.totalorder %s789_s9, %s7233_s13  ;;  %s7238_s25 = sshll.u32 %s7358_s18, 4  ;;  %s7239_s25 = int_to_ptr.vmem [resolvable:$false] %s7238_s25 }
 0x15b   : > { %s7240_s4 = scalar_lea.vmem %s7239_s25, 512  ;;  %p7241_p0 = scmp.lt.s32.totalorder %s789_s9, %s7239_s25 }
 0x15c   : > { %p7236_p3 = pnand %p7234_p1, %p7190_p8  ;;  %p7242_p11 = scmp.lt.s32.totalorder %s7240_s4, %s7233_s13 }
 0x15e   : > { %p7237_p6 = pneg %p7236_p3  ;;  %p7243_p10 = por %p7242_p11, %p7241_p0 }
 0x160   : > { %p7244_p12 = pnand %p7243_p10, %p7237_p6 }
 0x162   : > { %7247 = shalt.err (!%p7244_p12)
}
 0x163   : > { %6260 = dma.hbm_to_vmem [thread:$0]  (!%p7761_p2), %s7770_s19, 256, %s789_s9, %s777_s23  }
 0x164   : > { %p8257_p9 = scmp.ne.s32.totalorder %s8235_s0, 0 }
 0x165   : > { %s7821_s22 = sand.u32 (!%p8257_p9), 1, %s7330_s26   ;;  %p8258_p11 = scmp.ne.s32.totalorder (!%p8257_p9), %s8251_s6, 0 }
 0x166   : > { %797 = sbr.rel (%p8257_p9) target bundleno = 5356 (0x14ec), region = 116  ;;  %s7824_s16 = sshll.u32 (!%p8257_p9), %s7821_s22, 4 }
 0x167   : > { %s800_s10 = scalar_lea.sflag (!%p8257_p9), [#allocation3], %s7821_s22  ;;  %s7828_s17 = scalar_lea.vmem (!%p8257_p9), [#allocation2], %s7824_s16 }
 0x16d   : > { %7293 = dma.done.wait (%p8258_p11), %s800_s10, 256  }
 0x16e   : > { %7295 = vsyncadd (%p8258_p11), %s800_s10, 4294967040  ;;  %s808_s0 = sand.u32 1, %s7508_s29   ;;  %s812_s19 = scalar_lea.vmem [#allocation5], %s7824_s16 }
 0x16f   : > { %s809_s3 = scalar_lea.sflag [#allocation6], %s808_s0 }
 0x170   : > { %7297 = dma.done.wait (%p8258_p11), %s809_s3, 256  }
 0x171   : > { %7299 = vsyncadd (%p8258_p11), %s809_s3, 4294967040  ;;  %p8259_p2 = scmp.eq.s32.totalorder %s7508_s29, 0 }
 0x173   : > { %7301 = dma.done.wait (%p8259_p2), [#allocation6], 128   ;;  %p8260_p8 = pmov %p8259_p2 }
 0x174   : > { %p8261_p13 = pmov %p8259_p2 }
 0x175   : > { %7303 = vsyncadd (%p8260_p8), [#allocation6], 4294967168 }
 0x176   : > { %7305 = dma.done.wait (%p8261_p13), [#allocation9], 12384   ;;  %p8262_p5 = pmov %p8259_p2 }
 0x177   : > { %p8263_p7 = pmov %p8259_p2 }
 0x178   : > { %7307 = vsyncadd (%p8262_p5), [#allocation9], 4294954912 }
 0x179   : > { %7309 = dma.done.wait (%p8263_p7), [#allocation12], 8192   ;;  %p8264_p4 = pmov %p8259_p2 }
 0x17a   : > { %p8265_p1 = pmov %p8259_p2 }
 0x17b   : > { %7311 = vsyncadd (%p8264_p4), [#allocation12], 4294959104 }
 0x17c   : > { %7313 = dma.done.wait (%p8265_p1), [#allocation15], 12288   ;;  %p8266_p3 = pmov %p8265_p1 }
 0x17d   : > { %p8267_p6 = pmov %p8265_p1 }
 0x17e   : > { %7315 = vsyncadd (%p8266_p3), [#allocation15], 4294955008 }
 0x17f   : > { %7317 = dma.done.wait (%p8267_p6), [#allocation18], 32768   ;;  %p8268_p0 = pmov %p8265_p1 }
 0x180   : > { %v6336_v0 = vld [vmem:[#allocation8 + $0xc] ss:$24 sps:$4 sm:$0xff]   ;;  %v6338_v1 = vld [vmem:[#allocation8 + $0x8] ss:$24 sps:$4 sm:$0xff]   ;;  %v6339_v2 = vld [vmem:[#allocation8 + $0x3c] ss:$24 sps:$4 sm:$0xff]  }
 0x181   : > { %7319 = vsyncadd (%p8268_p0), [#allocation18], 4294934528  ;;  %1572 = vmatprep.subr.bf16.mxu1 %v6336_v0  ;;  %v6341_v3 = vld [vmem:[#allocation8 + $0x4] ss:$24 sps:$4 sm:$0xff]   ;;  %v6343_v4 = vld [vmem:[#allocation8 + $0x38] ss:$24 sps:$4 sm:$0xff]  }
 0x182   : > { %1573 = vmatpush1.bf16.msra.mxu1 %v6338_v1  ;;  %v6344_v5 = vld [vmem:[#allocation8] ss:$24 sps:$4 sm:$0xff]   ;;  %v6345_v6 = vld [vmem:[#allocation8 + $0x6c] ss:$24 sps:$4 sm:$0xff]   ;;  %1531 = vmatprep.subr.bf16.mxu0 %v6341_v3  ;;  %v6350_v8 = vld [vmem:[#allocation8 + $0x30] ss:$24 sps:$4 sm:$0xff]  }
 0x183   : > { %1574 = vmatprep.subr.bf16.mxu1 %v6339_v2  ;;  %v6347_v7 = vld [vmem:[#allocation8 + $0x34] ss:$24 sps:$4 sm:$0xff]   ;;  %1532 = vmatpush1.bf16.msra.mxu0 %v6344_v5  ;;  %v6349_v9 = vld [vmem:[#allocation8 + $0x68] ss:$24 sps:$4 sm:$0xff]   ;;  %v6353_v11 = vld [vmem:[#allocation8 + $0x64] ss:$24 sps:$4 sm:$0xff]   ;;  %v1021_v5 = vlaneseq }
 0x184   : > { %1533 = vmatprep.subr.bf16.mxu0 %v6347_v7  ;;  %v6351_v10 = vld [vmem:[#allocation8 + $0x9c] ss:$24 sps:$4 sm:$0xff]   ;;  %v6356_v12 = vld [vmem:[#allocation8 + $0x60] ss:$24 sps:$4 sm:$0xff]   ;;  %v6357_v15 = vld [vmem:[#allocation8 + $0xcc] ss:$24 sps:$4 sm:$0xff]  }
 0x185   : > { %v6355_v13 = vld [vmem:[#allocation8 + $0x98] ss:$24 sps:$4 sm:$0xff]   ;;  %v6359_v14 = vld [vmem:[#allocation8 + $0x94] ss:$24 sps:$4 sm:$0xff]   ;;  %v6361_v16 = vld [vmem:[#allocation8 + $0xc8] ss:$24 sps:$4 sm:$0xff]  }
 0x186   : > { %1575 = vmatpush1.bf16.msra.mxu1 %v6343_v4  ;;  %v6362_v17 = vld [vmem:[#allocation8 + $0x90] ss:$24 sps:$4 sm:$0xff]   ;;  %v6365_v18 = vld [vmem:[#allocation8 + $0xc4] ss:$24 sps:$4 sm:$0xff]   ;;  %v6368_v20 = vld [vmem:[#allocation8 + $0xc0] ss:$24 sps:$4 sm:$0xff]  }
 0x187   : > { %1576 = vmatprep.subr.bf16.mxu1 %v6345_v6  ;;  %1534 = vmatpush1.bf16.msra.mxu0 %v6350_v8  ;;  %v6363_v19 = vld [vmem:[#allocation8 + $0xfc] ss:$24 sps:$4 sm:$0xff]   ;;  %v6367_v21 = vld [vmem:[#allocation8 + $0xf8] ss:$24 sps:$4 sm:$0xff]   ;;  %v6369_v23 = vld [vmem:[#allocation8 + $0x12c] ss:$24 sps:$4 sm:$0xff]  }
 0x188   : > { %1535 = vmatprep.subr.bf16.mxu0 %v6353_v11  ;;  %v6371_v22 = vld [vmem:[#allocation8 + $0xf4] ss:$24 sps:$4 sm:$0xff]   ;;  %v6373_v24 = vld [vmem:[#allocation8 + $0x128] ss:$24 sps:$4 sm:$0xff]   ;;  %v6377_v26 = vld [vmem:[#allocation8 + $0x124] ss:$24 sps:$4 sm:$0xff]  }
 0x189   : > { %v6374_v25 = vld [vmem:[#allocation8 + $0xf0] ss:$24 sps:$4 sm:$0xff]   ;;  %v6375_v27 = vld [vmem:[#allocation8 + $0x15c] ss:$24 sps:$4 sm:$0xff]   ;;  %v6380_v28 = vld [vmem:[#allocation8 + $0x120] ss:$24 sps:$4 sm:$0xff]  }
 0x18a   : > { %1577 = vmatpush1.bf16.msra.mxu1 %v6349_v9  ;;  %v6379_v29 = vld [vmem:[#allocation8 + $0x158] ss:$24 sps:$4 sm:$0xff]   ;;  %v6383_v30 = vld [vmem:[#allocation8 + $0x154] ss:$24 sps:$4 sm:$0xff]   ;;  %v6385_v32 = vld [vmem:[#allocation8 + $0x188] ss:$24 sps:$4 sm:$0xff]  }
 0x18b   : > { %1578 = vmatprep.subr.bf16.mxu1 %v6351_v10  ;;  %1536 = vmatpush1.bf16.msra.mxu0 %v6356_v12  ;;  %v6381_v31 = vld [vmem:[#allocation8 + $0x18c] ss:$24 sps:$4 sm:$0xff]   ;;  %v6386_v33 = vld [vmem:[#allocation8 + $0x150] ss:$24 sps:$4 sm:$0xff]   ;;  %v6387_v35 = vld [vmem:[#allocation8 + $0x1bc] ss:$24 sps:$4 sm:$0xff]  }
 0x18c   : > { %1537 = vmatprep.subr.bf16.mxu0 %v6359_v14  ;;  %v6389_v34 = vld [vmem:[#allocation8 + $0x184] ss:$24 sps:$4 sm:$0xff]   ;;  %v6392_v36 = vld [vmem:[#allocation8 + $0x180] ss:$24 sps:$4 sm:$0xff]   ;;  %v6395_v38 = vld [vmem:[#allocation8 + $0x1b4] ss:$24 sps:$4 sm:$0xff]  }
 0x18d   : > { %v6391_v37 = vld [vmem:[#allocation8 + $0x1b8] ss:$24 sps:$4 sm:$0xff]   ;;  %v6393_v39 = vld [vmem:[#allocation8 + $0x1ec] ss:$24 sps:$4 sm:$0xff]   ;;  %v6397_v40 = vld [vmem:[#allocation8 + $0x1e8] ss:$24 sps:$4 sm:$0xff]  }
 0x18e   : > { %1579 = vmatpush1.bf16.msra.mxu1 %v6355_v13  ;;  %v6398_v41 = vld [vmem:[#allocation8 + $0x1b0] ss:$24 sps:$4 sm:$0xff]   ;;  %v6401_v42 = vld [vmem:[#allocation8 + $0x1e4] ss:$24 sps:$4 sm:$0xff]   ;;  %v6404_v46 = vld [vmem:[#allocation8 + $0x1e0] ss:$24 sps:$4 sm:$0xff]  }
 0x18f   : > { %1580 = vmatprep.subr.bf16.mxu1 %v6357_v15  ;;  %1538 = vmatpush1.bf16.msra.mxu0 %v6362_v17  ;;  %v6399_v43 = vld [vmem:[#allocation8 + $0x21c] ss:$24 sps:$4 sm:$0xff]   ;;  %v6403_v44 = vld [vmem:[#allocation8 + $0x218] ss:$24 sps:$4 sm:$0xff]   ;;  %v6405_v48 = vld [vmem:[#allocation8 + $0x24c] ss:$24 sps:$4 sm:$0xff]  }
 0x190   : > { %1539 = vmatprep.subr.bf16.mxu0 %v6365_v18  ;;  %v920_v45 = vld [vmem:[%s7828_s17 + $0x8] sm:$0xff]  ;;  %v919_v0 = vld [vmem:[%s7828_s17] sm:$0xff]  ;;  %v7359_v4 = vmov 0.0   ;;  %vm7360_vm0 = vmmov 0   ;;  %v7869_v6 = vshrl.u32 %v1021_v5, 7  ;;  %vm1734_vm1 = vcmask 64512  }
 0x191   : > { %v922_v47 = vpack.c.bf16 %v920_v45, %v920_v45  ;;  %v6407_v49 = vld [vmem:[#allocation8 + $0x214] ss:$24 sps:$4 sm:$0xff]   ;;  %v6410_v50 = vld [vmem:[#allocation8 + $0x210] ss:$24 sps:$4 sm:$0xff]   ;;  %v6413_v52 = vld [vmem:[#allocation8 + $0x244] ss:$24 sps:$4 sm:$0xff]   ;;  %v7862_v3 = vpack.c.bf16 %v919_v0, %v919_v0 }
 0x192   : > { %1581 = vmatpush1.bf16.msra.mxu1 %v6361_v16  ;;  %v6409_v51 = vld [vmem:[#allocation8 + $0x248] ss:$24 sps:$4 sm:$0xff]   ;;  %v6411_v53 = vld [vmem:[#allocation8 + $0x27c] ss:$24 sps:$4 sm:$0xff]   ;;  %v6415_v55 = vld [vmem:[#allocation8 + $0x278] ss:$24 sps:$4 sm:$0xff]  }
 0x193   : > { %1582 = vmatprep.subr.bf16.mxu1 %v6363_v19  ;;  %1540 = vmatpush1.bf16.msra.mxu0 %v6368_v20  ;;  %v6416_v54 = vld [vmem:[#allocation8 + $0x240] ss:$24 sps:$4 sm:$0xff]   ;;  %v6419_v56 = vld [vmem:[#allocation8 + $0x274] ss:$24 sps:$4 sm:$0xff]   ;;  %v6422_v58 = vld [vmem:[#allocation8 + $0x270] ss:$24 sps:$4 sm:$0xff]  }
 0x194   : > { %1541 = vmatprep.subr.bf16.mxu0 %v6371_v22  ;;  %1604 = vmatprep.mubr.bf16.mxu1 %v922_v47  ;;  %v6417_v57 = vld [vmem:[#allocation8 + $0x2ac] ss:$24 sps:$4 sm:$0xff]   ;;  %v6421_v59 = vld [vmem:[#allocation8 + $0x2a8] ss:$24 sps:$4 sm:$0xff]   ;;  %v6423_v61 = vld [vmem:[#allocation8 + $0x2dc] ss:$24 sps:$4 sm:$0xff]  }
 0x195   : > { %1563 = vmatprep.mubr.bf16.mxu0 %v922_v47  ;;  %v6425_v60 = vld [vmem:[#allocation8 + $0x2a4] ss:$24 sps:$4 sm:$0xff]   ;;  %v6428_v62 = vld [vmem:[#allocation8 + $0x2a0] ss:$24 sps:$4 sm:$0xff]   ;;  %v6429_v1 = vld [vmem:[#allocation8 + $0x2d4] ss:$24 sps:$4 sm:$0xff]  }
 0x196   : > { %1583 = vmatpush1.bf16.msra.mxu1 %v6367_v21  ;;  %v6427_v63 = vld [vmem:[#allocation8 + $0x2d8] ss:$24 sps:$4 sm:$0xff]   ;;  %v7872_v7 = vsub.s32 2, %v7869_v6  ;;  %v7874_v8 = vld [vmem:[#allocation10] sm:$0x3f]  ;;  %v7877_v9 = vsub.s32 0, %v7869_v6 }
 0x197   : > { %1584 = vmatprep.subr.bf16.mxu1 %v6369_v23  ;;  %1542 = vmatpush1.bf16.msra.mxu0 %v6374_v25  ;;  %v6431_v2 = vld [vmem:[#allocation8 + $0x2d0] ss:$24 sps:$4 sm:$0xff]   ;;  %v6434_v25 = vld [vmem:[#allocation8 + $0x14] ss:$24 sps:$4 sm:$0xff]   ;;  %vm1750_vm2 = vcmask 1043456   ;;  %s8269_s23 = sld [smem:[#allocation37_spill]] }
 0x198   : > { %1543 = vmatprep.subr.bf16.mxu0 %v6377_v26  ;;  %v1032_v10 = vrot.slane %v7874_v8, %v7872_v7  ;;  %v1024_v12 = vrot.slane %v7874_v8, %v7877_v9  ;;  %v6437_v26 = vld [vmem:[#allocation8 + $0x44] ss:$24 sps:$4 sm:$0xff]   ;;  %v6462_v45 = vld [vmem:[#allocation8 + $0x1f0] ss:$24 sps:$4 sm:$0xff]   ;;  %s8270_s10 = sld [smem:[#allocation39_spill]]  ;;  %s8271_s3 = sld [smem:[#allocation33_spill]] }
 0x199   : > { %s8272_s9 = sld [smem:[#allocation42_spill]]  ;;  %s8273_s20 = sld [smem:[#allocation43_spill]] }
 0x19a   : > { %1585 = vmatpush1.bf16.msra.mxu1 %v6373_v24  ;;  %v6432_v24 = vld [vmem:[#allocation8 + $0x10] ss:$24 sps:$4 sm:$0xff]   ;;  %s8274_s13 = sld [smem:[#allocation44_spill]]  ;;  %s8275_s4 = sld [smem:[#allocation48_spill]] }
 0x19b   : > { %1586 = vmatprep.subr.bf16.mxu1 %v6375_v27  ;;  %1544 = vmatpush1.bf16.msra.mxu0 %v6380_v28  ;;  %v6435_v27 = vld [vmem:[#allocation8 + $0x40] ss:$24 sps:$4 sm:$0xff]   ;;  %v6440_v28 = vld [vmem:[#allocation8 + $0x74] ss:$24 sps:$4 sm:$0xff]   ;;  %s8276_s0 = sld [smem:[#allocation50_spill]]  ;;  %s8277_s6 = sld [smem:[#allocation45_spill]] }
 0x19c   : > { %1545 = vmatprep.subr.bf16.mxu0 %v6383_v30  ;;  %v6443_v30 = vld [vmem:[#allocation8 + $0xa4] ss:$24 sps:$4 sm:$0xff]   ;;  %s8278_s8 = sld [smem:[#allocation46_spill]]  ;;  %s917_s1 = scalar_lea.vmem [#allocation20], %s7824_s16 }
 0x19d   : > { %s5387_s30 = sshll.u32 %s917_s1, 4  ;;  %s8279_s25 = sld [smem:[#allocation51_spill]]  ;;  %s8125_s30 = int_to_ptr.vmem [resolvable:$true] %s5387_s30 }
 0x19e   : > { %1587 = vmatpush1.bf16.msra.mxu1 %v6379_v29  ;;  %v6438_v29 = vld [vmem:[#allocation8 + $0x70] ss:$24 sps:$4 sm:$0xff]   ;;  %p8280_p12 = scmp.ne.s32.totalorder %s8252_s21, 0  ;;  %s7361_s16 = smov [#allocation20]  }
 0x19f   : > { %1588 = vmatprep.subr.bf16.mxu1 %v6381_v31  ;;  %1546 = vmatpush1.bf16.msra.mxu0 %v6386_v33  ;;  %v6441_v31 = vld [vmem:[#allocation8 + $0xa0] ss:$24 sps:$4 sm:$0xff]   ;;  %v6444_v33 = vld [vmem:[#allocation8 + $0xd0] ss:$24 sps:$4 sm:$0xff]  }
 0x1a0   : > { %1547 = vmatprep.subr.bf16.mxu0 %v6389_v34  ;;  %v6449_v34 = vld [vmem:[#allocation8 + $0x104] ss:$24 sps:$4 sm:$0xff]  }
 0x1a2   : > { %1589 = vmatpush1.bf16.msra.mxu1 %v6385_v32  ;;  %v6446_v32 = vld [vmem:[#allocation8 + $0xd4] ss:$24 sps:$4 sm:$0xff]  }
 0x1a3   : > { %1590 = vmatprep.subr.bf16.mxu1 %v6387_v35  ;;  %1548 = vmatpush1.bf16.msra.mxu0 %v6392_v36  ;;  %v6447_v35 = vld [vmem:[#allocation8 + $0x100] ss:$24 sps:$4 sm:$0xff]   ;;  %v6452_v36 = vld [vmem:[#allocation8 + $0x134] ss:$24 sps:$4 sm:$0xff]  }
 0x1a4   : > { %1549 = vmatprep.subr.bf16.mxu0 %v6395_v38  ;;  %v6455_v38 = vld [vmem:[#allocation8 + $0x164] ss:$24 sps:$4 sm:$0xff]  }
 0x1a6   : > { %1591 = vmatpush1.bf16.msra.mxu1 %v6391_v37  ;;  %v6450_v37 = vld [vmem:[#allocation8 + $0x130] ss:$24 sps:$4 sm:$0xff]  }
 0x1a7   : > { %1592 = vmatprep.subr.bf16.mxu1 %v6393_v39  ;;  %1550 = vmatpush1.bf16.msra.mxu0 %v6398_v41  ;;  %v6453_v39 = vld [vmem:[#allocation8 + $0x160] ss:$24 sps:$4 sm:$0xff]   ;;  %v6456_v41 = vld [vmem:[#allocation8 + $0x190] ss:$24 sps:$4 sm:$0xff]  }
 0x1a8   : > { %1551 = vmatprep.subr.bf16.mxu0 %v6401_v42  ;;  %v6461_v42 = vld [vmem:[#allocation8 + $0x1c4] ss:$24 sps:$4 sm:$0xff]  }
 0x1aa   : > { %1593 = vmatpush1.bf16.msra.mxu1 %v6397_v40  ;;  %v6458_v40 = vld [vmem:[#allocation8 + $0x194] ss:$24 sps:$4 sm:$0xff]  }
 0x1ab   : > { %1594 = vmatprep.subr.bf16.mxu1 %v6399_v43  ;;  %1552 = vmatpush1.bf16.msra.mxu0 %v6404_v46  ;;  %v6459_v43 = vld [vmem:[#allocation8 + $0x1c0] ss:$24 sps:$4 sm:$0xff]   ;;  %v6467_v46 = vld [vmem:[#allocation8 + $0x224] ss:$24 sps:$4 sm:$0xff]  }
 0x1ac   : > { %1553 = vmatprep.subr.bf16.mxu0 %v6407_v49  ;;  %v6468_v49 = vld [vmem:[#allocation8 + $0x250] ss:$24 sps:$4 sm:$0xff]  }
 0x1ae   : > { %1595 = vmatpush1.bf16.msra.mxu1 %v6403_v44  ;;  %v6464_v44 = vld [vmem:[#allocation8 + $0x1f4] ss:$24 sps:$4 sm:$0xff]  }
 0x1af   : > { %1596 = vmatprep.subr.bf16.mxu1 %v6405_v48  ;;  %1554 = vmatpush1.bf16.msra.mxu0 %v6410_v50  ;;  %v6470_v48 = vld [vmem:[#allocation8 + $0x254] ss:$24 sps:$4 sm:$0xff]   ;;  %v6473_v50 = vld [vmem:[#allocation8 + $0x284] ss:$24 sps:$4 sm:$0xff]  }
 0x1b0   : > { %1555 = vmatprep.subr.bf16.mxu0 %v6413_v52  ;;  %v6476_v52 = vld [vmem:[#allocation8 + $0x2b4] ss:$24 sps:$4 sm:$0xff]  }
 0x1b2   : > { %1597 = vmatpush1.bf16.msra.mxu1 %v6409_v51  ;;  %v6471_v51 = vld [vmem:[#allocation8 + $0x280] ss:$24 sps:$4 sm:$0xff]  }
 0x1b3   : > { %1598 = vmatprep.subr.bf16.mxu1 %v6411_v53  ;;  %1556 = vmatpush1.bf16.msra.mxu0 %v6416_v54  ;;  %v6474_v53 = vld [vmem:[#allocation8 + $0x2b0] ss:$24 sps:$4 sm:$0xff]   ;;  %v6479_v54 = vld [vmem:[#allocation8 + $0x2e4] ss:$24 sps:$4 sm:$0xff]  }
 0x1b4   : > { %1557 = vmatprep.subr.bf16.mxu0 %v6419_v56  ;;  %v1693_v56 = vld [vmem:[#allocation7] sm:$0xff] }
 0x1b6   : > { %1599 = vmatpush1.bf16.msra.mxu1 %v6415_v55  ;;  %v6477_v55 = vld [vmem:[#allocation8 + $0x2e0] ss:$24 sps:$4 sm:$0xff]  }
 0x1b7   : > { %1600 = vmatprep.subr.bf16.mxu1 %v6417_v57  ;;  %1558 = vmatpush1.bf16.msra.mxu0 %v6422_v58 }
 0x1b8   : > { %1559 = vmatprep.subr.bf16.mxu0 %v6425_v60 }
 0x1ba   : > { %1601 = vmatpush1.bf16.msra.mxu1 %v6421_v59 }
 0x1bb   : > { %1602 = vmatprep.subr.bf16.mxu1 %v6423_v61  ;;  %1560 = vmatpush1.bf16.msra.mxu0 %v6428_v62 }
 0x1bc   : > { %1561 = vmatprep.subr.bf16.mxu0 %v6429_v1  ;;  %v1039_v1 = vsub.s32 4, %v7869_v6 }
 0x1be   : > { %1603 = vmatpush1.bf16.msra.mxu1 %v6427_v63 }
 0x1bf   : > { %1562 = vmatpush1.bf16.msra.mxu0 %v6431_v2  ;;  %6136 = vmatprep.subr.bf16.mxu1 %v7359_v4 }
 0x1c0   : > { %1613 = vmatprep.subr.bf16.mxu0 %v6434_v25 }
 0x1c1   : > { %1605 = vmatmul.mubr.bf16.vlgmr.msra.gmra.mrb[0].mxu1 %v7862_v3 }
 0x1c2   : > { %1564 = vmatmul.mubr.bf16.vlgmr.msra.gmra.mrb[0].mxu0 %v7862_v3  ;;  %6138 = vmatprep.mubr.msk.bf16.mxu1 %vm7360_vm0, %v7359_v4 }
 0x1c3   : > { %1645 = vmatprep.mubr.bf16.mxu0 %v922_v47  ;;  %1614 = vmatpush1.bf16.msra.mxu0 %v6432_v24  ;;  %v6465_v47 = vld [vmem:[#allocation8 + $0x220] ss:$24 sps:$4 sm:$0xff]   ;;  %v7906_v24 = vsub.s32 1, %v7869_v6 }
 0x1c4   : > { %1615 = vmatprep.subr.bf16.mxu0 %v6437_v26 }
 0x1c7   : > { %1616 = vmatpush1.bf16.msra.mxu0 %v6435_v27 }
 0x1c8   : > { %1617 = vmatprep.subr.bf16.mxu0 %v6440_v28 }
 0x1cb   : > { %1618 = vmatpush1.bf16.msra.mxu0 %v6438_v29  ;;  %v1028_v29 = vrot.slane %v7874_v8, %v7906_v24 }
 0x1cc   : > { %1619 = vmatprep.subr.bf16.mxu0 %v6443_v30 }
 0x1cf   : > { %1620 = vmatpush1.bf16.msra.mxu0 %v6441_v31 }
 0x1d0   : > { %1621 = vmatprep.subr.bf16.mxu0 %v6446_v32 }
 0x1d3   : > { %1622 = vmatpush1.bf16.msra.mxu0 %v6444_v33 }
 0x1d4   : > { %1623 = vmatprep.subr.bf16.mxu0 %v6449_v34 }
 0x1d7   : > { %1624 = vmatpush1.bf16.msra.mxu0 %v6447_v35 }
 0x1d8   : > { %1625 = vmatprep.subr.bf16.mxu0 %v6452_v36 }
 0x1db   : > { %1626 = vmatpush1.bf16.msra.mxu0 %v6450_v37 }
 0x1dc   : > { %1627 = vmatprep.subr.bf16.mxu0 %v6455_v38 }
 0x1df   : > { %1628 = vmatpush1.bf16.msra.mxu0 %v6453_v39 }
 0x1e0   : > { %1629 = vmatprep.subr.bf16.mxu0 %v6458_v40 }
 0x1e3   : > { %1630 = vmatpush1.bf16.msra.mxu0 %v6456_v41 }
 0x1e4   : > { %1631 = vmatprep.subr.bf16.mxu0 %v6461_v42 }
 0x1e7   : > { %1632 = vmatpush1.bf16.msra.mxu0 %v6459_v43 }
 0x1e8   : > { %1633 = vmatprep.subr.bf16.mxu0 %v6464_v44 }
 0x1eb   : > { %1634 = vmatpush1.bf16.msra.mxu0 %v6462_v45 }
 0x1ec   : > { %1635 = vmatprep.subr.bf16.mxu0 %v6467_v46 }
 0x1ef   : > { %1636 = vmatpush1.bf16.msra.mxu0 %v6465_v47 }
 0x1f0   : > { %1637 = vmatprep.subr.bf16.mxu0 %v6470_v48 }
 0x1f3   : > { %1638 = vmatpush1.bf16.msra.mxu0 %v6468_v49  ;;  %v6482_v49 = vld [vmem:[#allocation11 + $0x4] ss:$8 sps:$4 sm:$0xff]  }
 0x1f4   : > { %1639 = vmatprep.subr.bf16.mxu0 %v6473_v50 }
 0x1f7   : > { %1640 = vmatpush1.bf16.msra.mxu0 %v6471_v51 }
 0x1f8   : > { %1641 = vmatprep.subr.bf16.mxu0 %v6476_v52 }
 0x1fb   : > { %1642 = vmatpush1.bf16.msra.mxu0 %v6474_v53  ;;  %v6480_v53 = vld [vmem:[#allocation11] ss:$8 sps:$4 sm:$0xff]  }
 0x1fc   : > { %1643 = vmatprep.subr.bf16.mxu0 %v6479_v54 }
 0x1ff   : > { %1644 = vmatpush1.bf16.msra.mxu0 %v6477_v55  ;;  %v6485_v55 = vld [vmem:[#allocation11 + $0x14] ss:$8 sps:$4 sm:$0xff]  }
 0x202   : > { %1646 = vmatmul.mubr.bf16.vlgmr.msra.gmra.mrb[4].mxu0 %v7862_v3  ;;  %v1040_v3 = vrot.slane %v7874_v8, %v1039_v1 }
 0x294   : > { %v1606_v11 = vpop.f32.mrb[0].mxu1 }
 0x295   : > { %v1607_v13 = vadd.f32 %v1606_v11, %v1032_v10  ;;  %v7883_v14 = vpop.f32.mrb[1].mxu1  ;;  %v1565_v18 = vpop.f32.mrb[0].mxu0 }
 0x296   : > { %v1610_v15 = vpop.f32.mrb[2].mxu1  ;;  %v1566_v19 = vadd.f32 %v1565_v18, %v1024_v12  ;;  %v7885_v20 = vpop.f32.mrb[1].mxu0 }
 0x297   : > { %v1656_v16 = vpack.c.bf16 %v1607_v13, %v1607_v13  ;;  %v1611_v17 = vpop.f32.mrb[3].mxu1  ;;  %v1569_v21 = vpop.f32.mrb[2].mxu0  ;;  %v1568_v33 = vadd.f32 %v7885_v20, %v1028_v29  ;;  %v6522_v29 = vld [vmem:[#allocation11 + $0xe0] ss:$8 sps:$4 sm:$0xff]  }
 0x298   : > { %v1570_v22 = vpop.f32.mrb[3].mxu0  ;;  %v1654_v23 = vpack.c.bf16 %v1566_v19, %v1566_v19  ;;  %v7900_v21 = vsub.s32 3, %v7869_v6 }
 0x299   : > { %6137 = vmatpush3.bf16.xpose.msra.mxu1 %v1656_v16  ;;  %v1655_v34 = vpack.c.bf16 %v1568_v33, %v1568_v33 }
 0x29a   : > { %6142 = vmatprep.subr.bf16.mxu1 %v7359_v4  ;;  %v1036_v22 = vrot.slane %v7874_v8, %v7900_v21 }
 0x29c   : > { %v1609_v26 = vadd.f32 %v7883_v14, %v1036_v22  ;;  %v6518_v22 = vld [vmem:[#allocation11 + $0xc4] ss:$8 sps:$4 sm:$0xff]  }
 0x29e   : > { %v1657_v31 = vpack.c.bf16 %v1609_v26, %v1609_v26  ;;  %v6521_v26 = vld [vmem:[#allocation11 + $0xd4] ss:$8 sps:$4 sm:$0xff]  }
 0x2a0   : > { %6139 = vmatmul.mubr.bf16.vlgmr.msra.gmra.mrb[4].mxu1 %v1654_v23  ;;  %v1043_v23 = vsub.s32 5, %v7869_v6 }
 0x2a1   : > { %6144 = vmatprep.mubr.msk.bf16.mxu1 %vm7360_vm0, %v7359_v4 }
 0x2a2   : > { %v1044_v27 = vrot.slane %v7874_v8, %v1043_v23 }
 0x2d5   : > { %v1647_v5 = vpop.f32.mrb[4].mxu0 }
 0x2d6   : > { %v1648_v10 = vadd.f32 %v1647_v5, %v1040_v3  ;;  %v1649_v11 = vpop.f32.mrb[5].mxu0  ;;  %v6498_v3 = vld [vmem:[#allocation11 + $0x60] ss:$8 sps:$4 sm:$0xff]   ;;  %v6503_v5 = vld [vmem:[#allocation11 + $0x74] ss:$8 sps:$4 sm:$0xff]  }
 0x2d7   : > { %v1651_v12 = vpop.f32.mrb[6].mxu0  ;;  %v1650_v32 = vadd.f32 %v1649_v11, %v1044_v27  ;;  %v6506_v11 = vld [vmem:[#allocation11 + $0x84] ss:$8 sps:$4 sm:$0xff]   ;;  %v6519_v27 = vld [vmem:[#allocation11 + $0xd0] ss:$8 sps:$4 sm:$0xff]  }
 0x2d8   : > { %v1658_v13 = vpack.c.bf16 %v1648_v10, %v1648_v10  ;;  %v1652_v15 = vpop.f32.mrb[7].mxu0  ;;  %v6501_v10 = vld [vmem:[#allocation11 + $0x70] ss:$8 sps:$4 sm:$0xff]   ;;  %v6504_v12 = vld [vmem:[#allocation11 + $0x80] ss:$8 sps:$4 sm:$0xff]  }
 0x2d9   : > { %v1659_v14 = vpack.c.bf16 %v1650_v32, %v1650_v32  ;;  %v6507_v15 = vld [vmem:[#allocation11 + $0x90] ss:$8 sps:$4 sm:$0xff]  }
 0x2da   : > { %v1752_v16 = vsel %vm1750_vm2, %v1658_v13, 0  ;;  %v6509_v13 = vld [vmem:[#allocation11 + $0x94] ss:$8 sps:$4 sm:$0xff]  }
 0x2db   : > { %6143 = vmatpush3.bf16.msra.mxu1 %v1752_v16  ;;  %v1850_v35 = vsel %vm1750_vm2, %v1659_v14, 0  ;;  %v6512_v16 = vld [vmem:[#allocation11 + $0xa4] ss:$8 sps:$4 sm:$0xff]  }
 0x2dc   : > { %6148 = vmatprep.subr.bf16.mxu1 %v7359_v4 }
 0x373   : > { %v1728_v57 = vpop.f32.mrb[4].mxu1 }
 0x374   : > { %v1729_v58 = vadd.f32 %v1728_v57, %v1693_v56  ;;  %v6140_v59 = vpop.f32.mrb[5].mxu1  ;;  %v6488_v57 = vld [vmem:[#allocation11 + $0x24] ss:$8 sps:$4 sm:$0xff]  }
 0x375   : > { %v1731_v60 = vpop.f32.mrb[6].mxu1  ;;  %v6491_v59 = vld [vmem:[#allocation11 + $0x34] ss:$8 sps:$4 sm:$0xff]  }
 0x376   : > { %v6141_v61 = vpop.f32.mrb[7].mxu1  ;;  %v1735_v62 = vsel %vm1734_vm1, %v1729_v58, -inf  ;;  %v6489_v60 = vld [vmem:[#allocation11 + $0x30] ss:$8 sps:$4 sm:$0xff]  }
 0x377   : > { %1736 = vmax.xlane.f32.xlu0 %v1735_v62  ;;  %v6494_v61 = vld [vmem:[#allocation11 + $0x44] ss:$8 sps:$4 sm:$0xff]   ;;  %v6492_v62 = vld [vmem:[#allocation11 + $0x40] ss:$8 sps:$4 sm:$0xff]  }
 0x404   : > { %v1737_v63 = vpop.xlane.xlu0 %1736 }
 0x405   : > { %v1738_v0 = vsub.f32 %v1729_v58, %v1737_v63  ;;  %v6486_v58 = vld [vmem:[#allocation11 + $0x20] ss:$8 sps:$4 sm:$0xff]   ;;  %v6497_v63 = vld [vmem:[#allocation11 + $0x54] ss:$8 sps:$4 sm:$0xff]  }
 0x407   : > { %v1739_v2 = vmul.f32 1.442695, %v1738_v0  ;;  %v6495_v0 = vld [vmem:[#allocation11 + $0x50] ss:$8 sps:$4 sm:$0xff]  }
 0x409   : > { %6912 = vpow2.f32 %v1739_v2  ;;  %v6500_v2 = vld [vmem:[#allocation11 + $0x64] ss:$8 sps:$4 sm:$0xff]  }
 0x413   : > { %v6913_v17 = vpop.eup %6912 }
 0x414   : > { %v1741_v18 = vsel %vm1734_vm1, %v6913_v17, 0.0 }
 0x415   : > { %1742 = vadd.xlane.f32.xlu0 %v1741_v18  ;;  %v6515_v18 = vld [vmem:[#allocation11 + $0xb4] ss:$8 sps:$4 sm:$0xff]  }
 0x4a2   : > { %v1743_v19 = vpop.xlane.xlu0 %1742 }
 0x4a3   : > { %6914 = vrcp.f32 %v1743_v19  ;;  %v6513_v19 = vld [vmem:[#allocation11 + $0xb0] ss:$8 sps:$4 sm:$0xff]  }
 0x4ad   : > { %v6915_v25 = vpop.eup %6914 }
 0x4ae   : > { %v1745_v28 = vmul.f32 %v6915_v25, %v6913_v17  ;;  %v6510_v17 = vld [vmem:[#allocation11 + $0xa0] ss:$8 sps:$4 sm:$0xff]  }
 0x4af   : > { %v6516_v25 = vld [vmem:[#allocation11 + $0xc0] ss:$8 sps:$4 sm:$0xff]  }
 0x4b0   : > { %v1746_v30 = vpack.c.bf16 %v1745_v28, %v1745_v28  ;;  %v6524_v28 = vld [vmem:[#allocation11 + $0xe4] ss:$8 sps:$4 sm:$0xff]  }
 0x4b2   : > { %6145 = vmatmul.mubr.msk.bf16.vlgmr.msra.gmra.mrb[8].mxu1 %vm1734_vm1, %v1746_v30  ;;  %v6527_v30 = vld [vmem:[#allocation11 + $0xf4] ss:$8 sps:$4 sm:$0xff]  }
 0x4b3   : > { %6149 = vmatpush3.bf16.xpose.msra.mxu1 %v1657_v31  ;;  %6150 = vmatprep.mubr.msk.bf16.mxu1 %vm7360_vm0, %v7359_v4  ;;  %v6525_v31 = vld [vmem:[#allocation11 + $0xf0] ss:$8 sps:$4 sm:$0xff]  }
 0x4b4   : > { %6154 = vmatprep.subr.bf16.mxu1 %v7359_v4 }
 0x4ba   : > { %6151 = vmatmul.mubr.bf16.vlgmr.msra.gmra.mrb[12].mxu1 %v1655_v34 }
 0x4bb   : > { %6155 = vmatpush3.bf16.msra.mxu1 %v1850_v35  ;;  %6156 = vmatprep.mubr.msk.bf16.mxu1 %vm7360_vm0, %v7359_v4 }
 0x4bc   : > { %2065 = vmatprep.subr.bf16.mxu1 %v6482_v49  ;;  %v6528_v49 = vld [vmem:[#allocation14] ss:$16 sps:$4 sm:$0xff]  }
 0x585   : > { %v7922_v8 = vpop.f32.mrb[8].mxu1 }
 0x586   : > { %v6146_v36 = vpop.f32.mrb[9].mxu1  ;;  %v1892_v34 = vpack.c.bf16 %v7922_v8, %v7922_v8 }
 0x587   : > { %v1791_v37 = vpop.f32.mrb[10].mxu1 }
 0x588   : > { %v6147_v38 = vpop.f32.mrb[11].mxu1  ;;  %v1692_v37 = vld [vmem:[%s8269_s23] sm:$0x3] }
 0x589   : > { %v1898_v38 = vrot.slane %v1692_v37, %v7877_v9 }
 0x58d   : > { %v1828_v39 = vpop.f32.mrb[12].mxu1 }
 0x58e   : > { %v1829_v40 = vadd.f32 %v1828_v39, %v1693_v56  ;;  %v6152_v41 = vpop.f32.mrb[13].mxu1  ;;  %v6483_v56 = vld [vmem:[#allocation11 + $0x10] ss:$8 sps:$4 sm:$0xff]   ;;  %v1902_v39 = vrot.slane %v1692_v37, %v7906_v24  ;;  %v6590_v37 = vld [vmem:[#allocation14 + $0x164] ss:$16 sps:$4 sm:$0xff]  }
 0x58f   : > { %v1831_v20 = vpop.f32.mrb[14].mxu1 }
 0x590   : > { %v6153_v42 = vpop.f32.mrb[15].mxu1  ;;  %v1834_v43 = vsel %vm1734_vm1, %v1829_v40, -inf }
 0x591   : > { %1835 = vmax.xlane.f32.xlu1 %v1834_v43 }
 0x61e   : > { %v1836_v44 = vpop.xlane.xlu1 %1835 }
 0x61f   : > { %v1837_v45 = vsub.f32 %v1829_v40, %v1836_v44  ;;  %v6934_v44 = vld [vmem:[%s7828_s17] sm:$0xff] }
 0x621   : > { %v1838_v46 = vmul.f32 1.442695, %v1837_v45 }
 0x623   : > { %6916 = vpow2.f32 %v1838_v46  ;;  %v6935_v46 = vld [vmem:[%s7828_s17 + $0x8] sm:$0xff]  ;;  %s7252_s17 = sshll.u32 %s7361_s16, 4  ;;  %s7253_s17 = int_to_ptr.vmem [resolvable:$false] %s7252_s17 }
 0x624   : > { %p7255_p2 = scmp.lt.s32.totalorder %s8125_s30, %s7253_s17 }
 0x62d   : > { %v6917_v47 = vpop.eup %6916 }
 0x62e   : > { %v1840_v48 = vsel %vm1734_vm1, %v6917_v47, 0.0 }
 0x62f   : > { %1841 = vadd.xlane.f32.xlu1 %v1840_v48 }
 0x6bc   : > { %v1842_v50 = vpop.xlane.xlu1 %1841 }
 0x6bd   : > { %6918 = vrcp.f32 %v1842_v50  ;;  %v6530_v50 = vld [vmem:[#allocation14 + $0x4] ss:$16 sps:$4 sm:$0xff]  }
 0x6c7   : > { %v6919_v51 = vpop.eup %6918 }
 0x6c8   : > { %v1844_v52 = vmul.f32 %v6919_v51, %v6917_v47  ;;  %v6533_v51 = vld [vmem:[#allocation14 + $0x24] ss:$16 sps:$4 sm:$0xff]  }
 0x6ca   : > { %v1845_v54 = vpack.c.bf16 %v1844_v52, %v1844_v52  ;;  %v6537_v52 = vld [vmem:[#allocation13] ss:$8 sps:$4 sm:$0xff]  }
 0x6cc   : > { %6157 = vmatmul.mubr.msk.bf16.vlgmr.msra.gmra.mrb[16].mxu1 %vm1734_vm1, %v1845_v54  ;;  %v6531_v54 = vld [vmem:[#allocation14 + $0x20] ss:$16 sps:$4 sm:$0xff]  }
 0x6cd   : > { %2066 = vmatpush1.bf16.msra.mxu1 %v6480_v53  ;;  %v6539_v53 = vld [vmem:[#allocation13 + $0x4] ss:$8 sps:$4 sm:$0xff]  }
 0x6ce   : > { %2067 = vmatprep.subr.bf16.mxu1 %v6485_v55  ;;  %v6545_v55 = vld [vmem:[#allocation13 + $0x14] ss:$8 sps:$4 sm:$0xff]   ;;  %2363 = vmatprep.subr.bf16.mxu0 %v6539_v53  ;;  %v6603_v53 = vld [vmem:[#allocation13 + $0xb0] ss:$8 sps:$4 sm:$0xff]  }
 0x6cf   : > { %2364 = vmatpush1.bf16.msra.mxu0 %v6537_v52  ;;  %v6605_v52 = vld [vmem:[#allocation13 + $0xb4] ss:$8 sps:$4 sm:$0xff]  }
 0x6d0   : > { %2365 = vmatprep.subr.bf16.mxu0 %v6545_v55  ;;  %v6609_v55 = vld [vmem:[#allocation13 + $0xc0] ss:$8 sps:$4 sm:$0xff]  }
 0x6d1   : > { %2068 = vmatpush1.bf16.msra.mxu1 %v6483_v56  ;;  %v6536_v56 = vld [vmem:[#allocation14 + $0x44] ss:$16 sps:$4 sm:$0xff]  }
 0x6d2   : > { %2069 = vmatprep.subr.bf16.mxu1 %v6488_v57  ;;  %v6543_v57 = vld [vmem:[#allocation13 + $0x10] ss:$8 sps:$4 sm:$0xff]  }
 0x6d3   : > { %2366 = vmatpush1.bf16.msra.mxu0 %v6543_v57  ;;  %v6612_v57 = vld [vmem:[#allocation14 + $0x1e0] ss:$16 sps:$4 sm:$0xff]  }
 0x6d5   : > { %2070 = vmatpush1.bf16.msra.mxu1 %v6486_v58  ;;  %v6551_v58 = vld [vmem:[#allocation13 + $0x24] ss:$8 sps:$4 sm:$0xff]  }
 0x6d6   : > { %2071 = vmatprep.subr.bf16.mxu1 %v6491_v59  ;;  %v6534_v59 = vld [vmem:[#allocation14 + $0x40] ss:$16 sps:$4 sm:$0xff]   ;;  %2367 = vmatprep.subr.bf16.mxu0 %v6551_v58  ;;  %v6617_v58 = vld [vmem:[#allocation13 + $0xd4] ss:$8 sps:$4 sm:$0xff]  }
 0x6d9   : > { %2072 = vmatpush1.bf16.msra.mxu1 %v6489_v60  ;;  %v6542_v60 = vld [vmem:[#allocation14 + $0x64] ss:$16 sps:$4 sm:$0xff]  }
 0x6da   : > { %2073 = vmatprep.subr.bf16.mxu1 %v6494_v61  ;;  %v6549_v61 = vld [vmem:[#allocation13 + $0x20] ss:$8 sps:$4 sm:$0xff]  }
 0x6db   : > { %2368 = vmatpush1.bf16.msra.mxu0 %v6549_v61 }
 0x6dd   : > { %2074 = vmatpush1.bf16.msra.mxu1 %v6492_v62  ;;  %v6557_v62 = vld [vmem:[#allocation13 + $0x34] ss:$8 sps:$4 sm:$0xff]  }
 0x6de   : > { %2075 = vmatprep.subr.bf16.mxu1 %v6497_v63  ;;  %v6540_v63 = vld [vmem:[#allocation14 + $0x60] ss:$16 sps:$4 sm:$0xff]   ;;  %2369 = vmatprep.subr.bf16.mxu0 %v6557_v62 }
 0x6df   : > { %v2153_v62 = vld [vmem:[%s812_s19] sm:$0xff] }
 0x6e1   : > { %2076 = vmatpush1.bf16.msra.mxu1 %v6495_v0  ;;  %v6548_v0 = vld [vmem:[#allocation14 + $0x84] ss:$16 sps:$4 sm:$0xff]  }
 0x6e2   : > { %2077 = vmatprep.subr.bf16.mxu1 %v6500_v2  ;;  %v6555_v2 = vld [vmem:[#allocation13 + $0x30] ss:$8 sps:$4 sm:$0xff]  }
 0x6e3   : > { %2370 = vmatpush1.bf16.msra.mxu0 %v6555_v2  ;;  %v6620_v2 = vld [vmem:[#allocation13 + $0xe4] ss:$8 sps:$4 sm:$0xff]  }
 0x6e5   : > { %2078 = vmatpush1.bf16.msra.mxu1 %v6498_v3  ;;  %v6563_v3 = vld [vmem:[#allocation13 + $0x44] ss:$8 sps:$4 sm:$0xff]  }
 0x6e6   : > { %2079 = vmatprep.subr.bf16.mxu1 %v6503_v5  ;;  %v6546_v5 = vld [vmem:[#allocation14 + $0x80] ss:$16 sps:$4 sm:$0xff]   ;;  %2371 = vmatprep.subr.bf16.mxu0 %v6563_v3  ;;  %v6623_v3 = vld [vmem:[#allocation13 + $0xf4] ss:$8 sps:$4 sm:$0xff]  }
 0x6e9   : > { %2080 = vmatpush1.bf16.msra.mxu1 %v6501_v10  ;;  %v6554_v10 = vld [vmem:[#allocation14 + $0xa4] ss:$16 sps:$4 sm:$0xff]  }
 0x6ea   : > { %2081 = vmatprep.subr.bf16.mxu1 %v6506_v11  ;;  %v6561_v11 = vld [vmem:[#allocation13 + $0x40] ss:$8 sps:$4 sm:$0xff]  }
 0x6eb   : > { %2372 = vmatpush1.bf16.msra.mxu0 %v6561_v11 }
 0x6ed   : > { %2082 = vmatpush1.bf16.msra.mxu1 %v6504_v12  ;;  %v6569_v12 = vld [vmem:[#allocation13 + $0x54] ss:$8 sps:$4 sm:$0xff]  }
 0x6ee   : > { %2083 = vmatprep.subr.bf16.mxu1 %v6509_v13  ;;  %v6552_v13 = vld [vmem:[#allocation14 + $0xa0] ss:$16 sps:$4 sm:$0xff]   ;;  %2373 = vmatprep.subr.bf16.mxu0 %v6569_v12 }
 0x6f1   : > { %2084 = vmatpush1.bf16.msra.mxu1 %v6507_v15  ;;  %v6560_v15 = vld [vmem:[#allocation14 + $0xc4] ss:$16 sps:$4 sm:$0xff]  }
 0x6f2   : > { %2085 = vmatprep.subr.bf16.mxu1 %v6512_v16  ;;  %v6567_v16 = vld [vmem:[#allocation13 + $0x50] ss:$8 sps:$4 sm:$0xff]  }
 0x6f3   : > { %2374 = vmatpush1.bf16.msra.mxu0 %v6567_v16 }
 0x6f5   : > { %2086 = vmatpush1.bf16.msra.mxu1 %v6510_v17  ;;  %v6575_v17 = vld [vmem:[#allocation13 + $0x64] ss:$8 sps:$4 sm:$0xff]  }
 0x6f6   : > { %2087 = vmatprep.subr.bf16.mxu1 %v6515_v18  ;;  %v6558_v18 = vld [vmem:[#allocation14 + $0xc0] ss:$16 sps:$4 sm:$0xff]   ;;  %2375 = vmatprep.subr.bf16.mxu0 %v6575_v17 }
 0x6f9   : > { %2088 = vmatpush1.bf16.msra.mxu1 %v6513_v19  ;;  %v6566_v19 = vld [vmem:[#allocation14 + $0xe4] ss:$16 sps:$4 sm:$0xff]  }
 0x6fa   : > { %2089 = vmatprep.subr.bf16.mxu1 %v6518_v22  ;;  %v6573_v22 = vld [vmem:[#allocation13 + $0x60] ss:$8 sps:$4 sm:$0xff]  }
 0x6fb   : > { %2376 = vmatpush1.bf16.msra.mxu0 %v6573_v22 }
 0x6fd   : > { %2090 = vmatpush1.bf16.msra.mxu1 %v6516_v25  ;;  %v6581_v25 = vld [vmem:[#allocation13 + $0x74] ss:$8 sps:$4 sm:$0xff]  }
 0x6fe   : > { %2091 = vmatprep.subr.bf16.mxu1 %v6521_v26  ;;  %v6564_v26 = vld [vmem:[#allocation14 + $0xe0] ss:$16 sps:$4 sm:$0xff]   ;;  %2377 = vmatprep.subr.bf16.mxu0 %v6581_v25 }
 0x701   : > { %2092 = vmatpush1.bf16.msra.mxu1 %v6519_v27  ;;  %v6572_v27 = vld [vmem:[#allocation14 + $0x104] ss:$16 sps:$4 sm:$0xff]  }
 0x702   : > { %2093 = vmatprep.subr.bf16.mxu1 %v6524_v28  ;;  %v6579_v28 = vld [vmem:[#allocation13 + $0x70] ss:$8 sps:$4 sm:$0xff]  }
 0x703   : > { %2378 = vmatpush1.bf16.msra.mxu0 %v6579_v28 }
 0x705   : > { %2094 = vmatpush1.bf16.msra.mxu1 %v6522_v29  ;;  %v6587_v29 = vld [vmem:[#allocation13 + $0x84] ss:$8 sps:$4 sm:$0xff]  }
 0x706   : > { %2095 = vmatprep.subr.bf16.mxu1 %v6527_v30  ;;  %v6570_v30 = vld [vmem:[#allocation14 + $0x100] ss:$16 sps:$4 sm:$0xff]   ;;  %2379 = vmatprep.subr.bf16.mxu0 %v6587_v29 }
 0x709   : > { %2096 = vmatpush1.bf16.msra.mxu1 %v6525_v31  ;;  %v6578_v31 = vld [vmem:[#allocation14 + $0x124] ss:$16 sps:$4 sm:$0xff]  }
 0x70a   : > { %2812 = vmatprep.subr.bf16.mxu1 %v6530_v50  ;;  %v6602_v50 = vld [vmem:[#allocation14 + $0x1a4] ss:$16 sps:$4 sm:$0xff]  }
 0x79f   : > { %v1886_v32 = vpop.f32.mrb[16].mxu1 }
 0x7a0   : > { %v1893_v33 = vpack.c.bf16 %v1886_v32, %v1886_v32  ;;  %v6158_v14 = vpop.f32.mrb[17].mxu1  ;;  %v6585_v32 = vld [vmem:[#allocation13 + $0x80] ss:$8 sps:$4 sm:$0xff]  }
 0x7a1   : > { %v1889_v35 = vpop.f32.mrb[18].mxu1  ;;  %v6576_v14 = vld [vmem:[#allocation14 + $0x120] ss:$16 sps:$4 sm:$0xff]   ;;  %2380 = vmatpush1.bf16.msra.mxu0 %v6585_v32 }
 0x7a2   : > { %v6159_v36 = vpop.f32.mrb[19].mxu1  ;;  %2097 = vmatprep.mubr.bf16.mxu1 %v1893_v33  ;;  %v6593_v33 = vld [vmem:[#allocation13 + $0x94] ss:$8 sps:$4 sm:$0xff]   ;;  %v6591_v35 = vld [vmem:[#allocation13 + $0x90] ss:$8 sps:$4 sm:$0xff]  }
 0x7a3   : > { %2098 = vmatmul.mubr.bf16.vlgmr.msra.gmra.mrb[20].mxu1 %v1892_v34  ;;  %v6584_v34 = vld [vmem:[#allocation14 + $0x144] ss:$16 sps:$4 sm:$0xff]   ;;  %2381 = vmatprep.subr.bf16.mxu0 %v6593_v33  ;;  %v6582_v36 = vld [vmem:[#allocation14 + $0x140] ss:$16 sps:$4 sm:$0xff]  }
 0x7a4   : > { %2813 = vmatpush1.bf16.msra.mxu1 %v6528_v49  ;;  %v6597_v49 = vld [vmem:[#allocation13 + $0xa0] ss:$8 sps:$4 sm:$0xff]   ;;  %v7975_v33 = vld [vmem:[%s8178_s11] sm:$0xf] }
 0x7a5   : > { %2814 = vmatprep.subr.bf16.mxu1 %v6533_v51  ;;  %2382 = vmatpush1.bf16.msra.mxu0 %v6591_v35  ;;  %v6600_v51 = vld [vmem:[#allocation14 + $0x1a0] ss:$16 sps:$4 sm:$0xff]  }
 0x7a8   : > { %2815 = vmatpush1.bf16.msra.mxu1 %v6531_v54  ;;  %v6608_v54 = vld [vmem:[#allocation14 + $0x1c4] ss:$16 sps:$4 sm:$0xff]  }
 0x7a9   : > { %2816 = vmatprep.subr.bf16.mxu1 %v6536_v56  ;;  %v6614_v56 = vld [vmem:[#allocation14 + $0x1e4] ss:$16 sps:$4 sm:$0xff]  }
 0x7ac   : > { %2817 = vmatpush1.bf16.msra.mxu1 %v6534_v59  ;;  %v2154_v59 = vld [vmem:[%s812_s19 + $0x8] sm:$0xff] }
 0x7ad   : > { %2818 = vmatprep.subr.bf16.mxu1 %v6542_v60  ;;  %v6615_v60 = vld [vmem:[#allocation13 + $0xd0] ss:$8 sps:$4 sm:$0xff]   ;;  %v2156_v61 = vpack.c.bf16 %v2154_v59, %v2154_v59 }
 0x7ae   : > { %v6642_v59 = vld [vmem:[#allocation14 + $0xc8] ss:$16 sps:$4 sm:$0xff]  }
 0x7af   : > { %2844 = vmatprep.mubr.bf16.mxu1 %v2156_v61 }
 0x7b0   : > { %2819 = vmatpush1.bf16.msra.mxu1 %v6540_v63  ;;  %v7948_v63 = vpack.c.bf16 %v2153_v62, %v2153_v62  ;;  %v6650_v62 = vld [vmem:[#allocation14 + $0x10c] ss:$16 sps:$4 sm:$0xff]  }
 0x7b1   : > { %2820 = vmatprep.subr.bf16.mxu1 %v6548_v0  ;;  %v6618_v0 = vld [vmem:[#allocation13 + $0xe0] ss:$8 sps:$4 sm:$0xff]  }
 0x7b4   : > { %2821 = vmatpush1.bf16.msra.mxu1 %v6546_v5  ;;  %v6621_v5 = vld [vmem:[#allocation13 + $0xf0] ss:$8 sps:$4 sm:$0xff]  }
 0x7b5   : > { %2822 = vmatprep.subr.bf16.mxu1 %v6554_v10 }
 0x7b8   : > { %2823 = vmatpush1.bf16.msra.mxu1 %v6552_v13  ;;  %v2108_v13 = vld [vmem:[%s8181_s14] sm:$0x3] }
 0x7b9   : > { %2824 = vmatprep.subr.bf16.mxu1 %v6560_v15  ;;  %v2109_v15 = vld [vmem:[%s8182_s15] sm:$0x3]  ;;  %v2131_v16 = vrot.slane %v2108_v13, %v7877_v9  ;;  %v2135_v17 = vrot.slane %v2108_v13, %v7906_v24  ;;  %v6662_v13 = vld [vmem:[#allocation14 + $0x18c] ss:$16 sps:$4 sm:$0xff]  }
 0x7ba   : > { %v2144_v25 = vrot.slane %v2109_v15, %v7877_v9 }
 0x7bc   : > { %2825 = vmatpush1.bf16.msra.mxu1 %v6558_v18 }
 0x7bd   : > { %2826 = vmatprep.subr.bf16.mxu1 %v6566_v19 }
 0x7c0   : > { %2827 = vmatpush1.bf16.msra.mxu1 %v6564_v26  ;;  %v2148_v26 = vrot.slane %v2109_v15, %v7906_v24  ;;  %v6660_v15 = vld [vmem:[#allocation14 + $0x188] ss:$16 sps:$4 sm:$0xff]  }
 0x7c1   : > { %2828 = vmatprep.subr.bf16.mxu1 %v6572_v27 }
 0x7c4   : > { %2829 = vmatpush1.bf16.msra.mxu1 %v6570_v30 }
 0x7c5   : > { %2830 = vmatprep.subr.bf16.mxu1 %v6578_v31 }
 0x7c8   : > { %2831 = vmatpush1.bf16.msra.mxu1 %v6576_v14  ;;  %v2475_v14 = vrot.slane %v7975_v33, %v7877_v9 }
 0x7c9   : > { %2832 = vmatprep.subr.bf16.mxu1 %v6584_v34 }
 0x7cc   : > { %2833 = vmatpush1.bf16.msra.mxu1 %v6582_v36 }
 0x7cd   : > { %2834 = vmatprep.subr.bf16.mxu1 %v6590_v37 }
 0x876   : > { %v2099_v40 = vpop.f32.mrb[20].mxu1 }
 0x877   : > { %v2100_v41 = vadd.f32 %v2099_v40, %v1898_v38  ;;  %v2101_v20 = vpop.f32.mrb[21].mxu1  ;;  %v6588_v38 = vld [vmem:[#allocation14 + $0x160] ss:$16 sps:$4 sm:$0xff]  }
 0x878   : > { %v2102_v42 = vadd.f32 %v2101_v20, %v1902_v39  ;;  %v2103_v43 = vpop.f32.mrb[22].mxu1  ;;  %v6596_v39 = vld [vmem:[#allocation14 + $0x184] ss:$16 sps:$4 sm:$0xff]   ;;  %2835 = vmatpush1.bf16.msra.mxu1 %v6588_v38  ;;  %v6594_v40 = vld [vmem:[#allocation14 + $0x180] ss:$16 sps:$4 sm:$0xff]  }
 0x879   : > { %v7935_v8 = vadd.f32 %v6934_v44, %v2100_v41  ;;  %v2104_v45 = vpop.f32.mrb[23].mxu1  ;;  %2836 = vmatprep.subr.bf16.mxu1 %v6596_v39 }
 0x87a   : > { %v7938_v47 = vadd.f32 %v6935_v46, %v2102_v42 }
 0x87c   : > { %v2110_v48 = vadd.f32 %v7938_v47, %v7935_v8  ;;  %2837 = vmatpush1.bf16.msra.mxu1 %v6594_v40  ;;  %v7985_v40 = vld [vmem:[%s8270_s10] sm:$0x3]  ;;  %s5373_s10 = scalar_lea.sflag [#allocation4], %s7821_s22 }
 0x87d   : > { %2838 = vmatprep.subr.bf16.mxu1 %v6602_v50  ;;  %v6629_v50 = vld [vmem:[#allocation14 + $0x2c] ss:$16 sps:$4 sm:$0xff]  }
 0x87e   : > { %2111 = vadd.xlane.f32.xlu0 %v2110_v48  ;;  %v6599_v48 = vld [vmem:[#allocation13 + $0xa4] ss:$8 sps:$4 sm:$0xff]  }
 0x87f   : > { %2383 = vmatprep.subr.bf16.mxu0 %v6599_v48  ;;  %v6624_v48 = vld [vmem:[#allocation14 + $0x8] ss:$16 sps:$4 sm:$0xff]  }
 0x880   : > { %2384 = vmatpush1.bf16.msra.mxu0 %v6597_v49  ;;  %2839 = vmatpush1.bf16.msra.mxu1 %v6600_v51  ;;  %v6626_v49 = vld [vmem:[#allocation14 + $0xc] ss:$16 sps:$4 sm:$0xff]   ;;  %v6627_v51 = vld [vmem:[#allocation14 + $0x28] ss:$16 sps:$4 sm:$0xff]  }
 0x881   : > { %2385 = vmatprep.subr.bf16.mxu0 %v6605_v52  ;;  %2840 = vmatprep.subr.bf16.mxu1 %v6608_v54  ;;  %v6632_v52 = vld [vmem:[#allocation14 + $0x4c] ss:$16 sps:$4 sm:$0xff]  }
 0x882   : > { %v6635_v54 = vld [vmem:[#allocation14 + $0x6c] ss:$16 sps:$4 sm:$0xff]  }
 0x884   : > { %2386 = vmatpush1.bf16.msra.mxu0 %v6603_v53  ;;  %v6630_v53 = vld [vmem:[#allocation14 + $0x48] ss:$16 sps:$4 sm:$0xff]  }
 0x90b   : > { %v2112_v41 = vpop.xlane.xlu0 %2111 }
 0x90c   : > { %v2114_v20 = vmul.f32 0.00390625, %v2112_v41  ;;  %v2196_v41 = vrot.slane %v7985_v40, %v7877_v9 }
 0x90e   : > { %v2115_v42 = vsub.f32 %v7935_v8, %v2114_v20  ;;  %v2116_v43 = vsub.f32 %v7938_v47, %v2114_v20  ;;  %v6606_v8 = vld [vmem:[#allocation14 + $0x1c0] ss:$16 sps:$4 sm:$0xff]   ;;  %v6611_v47 = vld [vmem:[#allocation13 + $0xc4] ss:$8 sps:$4 sm:$0xff]  }
 0x90f   : > { %2841 = vmatpush1.bf16.msra.mxu1 %v6606_v8  ;;  %2387 = vmatprep.subr.bf16.mxu0 %v6611_v47  ;;  %v6633_v8 = vld [vmem:[#allocation14 + $0x68] ss:$16 sps:$4 sm:$0xff]   ;;  %v6638_v47 = vld [vmem:[#allocation14 + $0x8c] ss:$16 sps:$4 sm:$0xff]  }
 0x910   : > { %v2117_v44 = vmul.f32 %v2115_v42, %v2115_v42  ;;  %v2118_v45 = vmul.f32 %v2116_v43, %v2116_v43  ;;  %2388 = vmatpush1.bf16.msra.mxu0 %v6609_v55  ;;  %2842 = vmatprep.subr.bf16.mxu1 %v6614_v56  ;;  %v6636_v55 = vld [vmem:[#allocation14 + $0x88] ss:$16 sps:$4 sm:$0xff]   ;;  %v6641_v56 = vld [vmem:[#allocation14 + $0xac] ss:$16 sps:$4 sm:$0xff]  }
 0x911   : > { %2389 = vmatprep.subr.bf16.mxu0 %v6617_v58  ;;  %v6644_v58 = vld [vmem:[#allocation14 + $0xcc] ss:$16 sps:$4 sm:$0xff]  }
 0x912   : > { %v2119_v46 = vadd.f32 %v2118_v45, %v2117_v44 }
 0x913   : > { %2843 = vmatpush1.bf16.msra.mxu1 %v6612_v57  ;;  %v6639_v57 = vld [vmem:[#allocation14 + $0xa8] ss:$16 sps:$4 sm:$0xff]  }
 0x914   : > { %2120 = vadd.xlane.f32.xlu1 %v2119_v46  ;;  %6160 = vmatprep.subr.bf16.mxu1 %v7359_v4 }
 0x915   : > { %2390 = vmatpush1.bf16.msra.mxu0 %v6615_v60  ;;  %v6647_v60 = vld [vmem:[#allocation14 + $0xec] ss:$16 sps:$4 sm:$0xff]  }
 0x916   : > { %2845 = vmatmul.mubr.bf16.vlgmr.msra.gmra.mrb[24].mxu1 %v7948_v63  ;;  %2391 = vmatprep.subr.bf16.mxu0 %v6620_v2  ;;  %v6653_v2 = vld [vmem:[#allocation14 + $0x12c] ss:$16 sps:$4 sm:$0xff]  }
 0x917   : > { %6162 = vmatprep.mubr.msk.bf16.mxu1 %vm7360_vm0, %v7359_v4 }
 0x919   : > { %2392 = vmatpush1.bf16.msra.mxu0 %v6618_v0  ;;  %v6648_v0 = vld [vmem:[#allocation14 + $0x108] ss:$16 sps:$4 sm:$0xff]  }
 0x91a   : > { %2393 = vmatprep.subr.bf16.mxu0 %v6623_v3  ;;  %v6651_v3 = vld [vmem:[#allocation14 + $0x128] ss:$16 sps:$4 sm:$0xff]  }
 0x91d   : > { %2394 = vmatpush1.bf16.msra.mxu0 %v6621_v5  ;;  %v6656_v5 = vld [vmem:[#allocation14 + $0x14c] ss:$16 sps:$4 sm:$0xff]  }
 0x91e   : > { %2853 = vmatprep.subr.bf16.mxu0 %v6626_v49 }
 0x9a1   : > { %v2121_v10 = vpop.xlane.xlu1 %2120 }
 0x9a2   : > { %v2122_v11 = vmul.f32 0.00390625, %v2121_v10  ;;  %v6654_v10 = vld [vmem:[#allocation14 + $0x148] ss:$16 sps:$4 sm:$0xff]  }
 0x9a4   : > { %v2123_v12 = vadd.f32 1e-05, %v2122_v11  ;;  %v6659_v11 = vld [vmem:[#allocation14 + $0x16c] ss:$16 sps:$4 sm:$0xff]  }
 0x9a6   : > { %6920 = vrsqrt.f32 %v2123_v12  ;;  %v6657_v12 = vld [vmem:[#allocation14 + $0x168] ss:$16 sps:$4 sm:$0xff]  }
 0x9b0   : > { %v6921_v18 = vpop.eup %6920 }
 0x9b1   : > { %v2125_v19 = vmul.f32 %v6921_v18, %v2115_v42  ;;  %v2126_v22 = vmul.f32 %v6921_v18, %v2116_v43  ;;  %v6668_v18 = vld [vmem:[#allocation14 + $0x1cc] ss:$16 sps:$4 sm:$0xff]  }
 0x9b3   : > { %v2139_v27 = vmul.f32 %v2135_v17, %v2126_v22  ;;  %v2138_v28 = vmul.f32 %v2131_v16, %v2125_v19  ;;  %v6665_v16 = vld [vmem:[#allocation14 + $0x1ac] ss:$16 sps:$4 sm:$0xff]   ;;  %v6663_v17 = vld [vmem:[#allocation14 + $0x1a8] ss:$16 sps:$4 sm:$0xff]  }
 0x9b4   : > { %v6666_v19 = vld [vmem:[#allocation14 + $0x1c8] ss:$16 sps:$4 sm:$0xff]   ;;  %v6671_v22 = vld [vmem:[#allocation14 + $0x1ec] ss:$16 sps:$4 sm:$0xff]  }
 0x9b5   : > { %v7964_v29 = vadd.f32 %v2148_v26, %v2139_v27  ;;  %v7966_v30 = vadd.f32 %v2144_v25, %v2138_v28  ;;  %v6669_v25 = vld [vmem:[#allocation14 + $0x1e8] ss:$16 sps:$4 sm:$0xff]  }
 0x9b6   : > { %v2931_v26 = vld [vmem:[%s8271_s3] sm:$0xff] }
 0x9b7   : > { %v2158_v31 = vpack.c.bf16 %v7964_v29, %v7964_v29  ;;  %v2157_v32 = vpack.c.bf16 %v7966_v30, %v7966_v30 }
 0x9b9   : > { %2395 = vmatprep.mubr.bf16.mxu0 %v2158_v31 }
 0x9ba   : > { %2396 = vmatmul.mubr.bf16.vlgmr.msra.gmra.mrb[8].mxu0 %v2157_v32 }
 0x9bb   : > { %2885 = vmatprep.mubr.bf16.mxu0 %v2156_v61  ;;  %2854 = vmatpush1.bf16.msra.mxu0 %v6624_v48  ;;  %v6645_v61 = vld [vmem:[#allocation14 + $0xe8] ss:$16 sps:$4 sm:$0xff]  }
 0x9bc   : > { %2855 = vmatprep.subr.bf16.mxu0 %v6629_v50 }
 0x9bf   : > { %2856 = vmatpush1.bf16.msra.mxu0 %v6627_v51  ;;  %v2479_v51 = vrot.slane %v7975_v33, %v7906_v24 }
 0x9c0   : > { %2857 = vmatprep.subr.bf16.mxu0 %v6632_v52 }
 0x9c3   : > { %2858 = vmatpush1.bf16.msra.mxu0 %v6630_v53 }
 0x9c4   : > { %2859 = vmatprep.subr.bf16.mxu0 %v6635_v54  ;;  %v2487_v54 = vrot.slane %v7975_v33, %v7900_v21 }
 0x9c7   : > { %2860 = vmatpush1.bf16.msra.mxu0 %v6633_v8 }
 0x9c8   : > { %2861 = vmatprep.subr.bf16.mxu0 %v6638_v47  ;;  %v2200_v47 = vrot.slane %v7985_v40, %v7906_v24 }
 0x9cb   : > { %2862 = vmatpush1.bf16.msra.mxu0 %v6636_v55 }
 0x9cc   : > { %2863 = vmatprep.subr.bf16.mxu0 %v6641_v56 }
 0x9cf   : > { %2864 = vmatpush1.bf16.msra.mxu0 %v6639_v57 }
 0x9d0   : > { %2865 = vmatprep.subr.bf16.mxu0 %v6644_v58 }
 0x9d3   : > { %2866 = vmatpush1.bf16.msra.mxu0 %v6642_v59 }
 0x9d4   : > { %2867 = vmatprep.subr.bf16.mxu0 %v6647_v60 }
 0x9d7   : > { %2868 = vmatpush1.bf16.msra.mxu0 %v6645_v61 }
 0x9d8   : > { %2869 = vmatprep.subr.bf16.mxu0 %v6650_v62 }
 0x9db   : > { %2870 = vmatpush1.bf16.msra.mxu0 %v6648_v0 }
 0x9dc   : > { %2871 = vmatprep.subr.bf16.mxu0 %v6653_v2 }
 0x9df   : > { %2872 = vmatpush1.bf16.msra.mxu0 %v6651_v3 }
 0x9e0   : > { %2873 = vmatprep.subr.bf16.mxu0 %v6656_v5 }
 0x9e3   : > { %2874 = vmatpush1.bf16.msra.mxu0 %v6654_v10 }
 0x9e4   : > { %2875 = vmatprep.subr.bf16.mxu0 %v6659_v11 }
 0x9e7   : > { %2876 = vmatpush1.bf16.msra.mxu0 %v6657_v12 }
 0x9e8   : > { %2877 = vmatprep.subr.bf16.mxu0 %v6662_v13 }
 0x9e9   : > { %v2846_v34 = vpop.f32.mrb[24].mxu1 }
 0x9ea   : > { %v2847_v35 = vadd.f32 %v2846_v34, %v2475_v14  ;;  %v7979_v36 = vpop.f32.mrb[25].mxu1 }
 0x9eb   : > { %v2850_v37 = vpop.f32.mrb[26].mxu1  ;;  %2878 = vmatpush1.bf16.msra.mxu0 %v6660_v15  ;;  %v2849_v53 = vadd.f32 %v7979_v36, %v2479_v51  ;;  %v6711_v51 = vld [vmem:[#allocation16 + $0xd0] ss:$8 sps:$4 sm:$0xff]  }
 0x9ec   : > { %v2894_v38 = vpack.c.bf16 %v2847_v35, %v2847_v35  ;;  %v2851_v39 = vpop.f32.mrb[27].mxu1  ;;  %2879 = vmatprep.subr.bf16.mxu0 %v6665_v16  ;;  %v6672_v16 = vld [vmem:[#allocation16] ss:$8 sps:$4 sm:$0xff]  }
 0x9ed   : > { %v2483_v39 = vrot.slane %v7975_v33, %v7872_v7  ;;  %v2895_v56 = vpack.c.bf16 %v2849_v53, %v2849_v53  ;;  %v6714_v53 = vld [vmem:[#allocation16 + $0xe0] ss:$8 sps:$4 sm:$0xff]  }
 0x9ee   : > { %6161 = vmatpush3.bf16.xpose.msra.mxu1 %v2894_v38 }
 0x9ef   : > { %6166 = vmatprep.subr.bf16.mxu1 %v7359_v4  ;;  %2880 = vmatpush1.bf16.msra.mxu0 %v6663_v17  ;;  %v6674_v17 = vld [vmem:[#allocation16 + $0x4] ss:$8 sps:$4 sm:$0xff]  }
 0x9f0   : > { %2881 = vmatprep.subr.bf16.mxu0 %v6668_v18  ;;  %v6677_v18 = vld [vmem:[#allocation16 + $0x14] ss:$8 sps:$4 sm:$0xff]  }
 0x9f3   : > { %2882 = vmatpush1.bf16.msra.mxu0 %v6666_v19  ;;  %v6675_v19 = vld [vmem:[#allocation16 + $0x10] ss:$8 sps:$4 sm:$0xff]  }
 0x9f4   : > { %2883 = vmatprep.subr.bf16.mxu0 %v6671_v22  ;;  %v6680_v22 = vld [vmem:[#allocation16 + $0x24] ss:$8 sps:$4 sm:$0xff]  }
 0x9f7   : > { %2884 = vmatpush1.bf16.msra.mxu0 %v6669_v25  ;;  %v6678_v25 = vld [vmem:[#allocation16 + $0x20] ss:$8 sps:$4 sm:$0xff]  }
 0x9f8   : > { %3301 = vmatprep.subr.bf16.mxu0 %v6674_v17  ;;  %v3391_v17 = vld [vmem:[#allocation17 + $0x8] sm:$0xff] }
 0x9fa   : > { %2886 = vmatmul.mubr.bf16.vlgmr.msra.gmra.mrb[12].mxu0 %v7948_v63 }
 0x9fb   : > { %3302 = vmatpush1.bf16.msra.mxu0 %v6672_v16  ;;  %v3394_v16 = vld [vmem:[#allocation17 + $0x20] sm:$0xff] }
 0x9fc   : > { %3303 = vmatprep.subr.bf16.mxu0 %v6677_v18 }
 0x9ff   : > { %3304 = vmatpush1.bf16.msra.mxu0 %v6675_v19 }
 0xa00   : > { %3305 = vmatprep.subr.bf16.mxu0 %v6680_v22  ;;  %v3395_v22 = vld [vmem:[#allocation17 + $0x28] sm:$0xff] }
 0xa03   : > { %3306 = vmatpush1.bf16.msra.mxu0 %v6678_v25  ;;  %v3398_v25 = vld [vmem:[#allocation17 + $0x40] sm:$0xff] }
 0xa8d   : > { %v2397_v20 = vpop.f32.mrb[8].mxu0 }
 0xa8e   : > { %v2398_v42 = vadd.f32 %v2397_v20, %v2196_v41  ;;  %v7989_v43 = vpop.f32.mrb[9].mxu0 }
 0xa8f   : > { %v2401_v44 = vpop.f32.mrb[10].mxu0  ;;  %v2400_v58 = vadd.f32 %v7989_v43, %v2200_v47 }
 0xa90   : > { %v2404_v45 = vpack.c.bf16 %v2398_v42, %v2398_v42  ;;  %v2402_v46 = vpop.f32.mrb[11].mxu0 }
 0xa91   : > { %v2405_v59 = vpack.c.bf16 %v2400_v58, %v2400_v58 }
 0xa92   : > { %6163 = vmatmul.mubr.bf16.vlgmr.msra.gmra.mrb[28].mxu1 %v2404_v45 }
 0xa93   : > { %6168 = vmatprep.mubr.msk.bf16.mxu1 %vm7360_vm0, %v7359_v4 }
 0xacd   : > { %v2887_v63 = vpop.f32.mrb[12].mxu0 }
 0xace   : > { %v2888_v41 = vadd.f32 %v2887_v63, %v2483_v39  ;;  %v2889_v20 = vpop.f32.mrb[13].mxu0  ;;  %v6698_v39 = vld [vmem:[#allocation16 + $0x84] ss:$8 sps:$4 sm:$0xff]   ;;  %v6696_v63 = vld [vmem:[#allocation16 + $0x80] ss:$8 sps:$4 sm:$0xff]  }
 0xacf   : > { %v2891_v42 = vpop.f32.mrb[14].mxu0  ;;  %v2890_v57 = vadd.f32 %v2889_v20, %v2487_v54  ;;  %v6699_v20 = vld [vmem:[#allocation16 + $0x90] ss:$8 sps:$4 sm:$0xff]  }
 0xad0   : > { %v2896_v44 = vpack.c.bf16 %v2888_v41, %v2888_v41  ;;  %v2892_v45 = vpop.f32.mrb[15].mxu0  ;;  %v6701_v41 = vld [vmem:[#allocation16 + $0x94] ss:$8 sps:$4 sm:$0xff]   ;;  %v6704_v42 = vld [vmem:[#allocation16 + $0xa4] ss:$8 sps:$4 sm:$0xff]  }
 0xad1   : > { %v2897_v36 = vpack.c.bf16 %v2890_v57, %v2890_v57  ;;  %v6707_v45 = vld [vmem:[#allocation16 + $0xb4] ss:$8 sps:$4 sm:$0xff]   ;;  %v6717_v57 = vld [vmem:[#allocation16 + $0xf0] ss:$8 sps:$4 sm:$0xff]  }
 0xad2   : > { %v2988_v46 = vsel %vm1750_vm2, %v2896_v44, 0  ;;  %v6702_v44 = vld [vmem:[#allocation16 + $0xa0] ss:$8 sps:$4 sm:$0xff]  }
 0xad3   : > { %6167 = vmatpush3.bf16.msra.mxu1 %v2988_v46  ;;  %v3086_v33 = vsel %vm1750_vm2, %v2897_v36, 0  ;;  %v6705_v46 = vld [vmem:[#allocation16 + $0xb0] ss:$8 sps:$4 sm:$0xff]  }
 0xad4   : > { %6172 = vmatprep.subr.bf16.mxu1 %v7359_v4 }
 0xb65   : > { %v2966_v27 = vpop.f32.mrb[28].mxu1 }
 0xb66   : > { %v2967_v28 = vadd.f32 %v2966_v27, %v2931_v26  ;;  %v6164_v31 = vpop.f32.mrb[29].mxu1  ;;  %v6681_v27 = vld [vmem:[#allocation16 + $0x30] ss:$8 sps:$4 sm:$0xff]  }
 0xb67   : > { %v2969_v32 = vpop.f32.mrb[30].mxu1  ;;  %v6684_v31 = vld [vmem:[#allocation16 + $0x40] ss:$8 sps:$4 sm:$0xff]  }
 0xb68   : > { %v6165_v14 = vpop.f32.mrb[31].mxu1  ;;  %v2972_v34 = vsel %vm1734_vm1, %v2967_v28, -inf  ;;  %v6689_v32 = vld [vmem:[#allocation16 + $0x54] ss:$8 sps:$4 sm:$0xff]  }
 0xb69   : > { %2973 = vmax.xlane.f32.xlu0 %v2972_v34  ;;  %v6687_v14 = vld [vmem:[#allocation16 + $0x50] ss:$8 sps:$4 sm:$0xff]   ;;  %v6692_v34 = vld [vmem:[#allocation16 + $0x64] ss:$8 sps:$4 sm:$0xff]  }
 0xbf6   : > { %v2974_v35 = vpop.xlane.xlu0 %2973 }
 0xbf7   : > { %v2975_v37 = vsub.f32 %v2967_v28, %v2974_v35  ;;  %v6686_v28 = vld [vmem:[#allocation16 + $0x44] ss:$8 sps:$4 sm:$0xff]   ;;  %v6690_v35 = vld [vmem:[#allocation16 + $0x60] ss:$8 sps:$4 sm:$0xff]  }
 0xbf9   : > { %v2976_v38 = vmul.f32 1.442695, %v2975_v37  ;;  %v6695_v37 = vld [vmem:[#allocation16 + $0x74] ss:$8 sps:$4 sm:$0xff]  }
 0xbfb   : > { %6922 = vpow2.f32 %v2976_v38  ;;  %v6693_v38 = vld [vmem:[#allocation16 + $0x70] ss:$8 sps:$4 sm:$0xff]  }
 0xc05   : > { %v6923_v48 = vpop.eup %6922 }
 0xc06   : > { %v2978_v49 = vsel %vm1734_vm1, %v6923_v48, 0.0 }
 0xc07   : > { %2979 = vadd.xlane.f32.xlu1 %v2978_v49  ;;  %v6708_v49 = vld [vmem:[#allocation16 + $0xc0] ss:$8 sps:$4 sm:$0xff]  }
 0xc94   : > { %v2980_v50 = vpop.xlane.xlu1 %2979 }
 0xc95   : > { %6924 = vrcp.f32 %v2980_v50  ;;  %v6713_v50 = vld [vmem:[#allocation16 + $0xd4] ss:$8 sps:$4 sm:$0xff]  }
 0xc9f   : > { %v6925_v52 = vpop.eup %6924 }
 0xca0   : > { %v2982_v8 = vmul.f32 %v6925_v52, %v6923_v48  ;;  %v6710_v48 = vld [vmem:[#allocation16 + $0xc4] ss:$8 sps:$4 sm:$0xff]  }
 0xca1   : > { %v6716_v52 = vld [vmem:[#allocation16 + $0xe4] ss:$8 sps:$4 sm:$0xff]  }
 0xca2   : > { %v2983_v55 = vpack.c.bf16 %v2982_v8, %v2982_v8 }
 0xca4   : > { %6169 = vmatmul.mubr.msk.bf16.vlgmr.msra.gmra.mrb[32].mxu1 %vm1734_vm1, %v2983_v55 }
 0xca5   : > { %6173 = vmatpush3.bf16.xpose.msra.mxu1 %v2895_v56  ;;  %6174 = vmatprep.mubr.msk.bf16.mxu1 %vm7360_vm0, %v7359_v4  ;;  %v6719_v56 = vld [vmem:[#allocation16 + $0xf4] ss:$8 sps:$4 sm:$0xff]  }
 0xca6   : > { %6178 = vmatprep.subr.bf16.mxu1 %v7359_v4 }
 0xcac   : > { %6175 = vmatmul.mubr.bf16.vlgmr.msra.gmra.mrb[36].mxu1 %v2405_v59 }
 0xcad   : > { %6179 = vmatpush3.bf16.msra.mxu1 %v3086_v33  ;;  %6180 = vmatprep.mubr.msk.bf16.mxu1 %vm7360_vm0, %v7359_v4 }
 0xd77   : > { %v8018_v40 = vpop.f32.mrb[32].mxu1 }
 0xd78   : > { %v6170_v60 = vpop.f32.mrb[33].mxu1  ;;  %v3128_v33 = vpack.c.bf16 %v8018_v40, %v8018_v40 }
 0xd79   : > { %v3027_v61 = vpop.f32.mrb[34].mxu1 }
 0xd7a   : > { %v6171_v62 = vpop.f32.mrb[35].mxu1 }
 0xd7b   : > { %v2930_v62 = vld [vmem:[%s8272_s9] sm:$0x3] }
 0xd7f   : > { %v3064_v0 = vpop.f32.mrb[36].mxu1 }
 0xd80   : > { %v3065_v2 = vadd.f32 %v3064_v0, %v2931_v26  ;;  %v6176_v3 = vpop.f32.mrb[37].mxu1  ;;  %v6683_v26 = vld [vmem:[#allocation16 + $0x34] ss:$8 sps:$4 sm:$0xff]   ;;  %v3134_v0 = vrot.slane %v2930_v62, %v7877_v9 }
 0xd81   : > { %v3067_v43 = vpop.f32.mrb[38].mxu1  ;;  %3307 = vmatprep.subr.bf16.mxu0 %v6683_v26  ;;  %v3402_v26 = vld [vmem:[#allocation17 + $0x60] sm:$0xff] }
 0xd82   : > { %v6177_v5 = vpop.f32.mrb[39].mxu1  ;;  %v3070_v10 = vsel %vm1734_vm1, %v3065_v2, -inf  ;;  %3308 = vmatpush1.bf16.msra.mxu0 %v6681_v27  ;;  %v5858_v27 = vcombine.low %v3391_v17, %v3395_v22 }
 0xd83   : > { %3071 = vmax.xlane.f32.xlu0 %v3070_v10  ;;  %3309 = vmatprep.subr.bf16.mxu0 %v6686_v28  ;;  %v5859_v28 = vcombine.high %v3391_v17, %v3395_v22  ;;  %v3451_v17 = vld [vmem:[#allocation17 + $0x1e8] sm:$0xff] }
 0xd86   : > { %3310 = vmatpush1.bf16.msra.mxu0 %v6684_v31  ;;  %v3399_v31 = vld [vmem:[#allocation17 + $0x48] sm:$0xff] }
 0xd87   : > { %3311 = vmatprep.subr.bf16.mxu0 %v6689_v32  ;;  %v3403_v32 = vld [vmem:[#allocation17 + $0x68] sm:$0xff] }
 0xd8a   : > { %3312 = vmatpush1.bf16.msra.mxu0 %v6687_v14  ;;  %v3406_v14 = vld [vmem:[#allocation17 + $0x80] sm:$0xff] }
 0xd8b   : > { %3313 = vmatprep.subr.bf16.mxu0 %v6692_v34  ;;  %v3410_v34 = vld [vmem:[#allocation17 + $0xa0] sm:$0xff] }
 0xd8e   : > { %3314 = vmatpush1.bf16.msra.mxu0 %v6690_v35  ;;  %v3407_v35 = vld [vmem:[#allocation17 + $0x88] sm:$0xff] }
 0xd8f   : > { %3315 = vmatprep.subr.bf16.mxu0 %v6695_v37  ;;  %v3411_v37 = vld [vmem:[#allocation17 + $0xa8] sm:$0xff] }
 0xd92   : > { %3316 = vmatpush1.bf16.msra.mxu0 %v6693_v38  ;;  %v5864_v38 = vcombine.low %v3398_v25, %v3402_v26 }
 0xd93   : > { %3317 = vmatprep.subr.bf16.mxu0 %v6698_v39  ;;  %v5866_v39 = vcombine.low %v3399_v31, %v3403_v32 }
 0xd96   : > { %3318 = vmatpush1.bf16.msra.mxu0 %v6696_v63  ;;  %v5873_v63 = vcombine.high %v3406_v14, %v3410_v34 }
 0xd97   : > { %3319 = vmatprep.subr.bf16.mxu0 %v6701_v41  ;;  %v5875_v41 = vcombine.high %v3407_v35, %v3411_v37 }
 0xd9a   : > { %3320 = vmatpush1.bf16.msra.mxu0 %v6699_v20  ;;  %v3414_v20 = vld [vmem:[#allocation17 + $0xc0] sm:$0xff] }
 0xd9b   : > { %3321 = vmatprep.subr.bf16.mxu0 %v6704_v42  ;;  %v3418_v42 = vld [vmem:[#allocation17 + $0xe0] sm:$0xff] }
 0xd9e   : > { %3322 = vmatpush1.bf16.msra.mxu0 %v6702_v44  ;;  %v3415_v44 = vld [vmem:[#allocation17 + $0xc8] sm:$0xff] }
 0xd9f   : > { %3323 = vmatprep.subr.bf16.mxu0 %v6707_v45  ;;  %v3419_v45 = vld [vmem:[#allocation17 + $0xe8] sm:$0xff] }
 0xda2   : > { %3324 = vmatpush1.bf16.msra.mxu0 %v6705_v46  ;;  %v5872_v46 = vcombine.low %v3406_v14, %v3410_v34  ;;  %v3462_v34 = vld [vmem:[#allocation17 + $0x240] sm:$0xff] }
 0xda3   : > { %3325 = vmatprep.subr.bf16.mxu0 %v6710_v48  ;;  %v5874_v48 = vcombine.low %v3407_v35, %v3411_v37  ;;  %v3466_v35 = vld [vmem:[#allocation17 + $0x260] sm:$0xff]  ;;  %v3463_v37 = vld [vmem:[#allocation17 + $0x248] sm:$0xff] }
 0xda6   : > { %3326 = vmatpush1.bf16.msra.mxu0 %v6708_v49  ;;  %v5881_v49 = vcombine.high %v3414_v20, %v3418_v42 }
 0xda7   : > { %3327 = vmatprep.subr.bf16.mxu0 %v6713_v50  ;;  %v5883_v50 = vcombine.high %v3415_v44, %v3419_v45 }
 0xdaa   : > { %3328 = vmatpush1.bf16.msra.mxu0 %v6711_v51  ;;  %v3422_v51 = vld [vmem:[#allocation17 + $0x100] sm:$0xff] }
 0xdab   : > { %3329 = vmatprep.subr.bf16.mxu0 %v6716_v52  ;;  %v3426_v52 = vld [vmem:[#allocation17 + $0x120] sm:$0xff] }
 0xdae   : > { %3330 = vmatpush1.bf16.msra.mxu0 %v6714_v53  ;;  %v3423_v53 = vld [vmem:[#allocation17 + $0x108] sm:$0xff] }
 0xdaf   : > { %3331 = vmatprep.subr.bf16.mxu0 %v6719_v56 }
 0xdb2   : > { %3332 = vmatpush1.bf16.msra.mxu0 %v6717_v57  ;;  %v3430_v57 = vld [vmem:[#allocation17 + $0x140] sm:$0xff] }
 0xdb3   : > { %4241 = vmatprep.subr.bf16.mxu0 %v5859_v28  ;;  %v3455_v28 = vld [vmem:[#allocation17 + $0x208] sm:$0xff] }
 0xe10   : > { %v3072_v11 = vpop.xlane.xlu0 %3071 }
 0xe11   : > { %v3073_v12 = vsub.f32 %v3065_v2, %v3072_v11  ;;  %v3138_v2 = vrot.slane %v2930_v62, %v7906_v24 }
 0xe13   : > { %v3074_v13 = vmul.f32 1.442695, %v3073_v12 }
 0xe15   : > { %6926 = vpow2.f32 %v3074_v13 }
 0xe1f   : > { %v8021_v15 = vpop.eup %6926 }
 0xe20   : > { %v3076_v4 = vsel %vm1734_vm1, %v8021_v15, 0.0 }
 0xe21   : > { %3077 = vadd.xlane.f32.xlu1 %v3076_v4  ;;  %v3390_v4 = vld [vmem:[#allocation17] sm:$0xff] }
 0xe22   : > { %v5856_v18 = vcombine.low %v3390_v4, %v3394_v16  ;;  %v5857_v19 = vcombine.high %v3390_v4, %v3394_v16  ;;  %v3450_v4 = vld [vmem:[#allocation17 + $0x1e0] sm:$0xff]  ;;  %v3447_v16 = vld [vmem:[#allocation17 + $0x1c8] sm:$0xff] }
 0xe24   : > { %4200 = vmatprep.subr.bf16.mxu1 %v5857_v19 }
 0xeae   : > { %v3078_v54 = vpop.xlane.xlu1 %3077 }
 0xeaf   : > { %6928 = vrcp.f32 %v3078_v54  ;;  %v3427_v54 = vld [vmem:[#allocation17 + $0x128] sm:$0xff] }
 0xeb0   : > { %v5891_v56 = vcombine.high %v3423_v53, %v3427_v54 }
 0xeb9   : > { %v6929_v8 = vpop.eup %6928 }
 0xeba   : > { %v3080_v47 = vmul.f32 %v6929_v8, %v8021_v15  ;;  %v5880_v8 = vcombine.low %v3414_v20, %v3418_v42  ;;  %v3470_v42 = vld [vmem:[#allocation17 + $0x280] sm:$0xff] }
 0xebc   : > { %v3081_v55 = vpack.c.bf16 %v3080_v47, %v3080_v47  ;;  %v5882_v47 = vcombine.low %v3415_v44, %v3419_v45  ;;  %v3474_v44 = vld [vmem:[#allocation17 + $0x2a0] sm:$0xff]  ;;  %v3471_v45 = vld [vmem:[#allocation17 + $0x288] sm:$0xff] }
 0xebe   : > { %6181 = vmatmul.mubr.msk.bf16.vlgmr.msra.gmra.mrb[40].mxu1 %vm1734_vm1, %v3081_v55  ;;  %v5889_v55 = vcombine.high %v3422_v51, %v3426_v52 }
 0xebf   : > { %4201 = vmatpush1.bf16.msra.mxu1 %v5856_v18 }
 0xf91   : > { %v3122_v58 = vpop.f32.mrb[40].mxu1 }
 0xf92   : > { %v3129_v36 = vpack.c.bf16 %v3122_v58, %v3122_v58  ;;  %v6182_v59 = vpop.f32.mrb[41].mxu1  ;;  %v3434_v58 = vld [vmem:[#allocation17 + $0x160] sm:$0xff] }
 0xf93   : > { %v3125_v60 = vpop.f32.mrb[42].mxu1  ;;  %v3435_v59 = vld [vmem:[#allocation17 + $0x168] sm:$0xff] }
 0xf94   : > { %v6183_v61 = vpop.f32.mrb[43].mxu1  ;;  %3333 = vmatprep.mubr.bf16.mxu0 %v3129_v36  ;;  %v3431_v36 = vld [vmem:[#allocation17 + $0x148] sm:$0xff]  ;;  %v5890_v60 = vcombine.low %v3423_v53, %v3427_v54 }
 0xf95   : > { %3334 = vmatmul.mubr.bf16.vlgmr.msra.gmra.mrb[16].mxu0 %v3128_v33  ;;  %v5888_v33 = vcombine.low %v3422_v51, %v3426_v52  ;;  %v5897_v61 = vcombine.high %v3430_v57, %v3434_v58  ;;  %v5899_v62 = vcombine.high %v3431_v36, %v3435_v59  ;;  %v5936_v52 = vcombine.low %v3470_v42, %v3474_v44 }
 0xf96   : > { %4242 = vmatpush1.bf16.msra.mxu0 %v5858_v27  ;;  %v3458_v27 = vld [vmem:[#allocation17 + $0x220] sm:$0xff] }
0x1068   : > { %v3335_v3 = vpop.f32.mrb[16].mxu0 }
0x1069   : > { %v3336_v43 = vadd.f32 %v3335_v3, %v3134_v0  ;;  %v3337_v5 = vpop.f32.mrb[17].mxu0  ;;  %v3438_v0 = vld [vmem:[#allocation17 + $0x180] sm:$0xff]  ;;  %v3439_v3 = vld [vmem:[#allocation17 + $0x188] sm:$0xff] }
0x106a   : > { %v3338_v10 = vadd.f32 %v3337_v5, %v3138_v2  ;;  %v3339_v11 = vpop.f32.mrb[18].mxu0  ;;  %v3442_v2 = vld [vmem:[#allocation17 + $0x1a0] sm:$0xff]  ;;  %v5896_v5 = vcombine.low %v3430_v57, %v3434_v58 }
0x106b   : > { %v8035_v12 = vadd.f32 %v3336_v43, %v7966_v30  ;;  %v3340_v40 = vpop.f32.mrb[19].mxu0  ;;  %v5865_v30 = vcombine.high %v3398_v25, %v3402_v26  ;;  %v3443_v43 = vld [vmem:[#allocation17 + $0x1a8] sm:$0xff]  ;;  %v5905_v11 = vcombine.high %v3438_v0, %v3442_v2  ;;  %v5904_v18 = vcombine.low %v3438_v0, %v3442_v2  ;;  %v3454_v26 = vld [vmem:[#allocation17 + $0x200] sm:$0xff] }
0x106c   : > { %v8038_v13 = vadd.f32 %v3338_v10, %v7964_v29  ;;  %v5867_v29 = vcombine.high %v3399_v31, %v3403_v32  ;;  %v5898_v10 = vcombine.low %v3431_v36, %v3435_v59  ;;  %v5907_v40 = vcombine.high %v3439_v3, %v3443_v43  ;;  %v3478_v36 = vld [vmem:[#allocation17 + $0x2c0] sm:$0xff] }
0x106d   : > { %4202 = vmatprep.subr.bf16.mxu1 %v5865_v30  ;;  %v5906_v19 = vcombine.low %v3439_v3, %v3443_v43  ;;  %v5915_v25 = vcombine.high %v3447_v16, %v3451_v17  ;;  %v3459_v30 = vld [vmem:[#allocation17 + $0x228] sm:$0xff]  ;;  %v5914_v32 = vcombine.low %v3447_v16, %v3451_v17  ;;  %v5921_v14 = vcombine.high %v3454_v26, %v3458_v27  ;;  %v3482_v59 = vld [vmem:[#allocation17 + $0x2e0] sm:$0xff] }
0x106e   : > { %v3346_v15 = vadd.f32 %v8038_v13, %v8035_v12  ;;  %4243 = vmatprep.subr.bf16.mxu0 %v5867_v29  ;;  %4203 = vmatpush1.bf16.msra.mxu1 %v5864_v38  ;;  %v5923_v29 = vcombine.high %v3455_v28, %v3459_v30  ;;  %v3467_v38 = vld [vmem:[#allocation17 + $0x268] sm:$0xff]  ;;  %v3490_v2 = vld [vmem:[#allocation17 + $0x320] sm:$0xff] }
0x106f   : > { %4244 = vmatpush1.bf16.msra.mxu0 %v5866_v39  ;;  %4204 = vmatprep.subr.bf16.mxu1 %v5873_v63  ;;  %v5920_v39 = vcombine.low %v3454_v26, %v3458_v27  ;;  %v5922_v63 = vcombine.low %v3455_v28, %v3459_v30  ;;  %v5931_v20 = vcombine.high %v3463_v37, %v3467_v38  ;;  %v3487_v3 = vld [vmem:[#allocation17 + $0x308] sm:$0xff]  ;;  %v3502_v26 = vld [vmem:[#allocation17 + $0x380] sm:$0xff] }
0x1070   : > { %3347 = vadd.xlane.f32.xlu0 %v3346_v15  ;;  %4245 = vmatprep.subr.bf16.mxu0 %v5875_v41  ;;  %v3446_v15 = vld [vmem:[#allocation17 + $0x1c0] sm:$0xff]  ;;  %v5929_v41 = vcombine.high %v3462_v34, %v3466_v35  ;;  %v3495_v16 = vld [vmem:[#allocation17 + $0x348] sm:$0xff] }
0x1071   : > { %v5913_v22 = vcombine.high %v3446_v15, %v3450_v4  ;;  %v5912_v31 = vcombine.low %v3446_v15, %v3450_v4  ;;  %v3494_v15 = vld [vmem:[#allocation17 + $0x340] sm:$0xff]  ;;  %v3503_v28 = vld [vmem:[#allocation17 + $0x388] sm:$0xff] }
0x1072   : > { %4205 = vmatpush1.bf16.msra.mxu1 %v5872_v46  ;;  %v3475_v46 = vld [vmem:[#allocation17 + $0x2a8] sm:$0xff]  ;;  %v3498_v4 = vld [vmem:[#allocation17 + $0x360] sm:$0xff] }
0x1073   : > { %4246 = vmatpush1.bf16.msra.mxu0 %v5874_v48  ;;  %4206 = vmatprep.subr.bf16.mxu1 %v5881_v49  ;;  %v5928_v48 = vcombine.low %v3462_v34, %v3466_v35  ;;  %v5930_v49 = vcombine.low %v3463_v37, %v3467_v38  ;;  %v5939_v51 = vcombine.high %v3471_v45, %v3475_v46  ;;  %v3506_v27 = vld [vmem:[#allocation17 + $0x3a0] sm:$0xff]  ;;  %v3511_v37 = vld [vmem:[#allocation17 + $0x3c8] sm:$0xff] }
0x1074   : > { %4247 = vmatprep.subr.bf16.mxu0 %v5883_v50  ;;  %v5937_v50 = vcombine.high %v3470_v42, %v3474_v44  ;;  %v5938_v53 = vcombine.low %v3471_v45, %v3475_v46  ;;  %v5961_v17 = vcombine.high %v3494_v15, %v3498_v4  ;;  %v5969_v30 = vcombine.high %v3502_v26, %v3506_v27  ;;  %v3510_v34 = vld [vmem:[#allocation17 + $0x3c0] sm:$0xff]  ;;  %v3392_v42 = vld [vmem:[#allocation17 + $0x10] sm:$0xff]  ;;  %v3393_v45 = vld [vmem:[#allocation17 + $0x18] sm:$0xff] }
0x1075   : > { %v3514_v35 = vld [vmem:[#allocation17 + $0x3e0] sm:$0xff]  ;;  %v3396_v44 = vld [vmem:[#allocation17 + $0x30] sm:$0xff] }
0x1076   : > { %4207 = vmatpush1.bf16.msra.mxu1 %v5880_v8  ;;  %v5977_v38 = vcombine.high %v3510_v34, %v3514_v35  ;;  %v5861_v46 = vcombine.high %v3392_v42, %v3396_v44 }
0x1077   : > { %4248 = vmatpush1.bf16.msra.mxu0 %v5882_v47  ;;  %4208 = vmatprep.subr.bf16.mxu1 %v5889_v55 }
0x1078   : > { %4249 = vmatprep.subr.bf16.mxu0 %v5891_v56 }
0x107a   : > { %4209 = vmatpush1.bf16.msra.mxu1 %v5888_v33  ;;  %v3479_v33 = vld [vmem:[#allocation17 + $0x2c8] sm:$0xff] }
0x107b   : > { %4250 = vmatpush1.bf16.msra.mxu0 %v5890_v60  ;;  %4210 = vmatprep.subr.bf16.mxu1 %v5897_v61  ;;  %v5945_v60 = vcombine.high %v3478_v36, %v3482_v59  ;;  %v3483_v61 = vld [vmem:[#allocation17 + $0x2e8] sm:$0xff] }
0x107c   : > { %4251 = vmatprep.subr.bf16.mxu0 %v5899_v62  ;;  %v5944_v62 = vcombine.low %v3478_v36, %v3482_v59  ;;  %v5946_v0 = vcombine.low %v3479_v33, %v3483_v61 }
0x107e   : > { %4211 = vmatpush1.bf16.msra.mxu1 %v5896_v5  ;;  %v3491_v5 = vld [vmem:[#allocation17 + $0x328] sm:$0xff] }
0x107f   : > { %4252 = vmatpush1.bf16.msra.mxu0 %v5898_v10  ;;  %4212 = vmatprep.subr.bf16.mxu1 %v5905_v11  ;;  %v5954_v11 = vcombine.low %v3487_v3, %v3491_v5 }
0x1080   : > { %4253 = vmatprep.subr.bf16.mxu0 %v5907_v40  ;;  %v5955_v40 = vcombine.high %v3487_v3, %v3491_v5  ;;  %v3404_v3 = vld [vmem:[#allocation17 + $0x70] sm:$0xff]  ;;  %v3405_v5 = vld [vmem:[#allocation17 + $0x78] sm:$0xff] }
0x1082   : > { %4213 = vmatpush1.bf16.msra.mxu1 %v5904_v18  ;;  %v3499_v18 = vld [vmem:[#allocation17 + $0x368] sm:$0xff] }
0x1083   : > { %4254 = vmatpush1.bf16.msra.mxu0 %v5906_v19  ;;  %4214 = vmatprep.subr.bf16.mxu1 %v5913_v22  ;;  %v5960_v19 = vcombine.low %v3494_v15, %v3498_v4  ;;  %v5962_v22 = vcombine.low %v3495_v16, %v3499_v18  ;;  %v3412_v15 = vld [vmem:[#allocation17 + $0xb0] sm:$0xff]  ;;  %v3409_v4 = vld [vmem:[#allocation17 + $0x98] sm:$0xff] }
0x1084   : > { %4255 = vmatprep.subr.bf16.mxu0 %v5915_v25  ;;  %v5963_v25 = vcombine.high %v3495_v16, %v3499_v18  ;;  %v3413_v16 = vld [vmem:[#allocation17 + $0xb8] sm:$0xff] }
0x1086   : > { %4215 = vmatpush1.bf16.msra.mxu1 %v5912_v31  ;;  %v3507_v31 = vld [vmem:[#allocation17 + $0x3a8] sm:$0xff] }
0x1087   : > { %4256 = vmatpush1.bf16.msra.mxu0 %v5914_v32  ;;  %4216 = vmatprep.subr.bf16.mxu1 %v5921_v14  ;;  %v5968_v32 = vcombine.low %v3502_v26, %v3506_v27  ;;  %v5970_v14 = vcombine.low %v3503_v28, %v3507_v31  ;;  %v3420_v26 = vld [vmem:[#allocation17 + $0xf0] sm:$0xff]  ;;  %v3417_v27 = vld [vmem:[#allocation17 + $0xd8] sm:$0xff] }
0x1088   : > { %4257 = vmatprep.subr.bf16.mxu0 %v5923_v29  ;;  %v5971_v29 = vcombine.high %v3503_v28, %v3507_v31  ;;  %v3421_v28 = vld [vmem:[#allocation17 + $0xf8] sm:$0xff]  ;;  %v5878_v31 = vcombine.low %v3409_v4, %v3413_v16 }
0x108a   : > { %4217 = vmatpush1.bf16.msra.mxu1 %v5920_v39  ;;  %v3515_v39 = vld [vmem:[#allocation17 + $0x3e8] sm:$0xff] }
0x108b   : > { %4258 = vmatpush1.bf16.msra.mxu0 %v5922_v63  ;;  %4218 = vmatprep.subr.bf16.mxu1 %v5929_v41  ;;  %v5976_v63 = vcombine.low %v3510_v34, %v3514_v35  ;;  %v5979_v41 = vcombine.high %v3511_v37, %v3515_v39  ;;  %v3428_v34 = vld [vmem:[#allocation17 + $0x130] sm:$0xff]  ;;  %v3425_v35 = vld [vmem:[#allocation17 + $0x118] sm:$0xff] }
0x108c   : > { %4259 = vmatprep.subr.bf16.mxu0 %v5931_v20  ;;  %v5978_v20 = vcombine.low %v3511_v37, %v3515_v39  ;;  %v3429_v37 = vld [vmem:[#allocation17 + $0x138] sm:$0xff]  ;;  %v5886_v39 = vcombine.low %v3417_v27, %v3421_v28 }
0x108e   : > { %4219 = vmatpush1.bf16.msra.mxu1 %v5928_v48  ;;  %v3397_v48 = vld [vmem:[#allocation17 + $0x38] sm:$0xff] }
0x108f   : > { %4260 = vmatpush1.bf16.msra.mxu0 %v5930_v49  ;;  %4220 = vmatprep.subr.bf16.mxu1 %v5937_v50  ;;  %v5860_v49 = vcombine.low %v3392_v42, %v3396_v44  ;;  %v5862_v50 = vcombine.low %v3393_v45, %v3397_v48  ;;  %v3436_v42 = vld [vmem:[#allocation17 + $0x170] sm:$0xff]  ;;  %v3433_v44 = vld [vmem:[#allocation17 + $0x158] sm:$0xff] }
0x1090   : > { %4261 = vmatprep.subr.bf16.mxu0 %v5939_v51  ;;  %v5863_v51 = vcombine.high %v3393_v45, %v3397_v48  ;;  %v3437_v45 = vld [vmem:[#allocation17 + $0x178] sm:$0xff]  ;;  %v5894_v48 = vcombine.low %v3425_v35, %v3429_v37 }
0x1092   : > { %4221 = vmatpush1.bf16.msra.mxu1 %v5936_v52 }
0x1093   : > { %4262 = vmatpush1.bf16.msra.mxu0 %v5938_v53  ;;  %4222 = vmatprep.subr.bf16.mxu1 %v5945_v60 }
0x1096   : > { %4223 = vmatpush1.bf16.msra.mxu1 %v5944_v62 }
0x10fd   : > { %v3348_v54 = vpop.xlane.xlu0 %3347 }
0x10fe   : > { %v3349_v8 = vmul.f32 0.00390625, %v3348_v54 }
0x1100   : > { %v8043_v47 = vsub.f32 %v8035_v12, %v3349_v8  ;;  %v8046_v55 = vsub.f32 %v8038_v13, %v3349_v8  ;;  %v5947_v12 = vcombine.high %v3479_v33, %v3483_v61  ;;  %v3486_v13 = vld [vmem:[#allocation17 + $0x300] sm:$0xff]  ;;  %v3344_v8 = vld [vmem:[%s8273_s20] sm:$0x3]  ;;  %s6119_s20 = sshll.u32 %s7508_s29, 8  ;;  %s7248_s29 = scalar_lea.vmem %s8125_s30, 256 }
0x1101   : > { %v5953_v43 = vcombine.high %v3486_v13, %v3490_v2  ;;  %v5952_v10 = vcombine.low %v3486_v13, %v3490_v2  ;;  %v3400_v2 = vld [vmem:[#allocation17 + $0x50] sm:$0xff]  ;;  %p7249_p10 = scmp.ne.s32.totalorder %s8125_s30, %s7248_s29 }
0x1102   : > { %v3352_v56 = vmul.f32 %v8043_v47, %v8043_v47  ;;  %v3353_v57 = vmul.f32 %v8046_v55, %v8046_v55  ;;  %4263 = vmatprep.subr.bf16.mxu0 %v5947_v12 }
0x1103   : > { %4264 = vmatpush1.bf16.msra.mxu0 %v5946_v0  ;;  %4224 = vmatprep.subr.bf16.mxu1 %v5953_v43  ;;  %v3401_v43 = vld [vmem:[#allocation17 + $0x58] sm:$0xff]  ;;  %p7250_p9 = pnand %p7249_p10, %p8280_p12 }
0x1104   : > { %v3354_v58 = vadd.f32 %v3353_v57, %v3352_v56  ;;  %4265 = vmatprep.subr.bf16.mxu0 %v5955_v40  ;;  %4225 = vmatpush1.bf16.msra.mxu1 %v5952_v10  ;;  %v3345_v56 = vld [vmem:[%s8274_s13] sm:$0x3]  ;;  %v3370_v57 = vrot.slane %v3344_v8, %v7906_v24  ;;  %v5871_v40 = vcombine.high %v3401_v43, %v3405_v5 }
0x1105   : > { %4226 = vmatprep.subr.bf16.mxu1 %v5961_v17  ;;  %v3383_v60 = vrot.slane %v3345_v56, %v7906_v24  ;;  %v3379_v61 = vrot.slane %v3345_v56, %v7877_v9  ;;  %v5868_v17 = vcombine.low %v3400_v2, %v3404_v3  ;;  %v5870_v18 = vcombine.low %v3401_v43, %v3405_v5  ;;  %v3460_v43 = vld [vmem:[#allocation17 + $0x230] sm:$0xff]  ;;  %v3457_v5 = vld [vmem:[#allocation17 + $0x218] sm:$0xff]  ;;  %p7251_p11 = pneg %p7250_p9 }
0x1106   : > { %3355 = vadd.xlane.f32.xlu1 %v3354_v58  ;;  %v3366_v58 = vrot.slane %v3344_v8, %v7877_v9  ;;  %v5902_v56 = vcombine.low %v3433_v44, %v3437_v45 }
0x1107   : > { %4266 = vmatpush1.bf16.msra.mxu0 %v5954_v11  ;;  %v5869_v11 = vcombine.high %v3400_v2, %v3404_v3  ;;  %v3456_v3 = vld [vmem:[#allocation17 + $0x210] sm:$0xff] }
0x1108   : > { %4267 = vmatprep.subr.bf16.mxu0 %v5963_v25  ;;  %4227 = vmatpush1.bf16.msra.mxu1 %v5960_v19  ;;  %v3416_v25 = vld [vmem:[#allocation17 + $0xd0] sm:$0xff] }
0x1109   : > { %4228 = vmatprep.subr.bf16.mxu1 %v5969_v30 }
0x110b   : > { %4268 = vmatpush1.bf16.msra.mxu0 %v5962_v22  ;;  %v5879_v22 = vcombine.high %v3409_v4, %v3413_v16  ;;  %v3464_v4 = vld [vmem:[#allocation17 + $0x250] sm:$0xff] }
0x110c   : > { %4269 = vmatprep.subr.bf16.mxu0 %v5971_v29  ;;  %4229 = vmatpush1.bf16.msra.mxu1 %v5968_v32  ;;  %v5885_v32 = vcombine.high %v3416_v25, %v3420_v26  ;;  %v3424_v29 = vld [vmem:[#allocation17 + $0x110] sm:$0xff] }
0x110d   : > { %4230 = vmatprep.subr.bf16.mxu1 %v5977_v38  ;;  %v5884_v38 = vcombine.low %v3416_v25, %v3420_v26  ;;  %v3468_v16 = vld [vmem:[#allocation17 + $0x270] sm:$0xff] }
0x110e   : > { %v5933_v25 = vcombine.high %v3464_v4, %v3468_v16 }
0x110f   : > { %4270 = vmatpush1.bf16.msra.mxu0 %v5970_v14  ;;  %v5887_v14 = vcombine.high %v3417_v27, %v3421_v28  ;;  %v3472_v27 = vld [vmem:[#allocation17 + $0x290] sm:$0xff] }
0x1110   : > { %4271 = vmatprep.subr.bf16.mxu0 %v5979_v41  ;;  %4231 = vmatpush1.bf16.msra.mxu1 %v5976_v63  ;;  %v5893_v63 = vcombine.high %v3424_v29, %v3428_v34  ;;  %v5895_v41 = vcombine.high %v3425_v35, %v3429_v37  ;;  %v3476_v28 = vld [vmem:[#allocation17 + $0x2b0] sm:$0xff] }
0x1111   : > { %4282 = vmatprep.subr.bf16.mxu1 %v5861_v46  ;;  %v5892_v46 = vcombine.low %v3424_v29, %v3428_v34  ;;  %v5941_v29 = vcombine.high %v3472_v27, %v3476_v28  ;;  %v3480_v35 = vld [vmem:[#allocation17 + $0x2d0] sm:$0xff] }
0x1112   : > { %v3484_v37 = vld [vmem:[#allocation17 + $0x2f0] sm:$0xff] }
0x1113   : > { %4272 = vmatpush1.bf16.msra.mxu0 %v5978_v20  ;;  %v3432_v20 = vld [vmem:[#allocation17 + $0x150] sm:$0xff] }
0x1114   : > { %4323 = vmatprep.subr.bf16.mxu0 %v5863_v51  ;;  %v3440_v51 = vld [vmem:[#allocation17 + $0x190] sm:$0xff]  ;;  %v5900_v8 = vcombine.low %v3432_v20, %v3436_v42 }
0x1193   : > { %v3356_v52 = vpop.xlane.xlu1 %3355 }
0x1194   : > { %v3357_v53 = vmul.f32 0.00390625, %v3356_v52  ;;  %v3444_v52 = vld [vmem:[#allocation17 + $0x1b0] sm:$0xff] }
0x1196   : > { %v3358_v54 = vadd.f32 1e-05, %v3357_v53  ;;  %v3441_v53 = vld [vmem:[#allocation17 + $0x198] sm:$0xff] }
0x1198   : > { %6930 = vrsqrt.f32 %v3358_v54  ;;  %v3445_v54 = vld [vmem:[#allocation17 + $0x1b8] sm:$0xff] }
0x11a2   : > { %v6931_v36 = vpop.eup %6930 }
0x11a3   : > { %v3360_v59 = vmul.f32 %v6931_v36, %v8043_v47  ;;  %v3361_v33 = vmul.f32 %v6931_v36, %v8046_v55  ;;  %v3408_v55 = vld [vmem:[#allocation17 + $0x90] sm:$0xff] }
0x11a4   : > { %v5877_v19 = vcombine.high %v3408_v55, %v3412_v15  ;;  %v5876_v30 = vcombine.low %v3408_v55, %v3412_v15  ;;  %v3448_v36 = vld [vmem:[#allocation17 + $0x1d0] sm:$0xff] }
0x11a5   : > { %v3374_v62 = vmul.f32 %v3370_v57, %v3361_v33  ;;  %v3373_v0 = vmul.f32 %v3366_v58, %v3360_v59  ;;  %v5909_v57 = vcombine.high %v3440_v51, %v3444_v52  ;;  %v5911_v58 = vcombine.high %v3441_v53, %v3445_v54  ;;  %v3452_v59 = vld [vmem:[#allocation17 + $0x1f0] sm:$0xff]  ;;  %v3449_v33 = vld [vmem:[#allocation17 + $0x1d8] sm:$0xff] }
0x11a6   : > { %v5916_v55 = vcombine.low %v3448_v36, %v3452_v59 }
0x11a7   : > { %v8064_v12 = vadd.f32 %v3383_v60, %v3374_v62  ;;  %v8066_v13 = vadd.f32 %v3379_v61, %v3373_v0  ;;  %v3453_v60 = vld [vmem:[#allocation17 + $0x1f8] sm:$0xff]  ;;  %v5908_v61 = vcombine.low %v3440_v51, %v3444_v52  ;;  %v5910_v62 = vcombine.low %v3441_v53, %v3445_v54  ;;  %v3496_v53 = vld [vmem:[#allocation17 + $0x350] sm:$0xff] }
0x11a8   : > { %v5917_v0 = vcombine.high %v3448_v36, %v3452_v59  ;;  %v5919_v2 = vcombine.high %v3449_v33, %v3453_v60  ;;  %v3500_v54 = vld [vmem:[#allocation17 + $0x370] sm:$0xff] }
0x11a9   : > { %v3389_v10 = vpack.c.bf16 %v8064_v12, %v8064_v12  ;;  %v8072_v47 = vpack.c.bf16 %v8066_v13, %v8066_v13  ;;  %v5965_v36 = vcombine.high %v3496_v53, %v3500_v54 }
0x11ab   : > { %4232 = vmatprep.mubr.bf16.mxu1 %v3389_v10  ;;  %4273 = vmatprep.mubr.bf16.mxu0 %v3389_v10 }
0x11ac   : > { %4233 = vmatmul.mubr.bf16.vlgmr.msra.gmra.mrb[44].mxu1 %v8072_v47  ;;  %4274 = vmatmul.mubr.bf16.vlgmr.msra.gmra.mrb[20].mxu0 %v8072_v47 }
0x11ad   : > { %4283 = vmatpush1.bf16.msra.mxu1 %v5860_v49  ;;  %4324 = vmatpush1.bf16.msra.mxu0 %v5862_v50  ;;  %v5901_v49 = vcombine.high %v3432_v20, %v3436_v42  ;;  %v5903_v50 = vcombine.high %v3433_v44, %v3437_v45  ;;  %v5949_v20 = vcombine.high %v3480_v35, %v3484_v37  ;;  %v3488_v44 = vld [vmem:[#allocation17 + $0x310] sm:$0xff] }
0x11ae   : > { %4314 = vmatprep.mubr.bf16.mxu1 %v3389_v10  ;;  %4355 = vmatprep.mubr.bf16.mxu0 %v3389_v10  ;;  %v3461_v10 = vld [vmem:[#allocation17 + $0x238] sm:$0xff]  ;;  %v3492_v45 = vld [vmem:[#allocation17 + $0x330] sm:$0xff] }
0x11af   : > { %4284 = vmatprep.subr.bf16.mxu1 %v5869_v11  ;;  %4325 = vmatprep.subr.bf16.mxu0 %v5871_v40  ;;  %v5918_v11 = vcombine.low %v3449_v33, %v3453_v60  ;;  %v5925_v40 = vcombine.high %v3456_v3, %v3460_v43  ;;  %v5927_v15 = vcombine.high %v3457_v5, %v3461_v10  ;;  %v3504_v33 = vld [vmem:[#allocation17 + $0x390] sm:$0xff] }
0x11b0   : > { %v5957_v51 = vcombine.high %v3488_v44, %v3492_v45  ;;  %v3508_v60 = vld [vmem:[#allocation17 + $0x3b0] sm:$0xff] }
0x11b1   : > { %4285 = vmatpush1.bf16.msra.mxu1 %v5868_v17  ;;  %4326 = vmatpush1.bf16.msra.mxu0 %v5870_v18  ;;  %v3465_v17 = vld [vmem:[#allocation17 + $0x258] sm:$0xff] }
0x11b2   : > { %4286 = vmatprep.subr.bf16.mxu1 %v5877_v19  ;;  %4327 = vmatprep.subr.bf16.mxu0 %v5879_v22  ;;  %v3469_v18 = vld [vmem:[#allocation17 + $0x278] sm:$0xff]  ;;  %v5924_v19 = vcombine.low %v3456_v3, %v3460_v43  ;;  %v5926_v22 = vcombine.low %v3457_v5, %v3461_v10  ;;  %v5973_v3 = vcombine.high %v3504_v33, %v3508_v60  ;;  %v3512_v5 = vld [vmem:[#allocation17 + $0x3d0] sm:$0xff] }
0x11b3   : > { %v5935_v26 = vcombine.high %v3465_v17, %v3469_v18  ;;  %v3516_v10 = vld [vmem:[#allocation17 + $0x3f0] sm:$0xff] }
0x11b5   : > { %4287 = vmatpush1.bf16.msra.mxu1 %v5876_v30  ;;  %4328 = vmatpush1.bf16.msra.mxu0 %v5878_v31  ;;  %v3473_v30 = vld [vmem:[#allocation17 + $0x298] sm:$0xff] }
0x11b6   : > { %4288 = vmatprep.subr.bf16.mxu1 %v5885_v32  ;;  %4329 = vmatprep.subr.bf16.mxu0 %v5887_v14  ;;  %v3477_v31 = vld [vmem:[#allocation17 + $0x2b8] sm:$0xff]  ;;  %v5932_v32 = vcombine.low %v3464_v4, %v3468_v16  ;;  %v5934_v14 = vcombine.low %v3465_v17, %v3469_v18  ;;  %v5981_v4 = vcombine.high %v3512_v5, %v3516_v10 }
0x11b7   : > { %v5943_v34 = vcombine.high %v3473_v30, %v3477_v31  ;;  %v5980_v17 = vcombine.low %v3512_v5, %v3516_v10  ;;  %v6791_v5 = vld [vmem:[#allocation19 + $0x1b4] ss:$8 sps:$4 sm:$0xff]   ;;  %v6786_v10 = vld [vmem:[#allocation19 + $0xb0] ss:$8 sps:$4 sm:$0xff]  }
0x11b9   : > { %4289 = vmatpush1.bf16.msra.mxu1 %v5884_v38  ;;  %4330 = vmatpush1.bf16.msra.mxu0 %v5886_v39  ;;  %v3481_v38 = vld [vmem:[#allocation17 + $0x2d8] sm:$0xff] }
0x11ba   : > { %4290 = vmatprep.subr.bf16.mxu1 %v5893_v63  ;;  %4331 = vmatprep.subr.bf16.mxu0 %v5895_v41  ;;  %v3485_v39 = vld [vmem:[#allocation17 + $0x2f8] sm:$0xff]  ;;  %v5940_v63 = vcombine.low %v3472_v27, %v3476_v28  ;;  %v5942_v41 = vcombine.low %v3473_v30, %v3477_v31 }
0x11bb   : > { %v5951_v42 = vcombine.high %v3481_v38, %v3485_v39  ;;  %v6728_v27 = vld [vmem:[#allocation19 + $0x14] ss:$8 sps:$4 sm:$0xff]   ;;  %v6726_v30 = vld [vmem:[#allocation19 + $0x10] ss:$8 sps:$4 sm:$0xff]  }
0x11bc   : > { %v6731_v28 = vld [vmem:[#allocation19 + $0x114] ss:$8 sps:$4 sm:$0xff]   ;;  %v6729_v31 = vld [vmem:[#allocation19 + $0x110] ss:$8 sps:$4 sm:$0xff]  }
0x11bd   : > { %4291 = vmatpush1.bf16.msra.mxu1 %v5892_v46  ;;  %4332 = vmatpush1.bf16.msra.mxu0 %v5894_v48  ;;  %v3489_v46 = vld [vmem:[#allocation17 + $0x318] sm:$0xff] }
0x11be   : > { %4292 = vmatprep.subr.bf16.mxu1 %v5901_v49  ;;  %4333 = vmatprep.subr.bf16.mxu0 %v5903_v50  ;;  %v3493_v48 = vld [vmem:[#allocation17 + $0x338] sm:$0xff]  ;;  %v5948_v49 = vcombine.low %v3480_v35, %v3484_v37  ;;  %v5950_v50 = vcombine.low %v3481_v38, %v3485_v39  ;;  %v6746_v39 = vld [vmem:[#allocation19 + $0x44] ss:$8 sps:$4 sm:$0xff]  }
0x11bf   : > { %v5959_v52 = vcombine.high %v3489_v46, %v3493_v48  ;;  %v6740_v35 = vld [vmem:[#allocation19 + $0x34] ss:$8 sps:$4 sm:$0xff]   ;;  %v6738_v38 = vld [vmem:[#allocation19 + $0x30] ss:$8 sps:$4 sm:$0xff]  }
0x11c0   : > { %v6743_v37 = vld [vmem:[#allocation19 + $0x134] ss:$8 sps:$4 sm:$0xff]  }
0x11c1   : > { %4293 = vmatpush1.bf16.msra.mxu1 %v5900_v8  ;;  %4334 = vmatpush1.bf16.msra.mxu0 %v5902_v56  ;;  %v3497_v8 = vld [vmem:[#allocation17 + $0x358] sm:$0xff] }
0x11c2   : > { %4294 = vmatprep.subr.bf16.mxu1 %v5909_v57  ;;  %4335 = vmatprep.subr.bf16.mxu0 %v5911_v58  ;;  %v3501_v56 = vld [vmem:[#allocation17 + $0x378] sm:$0xff]  ;;  %v5956_v57 = vcombine.low %v3488_v44, %v3492_v45  ;;  %v5958_v58 = vcombine.low %v3489_v46, %v3493_v48  ;;  %v6758_v48 = vld [vmem:[#allocation19 + $0x64] ss:$8 sps:$4 sm:$0xff]  }
0x11c3   : > { %v5967_v59 = vcombine.high %v3497_v8, %v3501_v56  ;;  %v6755_v44 = vld [vmem:[#allocation19 + $0x154] ss:$8 sps:$4 sm:$0xff]   ;;  %v6750_v45 = vld [vmem:[#allocation19 + $0x50] ss:$8 sps:$4 sm:$0xff]  }
0x11c4   : > { %v6753_v46 = vld [vmem:[#allocation19 + $0x150] ss:$8 sps:$4 sm:$0xff]  }
0x11c5   : > { %4295 = vmatpush1.bf16.msra.mxu1 %v5908_v61  ;;  %4336 = vmatpush1.bf16.msra.mxu0 %v5910_v62  ;;  %v3505_v61 = vld [vmem:[#allocation17 + $0x398] sm:$0xff] }
0x11c6   : > { %4296 = vmatprep.subr.bf16.mxu1 %v5917_v0  ;;  %4337 = vmatprep.subr.bf16.mxu0 %v5919_v2  ;;  %v3509_v62 = vld [vmem:[#allocation17 + $0x3b8] sm:$0xff]  ;;  %v5964_v0 = vcombine.low %v3496_v53, %v3500_v54  ;;  %v5966_v2 = vcombine.low %v3497_v8, %v3501_v56  ;;  %v6770_v56 = vld [vmem:[#allocation19 + $0x84] ss:$8 sps:$4 sm:$0xff]  }
0x11c7   : > { %v5975_v43 = vcombine.high %v3505_v61, %v3509_v62  ;;  %v6767_v53 = vld [vmem:[#allocation19 + $0x174] ss:$8 sps:$4 sm:$0xff]   ;;  %v6762_v54 = vld [vmem:[#allocation19 + $0x70] ss:$8 sps:$4 sm:$0xff]  }
0x11c8   : > { %v6765_v8 = vld [vmem:[#allocation19 + $0x170] ss:$8 sps:$4 sm:$0xff]  }
0x11c9   : > { %4297 = vmatpush1.bf16.msra.mxu1 %v5916_v55  ;;  %4338 = vmatpush1.bf16.msra.mxu0 %v5918_v11  ;;  %v3513_v55 = vld [vmem:[#allocation17 + $0x3d8] sm:$0xff] }
0x11ca   : > { %4298 = vmatprep.subr.bf16.mxu1 %v5925_v40  ;;  %4339 = vmatprep.subr.bf16.mxu0 %v5927_v15  ;;  %v3517_v11 = vld [vmem:[#allocation17 + $0x3f8] sm:$0xff]  ;;  %v5972_v40 = vcombine.low %v3504_v33, %v3508_v60  ;;  %v5974_v15 = vcombine.low %v3505_v61, %v3509_v62  ;;  %v6782_v62 = vld [vmem:[#allocation19 + $0xa4] ss:$8 sps:$4 sm:$0xff]  }
0x11cb   : > { %v5983_v16 = vcombine.high %v3513_v55, %v3517_v11  ;;  %v5982_v18 = vcombine.low %v3513_v55, %v3517_v11  ;;  %v6779_v33 = vld [vmem:[#allocation19 + $0x194] ss:$8 sps:$4 sm:$0xff]   ;;  %v6774_v60 = vld [vmem:[#allocation19 + $0x90] ss:$8 sps:$4 sm:$0xff]   ;;  %v6794_v11 = vld [vmem:[#allocation19 + $0xc4] ss:$8 sps:$4 sm:$0xff]  }
0x11cc   : > { %v6777_v61 = vld [vmem:[#allocation19 + $0x190] ss:$8 sps:$4 sm:$0xff]  }
0x11cd   : > { %4299 = vmatpush1.bf16.msra.mxu1 %v5924_v19  ;;  %4340 = vmatpush1.bf16.msra.mxu0 %v5926_v22  ;;  %v6722_v19 = vld [vmem:[#allocation19 + $0x4] ss:$8 sps:$4 sm:$0xff]   ;;  %v6789_v55 = vld [vmem:[#allocation19 + $0x1b0] ss:$8 sps:$4 sm:$0xff]  }
0x11ce   : > { %4300 = vmatprep.subr.bf16.mxu1 %v5933_v25  ;;  %4341 = vmatprep.subr.bf16.mxu0 %v5935_v26  ;;  %v6725_v22 = vld [vmem:[#allocation19 + $0x104] ss:$8 sps:$4 sm:$0xff]   ;;  %v6720_v25 = vld [vmem:[#allocation19] ss:$8 sps:$4 sm:$0xff]  }
0x11cf   : > { %v6723_v26 = vld [vmem:[#allocation19 + $0x100] ss:$8 sps:$4 sm:$0xff]  }
0x11d1   : > { %4301 = vmatpush1.bf16.msra.mxu1 %v5932_v32  ;;  %4342 = vmatpush1.bf16.msra.mxu0 %v5934_v14  ;;  %v6734_v32 = vld [vmem:[#allocation19 + $0x24] ss:$8 sps:$4 sm:$0xff]  }
0x11d2   : > { %4302 = vmatprep.subr.bf16.mxu1 %v5941_v29  ;;  %4343 = vmatprep.subr.bf16.mxu0 %v5943_v34  ;;  %v6737_v14 = vld [vmem:[#allocation19 + $0x124] ss:$8 sps:$4 sm:$0xff]   ;;  %v6732_v29 = vld [vmem:[#allocation19 + $0x20] ss:$8 sps:$4 sm:$0xff]  }
0x11d3   : > { %v6735_v34 = vld [vmem:[#allocation19 + $0x120] ss:$8 sps:$4 sm:$0xff]  }
0x11d5   : > { %4303 = vmatpush1.bf16.msra.mxu1 %v5940_v63  ;;  %4344 = vmatpush1.bf16.msra.mxu0 %v5942_v41  ;;  %v6749_v63 = vld [vmem:[#allocation19 + $0x144] ss:$8 sps:$4 sm:$0xff]   ;;  %v6744_v41 = vld [vmem:[#allocation19 + $0x40] ss:$8 sps:$4 sm:$0xff]  }
0x11d6   : > { %4304 = vmatprep.subr.bf16.mxu1 %v5949_v20  ;;  %4345 = vmatprep.subr.bf16.mxu0 %v5951_v42  ;;  %v6747_v20 = vld [vmem:[#allocation19 + $0x140] ss:$8 sps:$4 sm:$0xff]   ;;  %v6752_v42 = vld [vmem:[#allocation19 + $0x54] ss:$8 sps:$4 sm:$0xff]  }
0x11d9   : > { %4305 = vmatpush1.bf16.msra.mxu1 %v5948_v49  ;;  %4346 = vmatpush1.bf16.msra.mxu0 %v5950_v50  ;;  %v6761_v49 = vld [vmem:[#allocation19 + $0x164] ss:$8 sps:$4 sm:$0xff]   ;;  %v6756_v50 = vld [vmem:[#allocation19 + $0x60] ss:$8 sps:$4 sm:$0xff]  }
0x11da   : > { %4306 = vmatprep.subr.bf16.mxu1 %v5957_v51  ;;  %4347 = vmatprep.subr.bf16.mxu0 %v5959_v52  ;;  %v6759_v51 = vld [vmem:[#allocation19 + $0x160] ss:$8 sps:$4 sm:$0xff]   ;;  %v6764_v52 = vld [vmem:[#allocation19 + $0x74] ss:$8 sps:$4 sm:$0xff]  }
0x11dd   : > { %4307 = vmatpush1.bf16.msra.mxu1 %v5956_v57  ;;  %4348 = vmatpush1.bf16.msra.mxu0 %v5958_v58  ;;  %v6773_v57 = vld [vmem:[#allocation19 + $0x184] ss:$8 sps:$4 sm:$0xff]   ;;  %v6768_v58 = vld [vmem:[#allocation19 + $0x80] ss:$8 sps:$4 sm:$0xff]  }
0x11de   : > { %4308 = vmatprep.subr.bf16.mxu1 %v5965_v36  ;;  %4349 = vmatprep.subr.bf16.mxu0 %v5967_v59  ;;  %v6771_v36 = vld [vmem:[#allocation19 + $0x180] ss:$8 sps:$4 sm:$0xff]   ;;  %v6776_v59 = vld [vmem:[#allocation19 + $0x94] ss:$8 sps:$4 sm:$0xff]  }
0x11e1   : > { %4309 = vmatpush1.bf16.msra.mxu1 %v5964_v0  ;;  %4350 = vmatpush1.bf16.msra.mxu0 %v5966_v2  ;;  %v6785_v0 = vld [vmem:[#allocation19 + $0x1a4] ss:$8 sps:$4 sm:$0xff]   ;;  %v6780_v2 = vld [vmem:[#allocation19 + $0xa0] ss:$8 sps:$4 sm:$0xff]  }
0x11e2   : > { %4310 = vmatprep.subr.bf16.mxu1 %v5973_v3  ;;  %4351 = vmatprep.subr.bf16.mxu0 %v5975_v43  ;;  %v6783_v3 = vld [vmem:[#allocation19 + $0x1a0] ss:$8 sps:$4 sm:$0xff]   ;;  %v6788_v43 = vld [vmem:[#allocation19 + $0xb4] ss:$8 sps:$4 sm:$0xff]  }
0x11e5   : > { %4311 = vmatpush1.bf16.msra.mxu1 %v5972_v40  ;;  %4352 = vmatpush1.bf16.msra.mxu0 %v5974_v15  ;;  %v6797_v40 = vld [vmem:[#allocation19 + $0x1c4] ss:$8 sps:$4 sm:$0xff]   ;;  %v6792_v15 = vld [vmem:[#allocation19 + $0xc0] ss:$8 sps:$4 sm:$0xff]  }
0x11e6   : > { %4312 = vmatprep.subr.bf16.mxu1 %v5981_v4  ;;  %4353 = vmatprep.subr.bf16.mxu0 %v5983_v16  ;;  %v6795_v4 = vld [vmem:[#allocation19 + $0x1c0] ss:$8 sps:$4 sm:$0xff]   ;;  %v6800_v16 = vld [vmem:[#allocation19 + $0xd4] ss:$8 sps:$4 sm:$0xff]  }
0x11e9   : > { %4313 = vmatpush1.bf16.msra.mxu1 %v5980_v17  ;;  %4354 = vmatpush1.bf16.msra.mxu0 %v5982_v18  ;;  %v6803_v17 = vld [vmem:[#allocation19 + $0x1d4] ss:$8 sps:$4 sm:$0xff]   ;;  %v6798_v18 = vld [vmem:[#allocation19 + $0xd0] ss:$8 sps:$4 sm:$0xff]  }
0x11ea   : > { %5160 = vmatprep.subr.bf16.mxu1 %v6722_v19  ;;  %5201 = vmatprep.subr.bf16.mxu0 %v6725_v22  ;;  %v6801_v19 = vld [vmem:[#allocation19 + $0x1d0] ss:$8 sps:$4 sm:$0xff]   ;;  %v6806_v22 = vld [vmem:[#allocation19 + $0xe4] ss:$8 sps:$4 sm:$0xff]  }
0x11ec   : > { %4315 = vmatmul.mubr.bf16.vlgmr.msra.gmra.mrb[48].mxu1 %v8072_v47  ;;  %4356 = vmatmul.mubr.bf16.vlgmr.msra.gmra.mrb[24].mxu0 %v8072_v47  ;;  %v6741_v47 = vld [vmem:[#allocation19 + $0x130] ss:$8 sps:$4 sm:$0xff]  }
0x11ed   : > { %5161 = vmatpush1.bf16.msra.mxu1 %v6720_v25  ;;  %5202 = vmatpush1.bf16.msra.mxu0 %v6723_v26  ;;  %v6809_v25 = vld [vmem:[#allocation19 + $0x1e4] ss:$8 sps:$4 sm:$0xff]   ;;  %v6804_v26 = vld [vmem:[#allocation19 + $0xe0] ss:$8 sps:$4 sm:$0xff]  }
0x11ee   : > { %5162 = vmatprep.subr.bf16.mxu1 %v6728_v27  ;;  %5203 = vmatprep.subr.bf16.mxu0 %v6731_v28  ;;  %v6807_v27 = vld [vmem:[#allocation19 + $0x1e0] ss:$8 sps:$4 sm:$0xff]   ;;  %v6812_v28 = vld [vmem:[#allocation19 + $0xf4] ss:$8 sps:$4 sm:$0xff]  }
0x11f1   : > { %5163 = vmatpush1.bf16.msra.mxu1 %v6726_v30  ;;  %5204 = vmatpush1.bf16.msra.mxu0 %v6729_v31  ;;  %v6815_v30 = vld [vmem:[#allocation19 + $0x1f4] ss:$8 sps:$4 sm:$0xff]   ;;  %v6810_v31 = vld [vmem:[#allocation19 + $0xf0] ss:$8 sps:$4 sm:$0xff]  }
0x11f2   : > { %5164 = vmatprep.subr.bf16.mxu1 %v6734_v32  ;;  %5205 = vmatprep.subr.bf16.mxu0 %v6737_v14  ;;  %v6813_v32 = vld [vmem:[#allocation19 + $0x1f0] ss:$8 sps:$4 sm:$0xff]   ;;  %v6818_v14 = vld [vmem:[#allocation19 + $0x204] ss:$8 sps:$4 sm:$0xff]  }
0x11f5   : > { %5165 = vmatpush1.bf16.msra.mxu1 %v6732_v29  ;;  %5206 = vmatpush1.bf16.msra.mxu0 %v6735_v34  ;;  %v6821_v29 = vld [vmem:[#allocation19 + $0x304] ss:$8 sps:$4 sm:$0xff]   ;;  %v8081_v34 = vld [vmem:[%s8275_s4] sm:$0xff]  ;;  %s8123_s4 = scalar_lea.hbm %s8279_s25, %s6119_s20 }
0x11f6   : > { %5166 = vmatprep.subr.bf16.mxu1 %v6740_v35  ;;  %5207 = vmatprep.subr.bf16.mxu0 %v6743_v37  ;;  %v3523_v35 = vrot.slane %v8081_v34, %v7877_v9  ;;  %v3531_v37 = vrot.slane %v8081_v34, %v7872_v7 }
0x11f9   : > { %5167 = vmatpush1.bf16.msra.mxu1 %v6738_v38  ;;  %5208 = vmatpush1.bf16.msra.mxu0 %v6741_v47  ;;  %v3527_v38 = vrot.slane %v8081_v34, %v7906_v24  ;;  %v3535_v47 = vrot.slane %v8081_v34, %v7900_v21  ;;  %v6819_v21 = vld [vmem:[#allocation19 + $0x300] ss:$8 sps:$4 sm:$0xff]  }
0x11fa   : > { %5168 = vmatprep.subr.bf16.mxu1 %v6746_v39  ;;  %5209 = vmatprep.subr.bf16.mxu0 %v6749_v63 }
0x11fd   : > { %5169 = vmatpush1.bf16.msra.mxu1 %v6744_v41  ;;  %5210 = vmatpush1.bf16.msra.mxu0 %v6747_v20 }
0x11fe   : > { %5170 = vmatprep.subr.bf16.mxu1 %v6752_v42  ;;  %5211 = vmatprep.subr.bf16.mxu0 %v6755_v44 }
0x1201   : > { %5171 = vmatpush1.bf16.msra.mxu1 %v6750_v45  ;;  %5212 = vmatpush1.bf16.msra.mxu0 %v6753_v46 }
0x1202   : > { %5172 = vmatprep.subr.bf16.mxu1 %v6758_v48  ;;  %5213 = vmatprep.subr.bf16.mxu0 %v6761_v49 }
0x1205   : > { %5173 = vmatpush1.bf16.msra.mxu1 %v6756_v50  ;;  %5214 = vmatpush1.bf16.msra.mxu0 %v6759_v51 }
0x1206   : > { %5174 = vmatprep.subr.bf16.mxu1 %v6764_v52  ;;  %5215 = vmatprep.subr.bf16.mxu0 %v6767_v53 }
0x1209   : > { %5175 = vmatpush1.bf16.msra.mxu1 %v6762_v54  ;;  %5216 = vmatpush1.bf16.msra.mxu0 %v6765_v8 }
0x120a   : > { %5176 = vmatprep.subr.bf16.mxu1 %v6770_v56  ;;  %5217 = vmatprep.subr.bf16.mxu0 %v6773_v57  ;;  %v6816_v57 = vld [vmem:[#allocation19 + $0x200] ss:$8 sps:$4 sm:$0xff]  }
0x120d   : > { %5177 = vmatpush1.bf16.msra.mxu1 %v6768_v58  ;;  %5218 = vmatpush1.bf16.msra.mxu0 %v6771_v36 }
0x120e   : > { %5178 = vmatprep.subr.bf16.mxu1 %v6776_v59  ;;  %5219 = vmatprep.subr.bf16.mxu0 %v6779_v33  ;;  %v6824_v59 = vld [vmem:[#allocation19 + $0x214] ss:$8 sps:$4 sm:$0xff]  }
0x120f   : > { %v6827_v33 = vld [vmem:[#allocation19 + $0x314] ss:$8 sps:$4 sm:$0xff]  }
0x1211   : > { %5179 = vmatpush1.bf16.msra.mxu1 %v6774_v60  ;;  %5220 = vmatpush1.bf16.msra.mxu0 %v6777_v61  ;;  %v6822_v60 = vld [vmem:[#allocation19 + $0x210] ss:$8 sps:$4 sm:$0xff]  }
0x1212   : > { %5180 = vmatprep.subr.bf16.mxu1 %v6782_v62  ;;  %5221 = vmatprep.subr.bf16.mxu0 %v6785_v0  ;;  %v6825_v61 = vld [vmem:[#allocation19 + $0x310] ss:$8 sps:$4 sm:$0xff]   ;;  %v6830_v62 = vld [vmem:[#allocation19 + $0x224] ss:$8 sps:$4 sm:$0xff]  }
0x1213   : > { %v6833_v0 = vld [vmem:[#allocation19 + $0x324] ss:$8 sps:$4 sm:$0xff]  }
0x1215   : > { %5181 = vmatpush1.bf16.msra.mxu1 %v6780_v2  ;;  %5222 = vmatpush1.bf16.msra.mxu0 %v6783_v3  ;;  %v6828_v2 = vld [vmem:[#allocation19 + $0x220] ss:$8 sps:$4 sm:$0xff]  }
0x1216   : > { %5182 = vmatprep.subr.bf16.mxu1 %v6788_v43  ;;  %5223 = vmatprep.subr.bf16.mxu0 %v6791_v5  ;;  %v6831_v3 = vld [vmem:[#allocation19 + $0x320] ss:$8 sps:$4 sm:$0xff]   ;;  %v6836_v43 = vld [vmem:[#allocation19 + $0x234] ss:$8 sps:$4 sm:$0xff]  }
0x1217   : > { %v6839_v5 = vld [vmem:[#allocation19 + $0x334] ss:$8 sps:$4 sm:$0xff]  }
0x1219   : > { %5183 = vmatpush1.bf16.msra.mxu1 %v6786_v10  ;;  %5224 = vmatpush1.bf16.msra.mxu0 %v6789_v55  ;;  %v6834_v10 = vld [vmem:[#allocation19 + $0x230] ss:$8 sps:$4 sm:$0xff]  }
0x121a   : > { %5184 = vmatprep.subr.bf16.mxu1 %v6794_v11  ;;  %5225 = vmatprep.subr.bf16.mxu0 %v6797_v40  ;;  %v6837_v55 = vld [vmem:[#allocation19 + $0x330] ss:$8 sps:$4 sm:$0xff]   ;;  %v6842_v11 = vld [vmem:[#allocation19 + $0x244] ss:$8 sps:$4 sm:$0xff]  }
0x121b   : > { %v6845_v40 = vld [vmem:[#allocation19 + $0x344] ss:$8 sps:$4 sm:$0xff]  }
0x121d   : > { %5185 = vmatpush1.bf16.msra.mxu1 %v6792_v15  ;;  %5226 = vmatpush1.bf16.msra.mxu0 %v6795_v4  ;;  %v6840_v15 = vld [vmem:[#allocation19 + $0x240] ss:$8 sps:$4 sm:$0xff]  }
0x121e   : > { %5186 = vmatprep.subr.bf16.mxu1 %v6800_v16  ;;  %5227 = vmatprep.subr.bf16.mxu0 %v6803_v17  ;;  %v6843_v4 = vld [vmem:[#allocation19 + $0x340] ss:$8 sps:$4 sm:$0xff]   ;;  %v6848_v16 = vld [vmem:[#allocation19 + $0x254] ss:$8 sps:$4 sm:$0xff]  }
0x121f   : > { %v6851_v17 = vld [vmem:[#allocation19 + $0x354] ss:$8 sps:$4 sm:$0xff]  }
0x1221   : > { %5187 = vmatpush1.bf16.msra.mxu1 %v6798_v18  ;;  %5228 = vmatpush1.bf16.msra.mxu0 %v6801_v19  ;;  %v6846_v18 = vld [vmem:[#allocation19 + $0x250] ss:$8 sps:$4 sm:$0xff]  }
0x1222   : > { %5188 = vmatprep.subr.bf16.mxu1 %v6806_v22  ;;  %5229 = vmatprep.subr.bf16.mxu0 %v6809_v25  ;;  %v6849_v19 = vld [vmem:[#allocation19 + $0x350] ss:$8 sps:$4 sm:$0xff]   ;;  %v6854_v22 = vld [vmem:[#allocation19 + $0x264] ss:$8 sps:$4 sm:$0xff]  }
0x1223   : > { %v6857_v25 = vld [vmem:[#allocation19 + $0x364] ss:$8 sps:$4 sm:$0xff]  }
0x1225   : > { %5189 = vmatpush1.bf16.msra.mxu1 %v6804_v26  ;;  %5230 = vmatpush1.bf16.msra.mxu0 %v6807_v27  ;;  %v6852_v26 = vld [vmem:[#allocation19 + $0x260] ss:$8 sps:$4 sm:$0xff]  }
0x1226   : > { %5190 = vmatprep.subr.bf16.mxu1 %v6812_v28  ;;  %5231 = vmatprep.subr.bf16.mxu0 %v6815_v30  ;;  %v6855_v27 = vld [vmem:[#allocation19 + $0x360] ss:$8 sps:$4 sm:$0xff]   ;;  %v6860_v28 = vld [vmem:[#allocation19 + $0x274] ss:$8 sps:$4 sm:$0xff]  }
0x1227   : > { %v6863_v30 = vld [vmem:[#allocation19 + $0x374] ss:$8 sps:$4 sm:$0xff]  }
0x1229   : > { %5191 = vmatpush1.bf16.msra.mxu1 %v6810_v31  ;;  %5232 = vmatpush1.bf16.msra.mxu0 %v6813_v32  ;;  %v6858_v31 = vld [vmem:[#allocation19 + $0x270] ss:$8 sps:$4 sm:$0xff]  }
0x122a   : > { %5242 = vmatprep.subr.bf16.mxu1 %v6818_v14  ;;  %5283 = vmatprep.subr.bf16.mxu0 %v6821_v29  ;;  %v6861_v32 = vld [vmem:[#allocation19 + $0x370] ss:$8 sps:$4 sm:$0xff]   ;;  %v6866_v14 = vld [vmem:[#allocation19 + $0x284] ss:$8 sps:$4 sm:$0xff]  }
0x122b   : > { %v6869_v29 = vld [vmem:[#allocation19 + $0x384] ss:$8 sps:$4 sm:$0xff]  }
0x127f   : > { %v4234_v39 = vpop.f32.mrb[44].mxu1  ;;  %v4275_v63 = vpop.f32.mrb[20].mxu0 }
0x1280   : > { %v4235_v41 = vadd.f32 %v4234_v39, %v3523_v35  ;;  %v4276_v20 = vadd.f32 %v4275_v63, %v3531_v37  ;;  %v4236_v42 = vpop.f32.mrb[45].mxu1  ;;  %v4277_v44 = vpop.f32.mrb[21].mxu0  ;;  %v6864_v35 = vld [vmem:[#allocation19 + $0x280] ss:$8 sps:$4 sm:$0xff]   ;;  %v6870_v39 = vld [vmem:[#allocation19 + $0x290] ss:$8 sps:$4 sm:$0xff]  }
0x1281   : > { %v4237_v45 = vadd.f32 %v4236_v42, %v3527_v38  ;;  %v4278_v46 = vadd.f32 %v4277_v44, %v3535_v47  ;;  %v4238_v48 = vpop.f32.mrb[46].mxu1  ;;  %v4279_v49 = vpop.f32.mrb[22].mxu0  ;;  %v6867_v37 = vld [vmem:[#allocation19 + $0x380] ss:$8 sps:$4 sm:$0xff]   ;;  %v6872_v38 = vld [vmem:[#allocation19 + $0x294] ss:$8 sps:$4 sm:$0xff]  }
0x1282   : > { %v4364_v50 = vmax.f32 %v4235_v41, 0.0  ;;  %v4366_v51 = vmax.f32 %v4276_v20, 0.0  ;;  %v4239_v52 = vpop.f32.mrb[47].mxu1  ;;  %v4280_v7 = vpop.f32.mrb[23].mxu0  ;;  %v6875_v47 = vld [vmem:[#allocation19 + $0x394] ss:$8 sps:$4 sm:$0xff]  }
0x1283   : > { %v4365_v53 = vmax.f32 %v4237_v45, 0.0  ;;  %v4367_v54 = vmax.f32 %v4278_v46, 0.0  ;;  %v6873_v63 = vld [vmem:[#allocation19 + $0x390] ss:$8 sps:$4 sm:$0xff]   ;;  %v6878_v41 = vld [vmem:[#allocation19 + $0x2a4] ss:$8 sps:$4 sm:$0xff]  }
0x1284   : > { %v4372_v58 = vpack.c.bf16 %v4364_v50, %v4364_v50  ;;  %v4374_v36 = vpack.c.bf16 %v4366_v51, %v4366_v51  ;;  %v6881_v20 = vld [vmem:[#allocation19 + $0x3a4] ss:$8 sps:$4 sm:$0xff]   ;;  %v6876_v42 = vld [vmem:[#allocation19 + $0x2a0] ss:$8 sps:$4 sm:$0xff]   ;;  %v6884_v45 = vld [vmem:[#allocation19 + $0x2b4] ss:$8 sps:$4 sm:$0xff]  }
0x1285   : > { %v4373_v8 = vpack.c.bf16 %v4365_v53, %v4365_v53  ;;  %v4375_v56 = vpack.c.bf16 %v4367_v54, %v4367_v54  ;;  %v6879_v44 = vld [vmem:[#allocation19 + $0x3a0] ss:$8 sps:$4 sm:$0xff]   ;;  %v6887_v46 = vld [vmem:[#allocation19 + $0x3b4] ss:$8 sps:$4 sm:$0xff]   ;;  %v6882_v48 = vld [vmem:[#allocation19 + $0x2b0] ss:$8 sps:$4 sm:$0xff]  }
0x1286   : > { %v6885_v49 = vld [vmem:[#allocation19 + $0x3b0] ss:$8 sps:$4 sm:$0xff]   ;;  %v6890_v50 = vld [vmem:[#allocation19 + $0x2c4] ss:$8 sps:$4 sm:$0xff]   ;;  %v6888_v52 = vld [vmem:[#allocation19 + $0x2c0] ss:$8 sps:$4 sm:$0xff]  }
0x1287   : > { %5192 = vmatprep.mubr.bf16.mxu1 %v4373_v8  ;;  %5233 = vmatprep.mubr.bf16.mxu0 %v4375_v56  ;;  %v6893_v51 = vld [vmem:[#allocation19 + $0x3c4] ss:$8 sps:$4 sm:$0xff]   ;;  %v6891_v7 = vld [vmem:[#allocation19 + $0x3c0] ss:$8 sps:$4 sm:$0xff]   ;;  %v6896_v53 = vld [vmem:[#allocation19 + $0x2d4] ss:$8 sps:$4 sm:$0xff]  }
0x1288   : > { %5193 = vmatmul.mubr.bf16.vlgmr.msra.gmra.mrb[52].mxu1 %v4372_v58  ;;  %5234 = vmatmul.mubr.bf16.vlgmr.msra.gmra.mrb[28].mxu0 %v4374_v36  ;;  %v6899_v54 = vld [vmem:[#allocation19 + $0x3d4] ss:$8 sps:$4 sm:$0xff]   ;;  %v3546_v8 = vsub.s32 6, %v7869_v6  ;;  %v6894_v56 = vld [vmem:[#allocation19 + $0x2d0] ss:$8 sps:$4 sm:$0xff]  }
0x1289   : > { %5243 = vmatpush1.bf16.msra.mxu1 %v6816_v57  ;;  %5284 = vmatpush1.bf16.msra.mxu0 %v6819_v21  ;;  %v6897_v57 = vld [vmem:[#allocation19 + $0x3d0] ss:$8 sps:$4 sm:$0xff]   ;;  %v3550_v21 = vsub.s32 7, %v7869_v6  ;;  %v6902_v58 = vld [vmem:[#allocation19 + $0x2e4] ss:$8 sps:$4 sm:$0xff]  }
0x128a   : > { %5244 = vmatprep.subr.bf16.mxu1 %v6824_v59  ;;  %5285 = vmatprep.subr.bf16.mxu0 %v6827_v33  ;;  %v6905_v36 = vld [vmem:[#allocation19 + $0x3e4] ss:$8 sps:$4 sm:$0xff]   ;;  %v3539_v59 = vrot.slane %v8081_v34, %v1039_v1  ;;  %v3547_v33 = vrot.slane %v8081_v34, %v3546_v8 }
0x128d   : > { %5245 = vmatpush1.bf16.msra.mxu1 %v6822_v60  ;;  %5286 = vmatpush1.bf16.msra.mxu0 %v6825_v61  ;;  %v3543_v60 = vrot.slane %v8081_v34, %v1043_v23  ;;  %v3551_v61 = vrot.slane %v8081_v34, %v3550_v21  ;;  %v6906_v23 = vld [vmem:[#allocation19 + $0x2f0] ss:$8 sps:$4 sm:$0xff]  }
0x128e   : > { %5246 = vmatprep.subr.bf16.mxu1 %v6830_v62  ;;  %5287 = vmatprep.subr.bf16.mxu0 %v6833_v0  ;;  %v6900_v62 = vld [vmem:[#allocation19 + $0x2e0] ss:$8 sps:$4 sm:$0xff]   ;;  %v6909_v34 = vld [vmem:[#allocation19 + $0x3f0] ss:$8 sps:$4 sm:$0xff]  }
0x128f   : > { %v6903_v0 = vld [vmem:[#allocation19 + $0x3e0] ss:$8 sps:$4 sm:$0xff]  }
0x1291   : > { %5247 = vmatpush1.bf16.msra.mxu1 %v6828_v2  ;;  %5288 = vmatpush1.bf16.msra.mxu0 %v6831_v3  ;;  %v6908_v2 = vld [vmem:[#allocation19 + $0x2f4] ss:$8 sps:$4 sm:$0xff]  }
0x1292   : > { %5248 = vmatprep.subr.bf16.mxu1 %v6836_v43  ;;  %5289 = vmatprep.subr.bf16.mxu0 %v6839_v5  ;;  %v6911_v3 = vld [vmem:[#allocation19 + $0x3f4] ss:$8 sps:$4 sm:$0xff]  }
0x1295   : > { %5249 = vmatpush1.bf16.msra.mxu1 %v6834_v10  ;;  %5290 = vmatpush1.bf16.msra.mxu0 %v6837_v55 }
0x1296   : > { %5250 = vmatprep.subr.bf16.mxu1 %v6842_v11  ;;  %5291 = vmatprep.subr.bf16.mxu0 %v6845_v40 }
0x1299   : > { %5251 = vmatpush1.bf16.msra.mxu1 %v6840_v15  ;;  %5292 = vmatpush1.bf16.msra.mxu0 %v6843_v4 }
0x129a   : > { %5252 = vmatprep.subr.bf16.mxu1 %v6848_v16  ;;  %5293 = vmatprep.subr.bf16.mxu0 %v6851_v17 }
0x129d   : > { %5253 = vmatpush1.bf16.msra.mxu1 %v6846_v18  ;;  %5294 = vmatpush1.bf16.msra.mxu0 %v6849_v19 }
0x129e   : > { %5254 = vmatprep.subr.bf16.mxu1 %v6854_v22  ;;  %5295 = vmatprep.subr.bf16.mxu0 %v6857_v25 }
0x12a1   : > { %5255 = vmatpush1.bf16.msra.mxu1 %v6852_v26  ;;  %5296 = vmatpush1.bf16.msra.mxu0 %v6855_v27 }
0x12a2   : > { %5256 = vmatprep.subr.bf16.mxu1 %v6860_v28  ;;  %5297 = vmatprep.subr.bf16.mxu0 %v6863_v30 }
0x12a5   : > { %5257 = vmatpush1.bf16.msra.mxu1 %v6858_v31  ;;  %5298 = vmatpush1.bf16.msra.mxu0 %v6861_v32  ;;  %v4508_v31 = vld [vmem:[%s8276_s0] sm:$0x3]  ;;  %s7254_s0 = scalar_lea.vmem %s7253_s17, 512 }
0x12a6   : > { %5258 = vmatprep.subr.bf16.mxu1 %v6866_v14  ;;  %5299 = vmatprep.subr.bf16.mxu0 %v6869_v29  ;;  %v4513_v32 = vrot.slane %v4508_v31, %v7877_v9  ;;  %v4517_v14 = vrot.slane %v4508_v31, %v7906_v24  ;;  %p7256_p8 = scmp.lt.s32.totalorder %s7254_s0, %s7248_s29 }
0x12a8   : > { %p7257_p13 = por %p7256_p8, %p7255_p2 }
0x12a9   : > { %5259 = vmatpush1.bf16.msra.mxu1 %v6864_v35  ;;  %5300 = vmatpush1.bf16.msra.mxu0 %v6867_v37 }
0x12aa   : > { %5260 = vmatprep.subr.bf16.mxu1 %v6872_v38  ;;  %5301 = vmatprep.subr.bf16.mxu0 %v6875_v47  ;;  %p7258_p5 = pnand %p7257_p13, %p7251_p11 }
0x12ad   : > { %5261 = vmatpush1.bf16.msra.mxu1 %v6870_v39  ;;  %5302 = vmatpush1.bf16.msra.mxu0 %v6873_v63 }
0x12ae   : > { %5262 = vmatprep.subr.bf16.mxu1 %v6878_v41  ;;  %5303 = vmatprep.subr.bf16.mxu0 %v6881_v20 }
0x12b1   : > { %5263 = vmatpush1.bf16.msra.mxu1 %v6876_v42  ;;  %5304 = vmatpush1.bf16.msra.mxu0 %v6879_v44 }
0x12b2   : > { %5264 = vmatprep.subr.bf16.mxu1 %v6884_v45  ;;  %5305 = vmatprep.subr.bf16.mxu0 %v6887_v46 }
0x12b5   : > { %5265 = vmatpush1.bf16.msra.mxu1 %v6882_v48  ;;  %5306 = vmatpush1.bf16.msra.mxu0 %v6885_v49 }
0x12b6   : > { %5266 = vmatprep.subr.bf16.mxu1 %v6890_v50  ;;  %5307 = vmatprep.subr.bf16.mxu0 %v6893_v51 }
0x12b9   : > { %5267 = vmatpush1.bf16.msra.mxu1 %v6888_v52  ;;  %5308 = vmatpush1.bf16.msra.mxu0 %v6891_v7 }
0x12ba   : > { %5268 = vmatprep.subr.bf16.mxu1 %v6896_v53  ;;  %5309 = vmatprep.subr.bf16.mxu0 %v6899_v54 }
0x12bd   : > { %5269 = vmatpush1.bf16.msra.mxu1 %v6894_v56  ;;  %5310 = vmatpush1.bf16.msra.mxu0 %v6897_v57 }
0x12be   : > { %5270 = vmatprep.subr.bf16.mxu1 %v6902_v58  ;;  %5311 = vmatprep.subr.bf16.mxu0 %v6905_v36 }
0x12bf   : > { %v4316_v43 = vpop.f32.mrb[48].mxu1  ;;  %v4357_v5 = vpop.f32.mrb[24].mxu0 }
0x12c0   : > { %v4317_v10 = vadd.f32 %v4316_v43, %v3539_v59  ;;  %v4358_v1 = vadd.f32 %v4357_v5, %v3547_v33  ;;  %v4318_v55 = vpop.f32.mrb[49].mxu1  ;;  %v4359_v11 = vpop.f32.mrb[25].mxu0 }
0x12c1   : > { %v4319_v40 = vadd.f32 %v4318_v55, %v3543_v60  ;;  %v4360_v15 = vadd.f32 %v4359_v11, %v3551_v61  ;;  %v4320_v4 = vpop.f32.mrb[50].mxu1  ;;  %v4361_v6 = vpop.f32.mrb[26].mxu0  ;;  %5271 = vmatpush1.bf16.msra.mxu1 %v6900_v62  ;;  %5312 = vmatpush1.bf16.msra.mxu0 %v6903_v0 }
0x12c2   : > { %v4368_v16 = vmax.f32 %v4317_v10, 0.0  ;;  %v4370_v17 = vmax.f32 %v4358_v1, 0.0  ;;  %v4321_v18 = vpop.f32.mrb[51].mxu1  ;;  %v4362_v19 = vpop.f32.mrb[27].mxu0  ;;  %5272 = vmatprep.subr.bf16.mxu1 %v6908_v2  ;;  %5313 = vmatprep.subr.bf16.mxu0 %v6911_v3 }
0x12c3   : > { %v4369_v22 = vmax.f32 %v4319_v40, 0.0  ;;  %v4371_v25 = vmax.f32 %v4360_v15, 0.0 }
0x12c4   : > { %v4376_v28 = vpack.c.bf16 %v4368_v16, %v4368_v16  ;;  %v4378_v30 = vpack.c.bf16 %v4370_v17, %v4370_v17 }
0x12c5   : > { %v4377_v26 = vpack.c.bf16 %v4369_v22, %v4369_v22  ;;  %v4379_v27 = vpack.c.bf16 %v4371_v25, %v4371_v25  ;;  %5273 = vmatpush1.bf16.msra.mxu1 %v6906_v23  ;;  %5314 = vmatpush1.bf16.msra.mxu0 %v6909_v34 }
0x12c7   : > { %5274 = vmatprep.mubr.bf16.mxu1 %v4377_v26  ;;  %5315 = vmatprep.mubr.bf16.mxu0 %v4379_v27 }
0x12c8   : > { %5275 = vmatmul.mubr.bf16.vlgmr.msra.gmra.mrb[56].mxu1 %v4376_v28  ;;  %5316 = vmatmul.mubr.bf16.vlgmr.msra.gmra.mrb[32].mxu0 %v4378_v30 }
0x135b   : > { %v5194_v29 = vpop.f32.mrb[52].mxu1  ;;  %v5235_v35 = vpop.f32.mrb[28].mxu0 }
0x135c   : > { %v5195_v37 = vadd.f32 %v5194_v29, %v4513_v32  ;;  %v5196_v38 = vpop.f32.mrb[53].mxu1  ;;  %v5237_v47 = vpop.f32.mrb[29].mxu0 }
0x135d   : > { %v5197_v39 = vadd.f32 %v5196_v38, %v4517_v14  ;;  %v5198_v63 = vpop.f32.mrb[54].mxu1  ;;  %v5239_v41 = vpop.f32.mrb[30].mxu0 }
0x135e   : > { %v5236_v20 = vadd.f32 %v5235_v35, %v5195_v37  ;;  %v5199_v42 = vpop.f32.mrb[55].mxu1  ;;  %v5240_v44 = vpop.f32.mrb[31].mxu0 }
0x135f   : > { %v5238_v45 = vadd.f32 %v5237_v47, %v5197_v39 }
0x139b   : > { %v5276_v46 = vpop.f32.mrb[56].mxu1  ;;  %v5317_v48 = vpop.f32.mrb[32].mxu0 }
0x139c   : > { %v5277_v49 = vadd.f32 %v5276_v46, %v5236_v20  ;;  %v5278_v50 = vpop.f32.mrb[57].mxu1  ;;  %v5319_v51 = vpop.f32.mrb[33].mxu0 }
0x139d   : > { %v5279_v52 = vadd.f32 %v5278_v50, %v5238_v45  ;;  %v5280_v7 = vpop.f32.mrb[58].mxu1  ;;  %v5321_v53 = vpop.f32.mrb[34].mxu0 }
0x139e   : > { %v5318_v54 = vadd.f32 %v5317_v48, %v5277_v49  ;;  %v5281_v8 = vpop.f32.mrb[59].mxu1  ;;  %v5322_v56 = vpop.f32.mrb[35].mxu0 }
0x139f   : > { %v5320_v57 = vadd.f32 %v5319_v51, %v5279_v52 }
0x13a0   : > { %v5324_v21 = vadd.f32 %v5318_v54, %v8066_v13  ;;  %v5327_v13 = vld [vmem:[%s8278_s8] sm:$0x3] }
0x13a1   : > { %v5325_v58 = vadd.f32 %v5320_v57, %v8064_v12  ;;  %v5326_v12 = vld [vmem:[%s8277_s6] sm:$0x3]  ;;  %v5361_v15 = vrot.slane %v5327_v13, %v7877_v9  ;;  %v5365_v4 = vrot.slane %v5327_v13, %v7906_v24 }
0x13a2   : > { %v5348_v10 = vrot.slane %v5326_v12, %v7877_v9  ;;  %v5352_v1 = vrot.slane %v5326_v12, %v7906_v24 }
0x13a3   : > { %v5328_v36 = vadd.f32 %v5325_v58, %v5324_v21 }
0x13a5   : > { %5329 = vadd.xlane.f32.xlu0 %v5328_v36 }
0x1432   : > { %v5330_v59 = vpop.xlane.xlu0 %5329 }
0x1433   : > { %v5331_v33 = vmul.f32 0.00390625, %v5330_v59 }
0x1435   : > { %v5332_v60 = vsub.f32 %v5324_v21, %v5331_v33  ;;  %v5333_v61 = vsub.f32 %v5325_v58, %v5331_v33 }
0x1437   : > { %v5334_v62 = vmul.f32 %v5332_v60, %v5332_v60  ;;  %v5335_v0 = vmul.f32 %v5333_v61, %v5333_v61 }
0x1439   : > { %v5336_v2 = vadd.f32 %v5335_v0, %v5334_v62 }
0x143b   : > { %5337 = vadd.xlane.f32.xlu1 %v5336_v2 }
0x14c8   : > { %v5338_v3 = vpop.xlane.xlu1 %5337 }
0x14c9   : > { %v5339_v43 = vmul.f32 0.00390625, %v5338_v3 }
0x14cb   : > { %v5340_v5 = vadd.f32 1e-05, %v5339_v43 }
0x14cd   : > { %6932 = vrsqrt.f32 %v5340_v5 }
0x14d7   : > { %v6933_v55 = vpop.eup %6932 }
0x14d8   : > { %v5342_v11 = vmul.f32 %v6933_v55, %v5332_v60  ;;  %v5343_v40 = vmul.f32 %v6933_v55, %v5333_v61 }
0x14da   : > { %v5355_v6 = vmul.f32 %v5348_v10, %v5342_v11  ;;  %v5356_v23 = vmul.f32 %v5352_v1, %v5343_v40 }
0x14dc   : > { %v5368_v34 = vadd.f32 %v5361_v15, %v5355_v6  ;;  %v5369_v16 = vadd.f32 %v5365_v4, %v5356_v23 }
0x14de   : > { %5370 = vst [vmem:[%s917_s1] sm:$0xff] %v5368_v34  ;;  %5371 = vst [vmem:[%s917_s1 + $0x8] sm:$0xff] %v5369_v16 }
0x14df   : > { %7261 = shalt.err (!%p7258_p5)
}
0x14e0   : > { %s7262_s22 = scalar_lea.hbm %s8123_s4, 256  ;;  %s7266_s6 = scalar_lea.hbm %s8279_s25, 512 }
0x14e1   : > { %p7263_p7 = scmp.ne.s32.totalorder %s8123_s4, %s7262_s22  ;;  %p7267_p3 = scmp.lt.u32.totalorder %s8123_s4, %s8279_s25 }
0x14e2   : > { %p7268_p6 = scmp.lt.u32.totalorder %s7266_s6, %s7262_s22  ;;  %p7270_p10 = scmp.lt.u32.totalorder %s7262_s22, %s8123_s4 }
0x14e3   : > { %p7264_p4 = pnand %p7263_p7, %p8280_p12 }
0x14e4   : > { %p7269_p0 = por %p7268_p6, %p7267_p3 }
0x14e5   : > { %p7265_p1 = pneg %p7264_p4 }
0x14e6   : > { %p7271_p9 = por %p7270_p10, %p7269_p0 }
0x14e8   : > { %p7272_p11 = pnand %p7271_p9, %p7265_p1 }
0x14ea   : > { %7275 = shalt.err (!%p7272_p11)
}
0x14eb   : > { %6224 = dma.vmem_to_hbm [thread:$0]  (%p8280_p12), %s8125_s30, 256, %s8123_s4, %s5373_s10  }
0x14ec PF: > { %s5399_s8 = sand.u32 1, %s7326_s5   ;;  %p8281_p2 = scmp.ne.s32.totalorder %s8253_s24, 0 }
0x14ed   : > { %p8282_p8 = scmp.ge.s32.totalorder %s7338_s28, 2  ;;  %s5400_s20 = scalar_lea.sflag [#allocation4], %s5399_s8 }
0x14ef   : > { %p6262_p13 = pnand %p8282_p8, %p8281_p2 }
0x14f1   : > { %7321 = dma.done.wait (!%p6262_p13), %s5400_s20, 256  }
0x14f2   : > { %7323 = vsyncadd (!%p6262_p13), %s5400_s20, 4294967040  ;;  %s8283_s1 = sld [smem:[#allocation29_spill]]  ;;  %p44_p5 = scmp.ge.s32.totalorder %s7722_s7, 4  }
0x14f3   : > { %s8284_s5 = smov %s7330_s26  ;;  %s8285_s26 = smov %s7334_s27 }
0x14f4   : > { %s8287_s28 = smov %s7722_s7  ;;  %46 = sbr.rel (!%p44_p5) target bundleno = 34 (0x22), region = 210 }
0x14f8   : > { %s8286_s27 = smov %s8283_s1 }
0x14fb   :  { %5405 = vsyncpa [#allocation3], 1 }
0x14fc   :  { %5407 = vsyncpa [#allocation3 + $0x1], 1 }
0x14fd   :  { %5408 = vsyncpa [#allocation6], 1 }
0x14fe   :  { %5410 = vsyncpa [#allocation6 + $0x1], 1 }
0x14ff   :  { %5411 = vsyncpa [#allocation9], 1 }
0x1500   :  { %5412 = vsyncpa [#allocation12], 1 }
0x1501   :  { %5413 = vsyncpa [#allocation15], 1 }
0x1502   :  { %5414 = vsyncpa [#allocation18], 1 }
0x1503   :  { %5415 = vsyncpa [#allocation4], 1 }
0x1504   :  { %5417 = vsyncpa [#allocation4 + $0x1], 1 }

</bundles_post_ra>
